<compile_context>
chip_gen: v5e
topology: v5e:2x2
jax: 0.10.0
libtpu: 0.0.40
codegen_flags: <defaults>
</compile_context>

<pallas_src>
import collections
import functools

import jax
import jax.numpy as jnp
from jax.experimental import pallas as pl
from jax.experimental.pallas import tpu as pltpu


Layer = collections.namedtuple("Layer", ["pad", "dil", "stride", "in_hw", "out_hw"])


def _conv_out_dim(size, pad, dil, k, stride):
    return (size + 2 * pad - dil * (k - 1) - 1) // stride + 1


def _fused_repeated_block_kernel(x_ref, w_ref, bias_ref, o_ref, slab, patch, *,
                                 cfgs, kh, kw, c, k, k_pad, wp, b_tile):
    """All DilatedBlock layers (conv + bias + ReLU) fused, B_TILE images.

    x_ref    : (B, C, H, W)         input images, NCHW, f32
    w_ref    : (L, Cout, K_pad)     per-layer im2col weights (W^T), bf16
    bias_ref : (L, Cout, 1)         per-layer bias, f32
    o_ref    : (B, C, Hout, Wout)   final activations, NCHW
    slab     : (B, C, HPmax*WPmax)  bf16 flat padded-activation scratch,
                                    fixed row pitch `wp` (= WPmax)
    patch    : (B, K_pad, Lmax)     bf16 im2col patch scratch
    """
    bf16 = slab.dtype
    l_max = patch.shape[2]
    n_layers = len(cfgs)

    def zero_slab(lo, hi):
        if hi > lo:
            slab[:, :, lo:hi] = jnp.zeros((b_tile, c, hi - lo), bf16)

    def zero_borders(pad_hw, data_hw):
        # Zero exactly the pad strips of the (HPbox, WPbox) window the next
        # conv reads; the interior holds data and anything outside the window
        # is never read for a valid output column (finite junk is harmless).
        ph, pw_ = pad_hw
        h_, w_ = data_hw
        zero_slab(0, ph * wp + pw_)                      # top rows + 1st left pad
        for r in range(h_ - 1):                          # right pad r + left pad r+1
            row = (ph + r) * wp + pw_
            zero_slab(row + w_, row + wp)
        last = (ph + h_ - 1) * wp + pw_ + w_
        zero_slab(last, (h_ + 2 * ph) * wp)              # last right pad + bottom

    # The K-padding rows of the patch are never written; the matching weight
    # columns are zero, but uninitialized VMEM could hold NaNs, so clear them.
    if k_pad > k:
        patch[:, k:, :] = jnp.zeros((b_tile, k_pad - k, l_max), bf16)

    # ---- stage the NCHW input into the padded slab (layer 0) ---------------
    ph0, pw0 = cfgs[0].pad
    in_h, in_w = cfgs[0].in_hw
    for hh in range(in_h):
        dst = (ph0 + hh) * wp + pw0
        slab[:, :, dst:dst + in_w] = x_ref[:, :, hh, :].astype(bf16)
    zero_borders(cfgs[0].pad, cfgs[0].in_hw)

    # ---- fused layer stack (static unroll over the few layers) -------------
    for li, cfg in enumerate(cfgs):
        dh, dw = cfg.dil
        sh, sw = cfg.stride
        hout, wout = cfg.out_hw
        # One matmul column per *padded* window origin; columns at
        # (ho*sh, wo*sw) are the valid conv outputs, the rest is finite junk
        # that is either discarded or re-zeroed below.
        p_len = (hout - 1) * sh * wp + (wout - 1) * sw + 1

        # im2col: each tap is a contiguous lane slice of the flat slab stored
        # at a sublane-aligned offset of the patch (no lane shuffles).
        for ikh in range(kh):
            for ikw in range(kw):
                off = ikh * dh * wp + ikw * dw
                row0 = (ikh * kw + ikw) * c
                patch[:, row0:row0 + c, :p_len] = slab[:, :, off:off + p_len]

        # One MXU matmul per image per layer: (Cout, Kpad) x (Kpad, p_len),
        # bf16 operands, f32 accumulation.  Result is lane-dense.
        acc = jnp.stack(
            [jnp.dot(w_ref[li], patch[b, :, :p_len],
                     preferred_element_type=jnp.float32)
             for b in range(b_tile)], axis=0)            # (B, Cout, p_len) f32

        # Bias + ReLU epilogue in f32 on the VPU.
        acc = jnp.maximum(acc + bias_ref[li], 0.0)

        if li == n_layers - 1:
            # Final store: valid columns of each output row into the NCHW block.
            for ho in range(hout):
                base = ho * sh * wp
                if sw == 1:
                    row = acc[:, :, base:base + wout]
                else:
                    row = acc[:, :, base:base + (wout - 1) * sw + 1:sw]
                o_ref[:, :, ho, :] = row.astype(o_ref.dtype)
        else:
            nxt = cfgs[li + 1]
            nph, npw = nxt.pad
            if sh == 1 and sw == 1:
                # Single contiguous lane-dense copy; junk columns land only in
                # the pad gaps and are re-zeroed right after.
                shift = nph * wp + npw
                slab[:, :, shift:shift + p_len] = acc.astype(bf16)
            else:
                # TODO(synk): stride > 1 is a correct but unoptimized cold
                # path (value-level strided slice per output row).
                for ho in range(hout):
                    base = ho * sh * wp
                    row = acc[:, :, base:base + (wout - 1) * sw + 1:sw]
                    dst = (nph + ho) * wp + npw
                    slab[:, :, dst:dst + wout] = row.astype(bf16)
            zero_borders(nxt.pad, nxt.in_hw)


class RepeatedBlockPallas:
    """JAX/Pallas re-implementation of RepeatedBlock (fully fused layer stack)."""

    _VMEM_BUDGET = 12 * 1024 * 1024   # B_TILE sizing budget (scratch + blocks)
    _VMEM_LIMIT = 32 * 1024 * 1024    # scoped limit; safe on v7x's 64 MiB/core

    def __init__(self, num_channels, kernel_size, stride, num_dilated, key):
        self.num_channels = int(num_channels)
        self.kernel_size = tuple(kernel_size)
        self.stride = tuple(stride)
        self.num_dilated = int(num_dilated)
        kh, kw = self.kernel_size
        c = self.num_channels
        self.k = kh * kw * c
        self.k_pad = 128 if self.k <= 128 else ((self.k + 7) // 8) * 8

        w_oihw, biases, w_t = [], [], []
        self.layer_meta = []
        for i in range(self.num_dilated):
            d = 2 ** i
            key, wk, bk = jax.random.split(key, 3)
            w = jax.random.normal(wk, (c, c, kh, kw), jnp.float32) * 0.1  # OIHW
            b = jax.random.normal(bk, (c,), jnp.float32) * 0.01
            w_oihw.append(w)
            biases.append(b)
            # im2col rows ordered (ikh, ikw, cin); W^T layout (Cout, K), K padded.
            wt = jnp.transpose(w, (0, 2, 3, 1)).reshape(c, self.k)
            w_t.append(jnp.pad(wt, ((0, 0), (0, self.k_pad - self.k))))
            self.layer_meta.append(dict(
                pad=(1, (kw - 1) // 2 * 2 * d),   # exactly the PyTorch module
                dil=(1, d)))
        self._w_oihw = w_oihw
        self.w_t = jnp.stack(w_t).astype(jnp.bfloat16)            # (L, Cout, Kpad)
        self.bias = jnp.stack([b.reshape(c, 1) for b in biases])  # (L, Cout, 1) f32

    # -- static per-call planning ---------------------------------------------
    def _plan(self, h, w):
        kh, kw = self.kernel_size
        sh, sw = self.stride
        cfgs = []
        hi, wi = h, w
        hp_max = wp_max = 0
        for meta in self.layer_meta:
            ph, pw = meta["pad"]
            dh, dw = meta["dil"]
            ho = _conv_out_dim(hi, ph, dh, kh, sh)
            wo = _conv_out_dim(wi, pw, dw, kw, sw)
            hp_max = max(hp_max, hi + 2 * ph)
            wp_max = max(wp_max, wi + 2 * pw)
            cfgs.append(Layer(pad=(ph, pw), dil=(dh, dw), stride=(sh, sw),
                              in_hw=(hi, wi), out_hw=(ho, wo)))
            hi, wi = ho, wo
        l_max = max((cfg.out_hw[0] - 1) * sh * wp_max
                    + (cfg.out_hw[1] - 1) * sw + 1 for cfg in cfgs)
        return tuple(cfgs), (hi, wi), (hp_max, wp_max), l_max

    def _pick_b_tile(self, n, h, w, out_h, out_w, hp, wp, l_max):
        c = self.num_channels

        def vmem_bytes(b):
            slab = b * c * hp * wp * 2
            patch = b * self.k_pad * l_max * 2
            x_blk = 2 * b * c * h * w * 4             # double-buffered input
            o_blk = 2 * b * c * out_h * out_w * 4     # double-buffered output
            wts = self.w_t.size * 2 + self.bias.size * 4
            return slab + patch + x_blk + o_blk + wts

        divisors = [d for d in range(1, n + 1) if n % d == 0]
        # Keep >= 2 grid steps when possible: lets the pipeline overlap DMAs
        # and keeps both v7x TensorCores busy under ("parallel",).
        cands = [d for d in divisors if n // d >= 2] or [n]
        best = 1
        for d in sorted(cands):
            if vmem_bytes(d) <= self._VMEM_BUDGET:
                best = d
        return best

    # -- forward ---------------------------------------------------------------
    def __call__(self, x_nchw):
        n, c, h, w = x_nchw.shape
        assert c == self.num_channels
        kh, kw = self.kernel_size

        cfgs, (out_h, out_w), (hp_max, wp_max), l_max = self._plan(h, w)
        b_tile = self._pick_b_tile(n, h, w, out_h, out_w, hp_max, wp_max, l_max)

        kernel = functools.partial(
            _fused_repeated_block_kernel,
            cfgs=cfgs, kh=kh, kw=kw, c=c, k=self.k, k_pad=self.k_pad,
            wp=wp_max, b_tile=b_tile)

        fused = pl.pallas_call(
            kernel,
            out_shape=jax.ShapeDtypeStruct((n, c, out_h, out_w), x_nchw.dtype),
            grid_spec=pltpu.PrefetchScalarGridSpec(
                num_scalar_prefetch=0,
                grid=(n // b_tile,),
                in_specs=[
                    pl.BlockSpec((b_tile, c, h, w), lambda i: (i, 0, 0, 0)),
                    pl.BlockSpec(self.w_t.shape, lambda i: (0, 0, 0)),
                    pl.BlockSpec(self.bias.shape, lambda i: (0, 0, 0)),
                ],
                out_specs=pl.BlockSpec((b_tile, c, out_h, out_w),
                                       lambda i: (i, 0, 0, 0)),
                scratch_shapes=[
                    pltpu.VMEM((b_tile, c, hp_max * wp_max), jnp.bfloat16),
                    pltpu.VMEM((b_tile, self.k_pad, l_max), jnp.bfloat16),
                ],
            ),
            compiler_params=pltpu.CompilerParams(
                dimension_semantics=("parallel",),
                vmem_limit_bytes=self._VMEM_LIMIT,
            ),
        )
        return fused(x_nchw, self.w_t, self.bias)

    # -- pure-JAX reference matching the kernel's numerics ---------------------
    def reference(self, x_nchw):
        """bf16 conv operands, f32 accumulation + bias + ReLU, bf16
        inter-layer activations (same quantization points as the kernel)."""
        out = x_nchw
        for li, meta in enumerate(self.layer_meta):
            ph, pw = meta["pad"]
            y = jax.lax.conv_general_dilated(
                out.astype(jnp.bfloat16),
                self._w_oihw[li].astype(jnp.bfloat16),
                window_strides=self.stride,
                padding=[(ph, ph), (pw, pw)],
                rhs_dilation=meta["dil"],
                dimension_numbers=("NCHW", "OIHW", "NCHW"),
                preferred_element_type=jnp.float32,
            )
            y = y + self.bias[li].reshape(1, -1, 1, 1)
            out = jnp.maximum(y, 0.0)
        return out


if __name__ == "__main__":
    key = jax.random.PRNGKey(0)
    key, xk, pk = jax.random.split(key, 3)

    # Small shapes consistent with the module: NCHW input.
    num_channels = 8
    kernel_size = (3, 3)
    stride = (1, 1)
    num_dilated = 2

    x = jax.random.normal(xk, (4, num_channels, 8, 16), jnp.float32)

    block = RepeatedBlockPallas(num_channels, kernel_size, stride,
                                num_dilated, pk)

    out = jax.block_until_ready(block(x))
    ref = jax.block_until_ready(block.reference(x))

    assert out.shape == ref.shape, (out.shape, ref.shape)
    max_err = float(jnp.max(jnp.abs(out - ref)))
    assert max_err < 2e-3, max_err

    print("KERNEL_OK")
</pallas_src>

<mosaic_0001>
module attributes {stable_mosaic.version = 11 : i64} {
  func.func @_fused_repeated_block_kernel(%arg0: i32, %arg1: memref<2x8x8x16xf32, #tpu.memory_space<vmem>>, %arg2: memref<2x8x128xbf16, #tpu.memory_space<vmem>>, %arg3: memref<2x8x1xf32, #tpu.memory_space<vmem>>, %arg4: memref<2x8x8x22xf32, #tpu.memory_space<vmem>>, %arg5: memref<2x8x260xbf16, #tpu.memory_space<vmem>>, %arg6: memref<2x128x204xbf16, #tpu.memory_space<vmem>>) attributes {dimension_semantics = [#tpu.dimension_semantics<parallel>], iteration_bounds = array<i64: 2>, scalar_prefetch = 0 : i64, scratch_operands = 2 : i64, tpu.core_type = #tpu.core_type<tc>, window_params = [{transform_indices = @transform_0, window_bounds = array<i64: 2, 8, 8, 16>}, {pipeline_mode = #tpu.pipeline_mode<synchronous>, transform_indices = @transform_1, window_bounds = array<i64: 2, 8, 128>}, {pipeline_mode = #tpu.pipeline_mode<synchronous>, transform_indices = @transform_2, window_bounds = array<i64: 2, 8, 1>}, {transform_indices = @transform_3, window_bounds = array<i64: 2, 8, 8, 22>}]} {
    %cst = arith.constant 0.000000e+00 : bf16
    %0 = vector.broadcast %cst : bf16 to vector<2x56x204xbf16>
    %c0 = arith.constant 0 : index
    %c72 = arith.constant 72 : index
    %c0_0 = arith.constant 0 : index
    %1 = vector.load %arg6[%c0, %c72, %c0_0] : memref<2x128x204xbf16, #tpu.memory_space<vmem>>, vector<2x56x204xbf16>
    tpu.vector_store %arg6[%c0, %c72, %c0_0], %0 {strides = array<i32>} : memref<2x128x204xbf16, #tpu.memory_space<vmem>>, vector<2x56x204xbf16>,
    %c0_1 = arith.constant 0 : index
    %c0_2 = arith.constant 0 : index
    %c0_3 = arith.constant 0 : index
    %c0_4 = arith.constant 0 : index
    %2 = vector.load %arg1[%c0_1, %c0_2, %c0_3, %c0_4] : memref<2x8x8x16xf32, #tpu.memory_space<vmem>>, vector<2x8x1x16xf32>
    %3 = vector.shape_cast %2 : vector<2x8x1x16xf32> to vector<2x8x16xf32>
    %4 = arith.truncf %3 : vector<2x8x16xf32> to vector<2x8x16xbf16>
    %c0_5 = arith.constant 0 : index
    %c0_6 = arith.constant 0 : index
    %c28 = arith.constant 28 : index
    %5 = vector.load %arg5[%c0_5, %c0_6, %c28] : memref<2x8x260xbf16, #tpu.memory_space<vmem>>, vector<2x8x16xbf16>
    tpu.vector_store %arg5[%c0_5, %c0_6, %c28], %4 {strides = array<i32>} : memref<2x8x260xbf16, #tpu.memory_space<vmem>>, vector<2x8x16xbf16>,
    %c0_7 = arith.constant 0 : index
    %c0_8 = arith.constant 0 : index
    %c1 = arith.constant 1 : index
    %c0_9 = arith.constant 0 : index
    %6 = vector.load %arg1[%c0_7, %c0_8, %c1, %c0_9] : memref<2x8x8x16xf32, #tpu.memory_space<vmem>>, vector<2x8x1x16xf32>
    %7 = vector.shape_cast %6 : vector<2x8x1x16xf32> to vector<2x8x16xf32>
    %8 = arith.truncf %7 : vector<2x8x16xf32> to vector<2x8x16xbf16>
    %c0_10 = arith.constant 0 : index
    %c0_11 = arith.constant 0 : index
    %c54 = arith.constant 54 : index
    %9 = vector.load %arg5[%c0_10, %c0_11, %c54] : memref<2x8x260xbf16, #tpu.memory_space<vmem>>, vector<2x8x16xbf16>
    tpu.vector_store %arg5[%c0_10, %c0_11, %c54], %8 {strides = array<i32>} : memref<2x8x260xbf16, #tpu.memory_space<vmem>>, vector<2x8x16xbf16>,
    %c0_12 = arith.constant 0 : index
    %c0_13 = arith.constant 0 : index
    %c2 = arith.constant 2 : index
    %c0_14 = arith.constant 0 : index
    %10 = vector.load %arg1[%c0_12, %c0_13, %c2, %c0_14] : memref<2x8x8x16xf32, #tpu.memory_space<vmem>>, vector<2x8x1x16xf32>
    %11 = vector.shape_cast %10 : vector<2x8x1x16xf32> to vector<2x8x16xf32>
    %12 = arith.truncf %11 : vector<2x8x16xf32> to vector<2x8x16xbf16>
    %c0_15 = arith.constant 0 : index
    %c0_16 = arith.constant 0 : index
    %c80 = arith.constant 80 : index
    %13 = vector.load %arg5[%c0_15, %c0_16, %c80] : memref<2x8x260xbf16, #tpu.memory_space<vmem>>, vector<2x8x16xbf16>
    tpu.vector_store %arg5[%c0_15, %c0_16, %c80], %12 {strides = array<i32>} : memref<2x8x260xbf16, #tpu.memory_space<vmem>>, vector<2x8x16xbf16>,
    %c0_17 = arith.constant 0 : index
    %c0_18 = arith.constant 0 : index
    %c3 = arith.constant 3 : index
    %c0_19 = arith.constant 0 : index
    %14 = vector.load %arg1[%c0_17, %c0_18, %c3, %c0_19] : memref<2x8x8x16xf32, #tpu.memory_space<vmem>>, vector<2x8x1x16xf32>
    %15 = vector.shape_cast %14 : vector<2x8x1x16xf32> to vector<2x8x16xf32>
    %16 = arith.truncf %15 : vector<2x8x16xf32> to vector<2x8x16xbf16>
    %c0_20 = arith.constant 0 : index
    %c0_21 = arith.constant 0 : index
    %c106 = arith.constant 106 : index
    %17 = vector.load %arg5[%c0_20, %c0_21, %c106] : memref<2x8x260xbf16, #tpu.memory_space<vmem>>, vector<2x8x16xbf16>
    tpu.vector_store %arg5[%c0_20, %c0_21, %c106], %16 {strides = array<i32>} : memref<2x8x260xbf16, #tpu.memory_space<vmem>>, vector<2x8x16xbf16>,
    %c0_22 = arith.constant 0 : index
    %c0_23 = arith.constant 0 : index
    %c4 = arith.constant 4 : index
    %c0_24 = arith.constant 0 : index
    %18 = vector.load %arg1[%c0_22, %c0_23, %c4, %c0_24] : memref<2x8x8x16xf32, #tpu.memory_space<vmem>>, vector<2x8x1x16xf32>
    %19 = vector.shape_cast %18 : vector<2x8x1x16xf32> to vector<2x8x16xf32>
    %20 = arith.truncf %19 : vector<2x8x16xf32> to vector<2x8x16xbf16>
    %c0_25 = arith.constant 0 : index
    %c0_26 = arith.constant 0 : index
    %c132 = arith.constant 132 : index
    %21 = vector.load %arg5[%c0_25, %c0_26, %c132] : memref<2x8x260xbf16, #tpu.memory_space<vmem>>, vector<2x8x16xbf16>
    tpu.vector_store %arg5[%c0_25, %c0_26, %c132], %20 {strides = array<i32>} : memref<2x8x260xbf16, #tpu.memory_space<vmem>>, vector<2x8x16xbf16>,
    %c0_27 = arith.constant 0 : index
    %c0_28 = arith.constant 0 : index
    %c5 = arith.constant 5 : index
    %c0_29 = arith.constant 0 : index
    %22 = vector.load %arg1[%c0_27, %c0_28, %c5, %c0_29] : memref<2x8x8x16xf32, #tpu.memory_space<vmem>>, vector<2x8x1x16xf32>
    %23 = vector.shape_cast %22 : vector<2x8x1x16xf32> to vector<2x8x16xf32>
    %24 = arith.truncf %23 : vector<2x8x16xf32> to vector<2x8x16xbf16>
    %c0_30 = arith.constant 0 : index
    %c0_31 = arith.constant 0 : index
    %c158 = arith.constant 158 : index
    %25 = vector.load %arg5[%c0_30, %c0_31, %c158] : memref<2x8x260xbf16, #tpu.memory_space<vmem>>, vector<2x8x16xbf16>
    tpu.vector_store %arg5[%c0_30, %c0_31, %c158], %24 {strides = array<i32>} : memref<2x8x260xbf16, #tpu.memory_space<vmem>>, vector<2x8x16xbf16>,
    %c0_32 = arith.constant 0 : index
    %c0_33 = arith.constant 0 : index
    %c6 = arith.constant 6 : index
    %c0_34 = arith.constant 0 : index
    %26 = vector.load %arg1[%c0_32, %c0_33, %c6, %c0_34] : memref<2x8x8x16xf32, #tpu.memory_space<vmem>>, vector<2x8x1x16xf32>
    %27 = vector.shape_cast %26 : vector<2x8x1x16xf32> to vector<2x8x16xf32>
    %28 = arith.truncf %27 : vector<2x8x16xf32> to vector<2x8x16xbf16>
    %c0_35 = arith.constant 0 : index
    %c0_36 = arith.constant 0 : index
    %c184 = arith.constant 184 : index
    %29 = vector.load %arg5[%c0_35, %c0_36, %c184] : memref<2x8x260xbf16, #tpu.memory_space<vmem>>, vector<2x8x16xbf16>
    tpu.vector_store %arg5[%c0_35, %c0_36, %c184], %28 {strides = array<i32>} : memref<2x8x260xbf16, #tpu.memory_space<vmem>>, vector<2x8x16xbf16>,
    %c0_37 = arith.constant 0 : index
    %c0_38 = arith.constant 0 : index
    %c7 = arith.constant 7 : index
    %c0_39 = arith.constant 0 : index
    %30 = vector.load %arg1[%c0_37, %c0_38, %c7, %c0_39] : memref<2x8x8x16xf32, #tpu.memory_space<vmem>>, vector<2x8x1x16xf32>
    %31 = vector.shape_cast %30 : vector<2x8x1x16xf32> to vector<2x8x16xf32>
    %32 = arith.truncf %31 : vector<2x8x16xf32> to vector<2x8x16xbf16>
    %c0_40 = arith.constant 0 : index
    %c0_41 = arith.constant 0 : index
    %c210 = arith.constant 210 : index
    %33 = vector.load %arg5[%c0_40, %c0_41, %c210] : memref<2x8x260xbf16, #tpu.memory_space<vmem>>, vector<2x8x16xbf16>
    tpu.vector_store %arg5[%c0_40, %c0_41, %c210], %32 {strides = array<i32>} : memref<2x8x260xbf16, #tpu.memory_space<vmem>>, vector<2x8x16xbf16>,
    %cst_42 = arith.constant 0.000000e+00 : bf16
    %34 = vector.broadcast %cst_42 : bf16 to vector<2x8x28xbf16>
    %c0_43 = arith.constant 0 : index
    %c0_44 = arith.constant 0 : index
    %c0_45 = arith.constant 0 : index
    %35 = vector.load %arg5[%c0_43, %c0_44, %c0_45] : memref<2x8x260xbf16, #tpu.memory_space<vmem>>, vector<2x8x28xbf16>
    tpu.vector_store %arg5[%c0_43, %c0_44, %c0_45], %34 {strides = array<i32>} : memref<2x8x260xbf16, #tpu.memory_space<vmem>>, vector<2x8x28xbf16>,
    %cst_46 = arith.constant 0.000000e+00 : bf16
    %36 = vector.broadcast %cst_46 : bf16 to vector<2x8x10xbf16>
    %c0_47 = arith.constant 0 : index
    %c0_48 = arith.constant 0 : index
    %c44 = arith.constant 44 : index
    %37 = vector.load %arg5[%c0_47, %c0_48, %c44] : memref<2x8x260xbf16, #tpu.memory_space<vmem>>, vector<2x8x10xbf16>
    tpu.vector_store %arg5[%c0_47, %c0_48, %c44], %36 {strides = array<i32>} : memref<2x8x260xbf16, #tpu.memory_space<vmem>>, vector<2x8x10xbf16>,
    %cst_49 = arith.constant 0.000000e+00 : bf16
    %38 = vector.broadcast %cst_49 : bf16 to vector<2x8x10xbf16>
    %c0_50 = arith.constant 0 : index
    %c0_51 = arith.constant 0 : index
    %c70 = arith.constant 70 : index
    %39 = vector.load %arg5[%c0_50, %c0_51, %c70] : memref<2x8x260xbf16, #tpu.memory_space<vmem>>, vector<2x8x10xbf16>
    tpu.vector_store %arg5[%c0_50, %c0_51, %c70], %38 {strides = array<i32>} : memref<2x8x260xbf16, #tpu.memory_space<vmem>>, vector<2x8x10xbf16>,
    %cst_52 = arith.constant 0.000000e+00 : bf16
    %40 = vector.broadcast %cst_52 : bf16 to vector<2x8x10xbf16>
    %c0_53 = arith.constant 0 : index
    %c0_54 = arith.constant 0 : index
    %c96 = arith.constant 96 : index
    %41 = vector.load %arg5[%c0_53, %c0_54, %c96] : memref<2x8x260xbf16, #tpu.memory_space<vmem>>, vector<2x8x10xbf16>
    tpu.vector_store %arg5[%c0_53, %c0_54, %c96], %40 {strides = array<i32>} : memref<2x8x260xbf16, #tpu.memory_space<vmem>>, vector<2x8x10xbf16>,
    %cst_55 = arith.constant 0.000000e+00 : bf16
    %42 = vector.broadcast %cst_55 : bf16 to vector<2x8x10xbf16>
    %c0_56 = arith.constant 0 : index
    %c0_57 = arith.constant 0 : index
    %c122 = arith.constant 122 : index
    %43 = vector.load %arg5[%c0_56, %c0_57, %c122] : memref<2x8x260xbf16, #tpu.memory_space<vmem>>, vector<2x8x10xbf16>
    tpu.vector_store %arg5[%c0_56, %c0_57, %c122], %42 {strides = array<i32>} : memref<2x8x260xbf16, #tpu.memory_space<vmem>>, vector<2x8x10xbf16>,
    %cst_58 = arith.constant 0.000000e+00 : bf16
    %44 = vector.broadcast %cst_58 : bf16 to vector<2x8x10xbf16>
    %c0_59 = arith.constant 0 : index
    %c0_60 = arith.constant 0 : index
    %c148 = arith.constant 148 : index
    %45 = vector.load %arg5[%c0_59, %c0_60, %c148] : memref<2x8x260xbf16, #tpu.memory_space<vmem>>, vector<2x8x10xbf16>
    tpu.vector_store %arg5[%c0_59, %c0_60, %c148], %44 {strides = array<i32>} : memref<2x8x260xbf16, #tpu.memory_space<vmem>>, vector<2x8x10xbf16>,
    %cst_61 = arith.constant 0.000000e+00 : bf16
    %46 = vector.broadcast %cst_61 : bf16 to vector<2x8x10xbf16>
    %c0_62 = arith.constant 0 : index
    %c0_63 = arith.constant 0 : index
    %c174 = arith.constant 174 : index
    %47 = vector.load %arg5[%c0_62, %c0_63, %c174] : memref<2x8x260xbf16, #tpu.memory_space<vmem>>, vector<2x8x10xbf16>
    tpu.vector_store %arg5[%c0_62, %c0_63, %c174], %46 {strides = array<i32>} : memref<2x8x260xbf16, #tpu.memory_space<vmem>>, vector<2x8x10xbf16>,
    %cst_64 = arith.constant 0.000000e+00 : bf16
    %48 = vector.broadcast %cst_64 : bf16 to vector<2x8x10xbf16>
    %c0_65 = arith.constant 0 : index
    %c0_66 = arith.constant 0 : index
    %c200 = arith.constant 200 : index
    %49 = vector.load %arg5[%c0_65, %c0_66, %c200] : memref<2x8x260xbf16, #tpu.memory_space<vmem>>, vector<2x8x10xbf16>
    tpu.vector_store %arg5[%c0_65, %c0_66, %c200], %48 {strides = array<i32>} : memref<2x8x260xbf16, #tpu.memory_space<vmem>>, vector<2x8x10xbf16>,
    %cst_67 = arith.constant 0.000000e+00 : bf16
    %50 = vector.broadcast %cst_67 : bf16 to vector<2x8x34xbf16>
    %c0_68 = arith.constant 0 : index
    %c0_69 = arith.constant 0 : index
    %c226 = arith.constant 226 : index
    %51 = vector.load %arg5[%c0_68, %c0_69, %c226] : memref<2x8x260xbf16, #tpu.memory_space<vmem>>, vector<2x8x34xbf16>
    tpu.vector_store %arg5[%c0_68, %c0_69, %c226], %50 {strides = array<i32>} : memref<2x8x260xbf16, #tpu.memory_space<vmem>>, vector<2x8x34xbf16>,
    %c0_70 = arith.constant 0 : index
    %c0_71 = arith.constant 0 : index
    %c0_72 = arith.constant 0 : index
    %52 = vector.load %arg5[%c0_70, %c0_71, %c0_72] : memref<2x8x260xbf16, #tpu.memory_space<vmem>>, vector<2x8x200xbf16>
    %c0_73 = arith.constant 0 : index
    %c0_74 = arith.constant 0 : index
    %c0_75 = arith.constant 0 : index
    %53 = vector.load %arg6[%c0_73, %c0_74, %c0_75] : memref<2x128x204xbf16, #tpu.memory_space<vmem>>, vector<2x8x200xbf16>
    tpu.vector_store %arg6[%c0_73, %c0_74, %c0_75], %52 {strides = array<i32>} : memref<2x128x204xbf16, #tpu.memory_space<vmem>>, vector<2x8x200xbf16>,
    %c0_76 = arith.constant 0 : index
    %c0_77 = arith.constant 0 : index
    %c1_78 = arith.constant 1 : index
    %54 = vector.load %arg5[%c0_76, %c0_77, %c1_78] : memref<2x8x260xbf16, #tpu.memory_space<vmem>>, vector<2x8x200xbf16>
    %c0_79 = arith.constant 0 : index
    %c8 = arith.constant 8 : index
    %c0_80 = arith.constant 0 : index
    %55 = vector.load %arg6[%c0_79, %c8, %c0_80] : memref<2x128x204xbf16, #tpu.memory_space<vmem>>, vector<2x8x200xbf16>
    tpu.vector_store %arg6[%c0_79, %c8, %c0_80], %54 {strides = array<i32>} : memref<2x128x204xbf16, #tpu.memory_space<vmem>>, vector<2x8x200xbf16>,
    %c0_81 = arith.constant 0 : index
    %c0_82 = arith.constant 0 : index
    %c2_83 = arith.constant 2 : index
    %56 = vector.load %arg5[%c0_81, %c0_82, %c2_83] : memref<2x8x260xbf16, #tpu.memory_space<vmem>>, vector<2x8x200xbf16>
    %c0_84 = arith.constant 0 : index
    %c16 = arith.constant 16 : index
    %c0_85 = arith.constant 0 : index
    %57 = vector.load %arg6[%c0_84, %c16, %c0_85] : memref<2x128x204xbf16, #tpu.memory_space<vmem>>, vector<2x8x200xbf16>
    tpu.vector_store %arg6[%c0_84, %c16, %c0_85], %56 {strides = array<i32>} : memref<2x128x204xbf16, #tpu.memory_space<vmem>>, vector<2x8x200xbf16>,
    %c0_86 = arith.constant 0 : index
    %c0_87 = arith.constant 0 : index
    %c26 = arith.constant 26 : index
    %58 = vector.load %arg5[%c0_86, %c0_87, %c26] : memref<2x8x260xbf16, #tpu.memory_space<vmem>>, vector<2x8x200xbf16>
    %c0_88 = arith.constant 0 : index
    %c24 = arith.constant 24 : index
    %c0_89 = arith.constant 0 : index
    %59 = vector.load %arg6[%c0_88, %c24, %c0_89] : memref<2x128x204xbf16, #tpu.memory_space<vmem>>, vector<2x8x200xbf16>
    tpu.vector_store %arg6[%c0_88, %c24, %c0_89], %58 {strides = array<i32>} : memref<2x128x204xbf16, #tpu.memory_space<vmem>>, vector<2x8x200xbf16>,
    %c0_90 = arith.constant 0 : index
    %c0_91 = arith.constant 0 : index
    %c27 = arith.constant 27 : index
    %60 = vector.load %arg5[%c0_90, %c0_91, %c27] : memref<2x8x260xbf16, #tpu.memory_space<vmem>>, vector<2x8x200xbf16>
    %c0_92 = arith.constant 0 : index
    %c32 = arith.constant 32 : index
    %c0_93 = arith.constant 0 : index
    %61 = vector.load %arg6[%c0_92, %c32, %c0_93] : memref<2x128x204xbf16, #tpu.memory_space<vmem>>, vector<2x8x200xbf16>
    tpu.vector_store %arg6[%c0_92, %c32, %c0_93], %60 {strides = array<i32>} : memref<2x128x204xbf16, #tpu.memory_space<vmem>>, vector<2x8x200xbf16>,
    %c0_94 = arith.constant 0 : index
    %c0_95 = arith.constant 0 : index
    %c28_96 = arith.constant 28 : index
    %62 = vector.load %arg5[%c0_94, %c0_95, %c28_96] : memref<2x8x260xbf16, #tpu.memory_space<vmem>>, vector<2x8x200xbf16>
    %c0_97 = arith.constant 0 : index
    %c40 = arith.constant 40 : index
    %c0_98 = arith.constant 0 : index
    %63 = vector.load %arg6[%c0_97, %c40, %c0_98] : memref<2x128x204xbf16, #tpu.memory_space<vmem>>, vector<2x8x200xbf16>
    tpu.vector_store %arg6[%c0_97, %c40, %c0_98], %62 {strides = array<i32>} : memref<2x128x204xbf16, #tpu.memory_space<vmem>>, vector<2x8x200xbf16>,
    %c0_99 = arith.constant 0 : index
    %c0_100 = arith.constant 0 : index
    %c52 = arith.constant 52 : index
    %64 = vector.load %arg5[%c0_99, %c0_100, %c52] : memref<2x8x260xbf16, #tpu.memory_space<vmem>>, vector<2x8x200xbf16>
    %c0_101 = arith.constant 0 : index
    %c48 = arith.constant 48 : index
    %c0_102 = arith.constant 0 : index
    %65 = vector.load %arg6[%c0_101, %c48, %c0_102] : memref<2x128x204xbf16, #tpu.memory_space<vmem>>, vector<2x8x200xbf16>
    tpu.vector_store %arg6[%c0_101, %c48, %c0_102], %64 {strides = array<i32>} : memref<2x128x204xbf16, #tpu.memory_space<vmem>>, vector<2x8x200xbf16>,
    %c0_103 = arith.constant 0 : index
    %c0_104 = arith.constant 0 : index
    %c53 = arith.constant 53 : index
    %66 = vector.load %arg5[%c0_103, %c0_104, %c53] : memref<2x8x260xbf16, #tpu.memory_space<vmem>>, vector<2x8x200xbf16>
    %c0_105 = arith.constant 0 : index
    %c56 = arith.constant 56 : index
    %c0_106 = arith.constant 0 : index
    %67 = vector.load %arg6[%c0_105, %c56, %c0_106] : memref<2x128x204xbf16, #tpu.memory_space<vmem>>, vector<2x8x200xbf16>
    tpu.vector_store %arg6[%c0_105, %c56, %c0_106], %66 {strides = array<i32>} : memref<2x128x204xbf16, #tpu.memory_space<vmem>>, vector<2x8x200xbf16>,
    %c0_107 = arith.constant 0 : index
    %c0_108 = arith.constant 0 : index
    %c54_109 = arith.constant 54 : index
    %68 = vector.load %arg5[%c0_107, %c0_108, %c54_109] : memref<2x8x260xbf16, #tpu.memory_space<vmem>>, vector<2x8x200xbf16>
    %c0_110 = arith.constant 0 : index
    %c64 = arith.constant 64 : index
    %c0_111 = arith.constant 0 : index
    %69 = vector.load %arg6[%c0_110, %c64, %c0_111] : memref<2x128x204xbf16, #tpu.memory_space<vmem>>, vector<2x8x200xbf16>
    tpu.vector_store %arg6[%c0_110, %c64, %c0_111], %68 {strides = array<i32>} : memref<2x128x204xbf16, #tpu.memory_space<vmem>>, vector<2x8x200xbf16>,
    %c0_112 = arith.constant 0 : index
    %c0_113 = arith.constant 0 : index
    %c0_114 = arith.constant 0 : index
    %70 = vector.load %arg2[%c0_112, %c0_113, %c0_114] : memref<2x8x128xbf16, #tpu.memory_space<vmem>>, vector<1x8x128xbf16>
    %71 = vector.shape_cast %70 : vector<1x8x128xbf16> to vector<8x128xbf16>
    %c0_115 = arith.constant 0 : index
    %c0_116 = arith.constant 0 : index
    %c0_117 = arith.constant 0 : index
    %72 = vector.load %arg6[%c0_115, %c0_116, %c0_117] : memref<2x128x204xbf16, #tpu.memory_space<vmem>>, vector<1x128x200xbf16>
    %73 = vector.shape_cast %72 : vector<1x128x200xbf16> to vector<128x200xbf16>
    %cst_118 = arith.constant dense<0.000000e+00> : vector<8x200xf32>
    %74 = tpu.matmul %71, %73, %cst_118 {dimension_numbers = #tpu.dot_dimension_numbers<[1], [0], [0], [1], [0, 0, 1, 1], [], []>} : vector<8x128xbf16>, vector<128x200xbf16>, vector<8x200xf32> -> vector<8x200xf32>
    %c0_119 = arith.constant 0 : index
    %c0_120 = arith.constant 0 : index
    %c0_121 = arith.constant 0 : index
    %75 = vector.load %arg2[%c0_119, %c0_120, %c0_121] : memref<2x8x128xbf16, #tpu.memory_space<vmem>>, vector<1x8x128xbf16>
    %76 = vector.shape_cast %75 : vector<1x8x128xbf16> to vector<8x128xbf16>
    %c1_122 = arith.constant 1 : index
    %c0_123 = arith.constant 0 : index
    %c0_124 = arith.constant 0 : index
    %77 = vector.load %arg6[%c1_122, %c0_123, %c0_124] : memref<2x128x204xbf16, #tpu.memory_space<vmem>>, vector<1x128x200xbf16>
    %78 = vector.shape_cast %77 : vector<1x128x200xbf16> to vector<128x200xbf16>
    %cst_125 = arith.constant dense<0.000000e+00> : vector<8x200xf32>
    %79 = tpu.matmul %76, %78, %cst_125 {dimension_numbers = #tpu.dot_dimension_numbers<[1], [0], [0], [1], [0, 0, 1, 1], [], []>} : vector<8x128xbf16>, vector<128x200xbf16>, vector<8x200xf32> -> vector<8x200xf32>
    %80 = vector.shape_cast %74 : vector<8x200xf32> to vector<1x8x200xf32>
    %81 = vector.shape_cast %79 : vector<8x200xf32> to vector<1x8x200xf32>
    %82 = tpu.concatenate %80, %81 in 0 : vector<1x8x200xf32>, vector<1x8x200xf32> -> vector<2x8x200xf32>
    %c0_126 = arith.constant 0 : index
    %c0_127 = arith.constant 0 : index
    %c0_128 = arith.constant 0 : index
    %83 = vector.load %arg3[%c0_126, %c0_127, %c0_128] : memref<2x8x1xf32, #tpu.memory_space<vmem>>, vector<1x8x1xf32>
    %84 = vector.shape_cast %83 : vector<1x8x1xf32> to vector<8x1xf32>
    %85 = vector.shape_cast %84 : vector<8x1xf32> to vector<1x8x1xf32>
    %86 = vector.broadcast %85 : vector<1x8x1xf32> to vector<2x8x200xf32>
    %87 = arith.addf %82, %86 : vector<2x8x200xf32>
    %cst_129 = arith.constant 0.000000e+00 : f32
    %88 = vector.broadcast %cst_129 : f32 to vector<2x8x200xf32>
    %89 = arith.maximumf %87, %88 : vector<2x8x200xf32>
    %90 = arith.truncf %89 : vector<2x8x200xf32> to vector<2x8x200xbf16>
    %c0_130 = arith.constant 0 : index
    %c0_131 = arith.constant 0 : index
    %c30 = arith.constant 30 : index
    %91 = vector.load %arg5[%c0_130, %c0_131, %c30] : memref<2x8x260xbf16, #tpu.memory_space<vmem>>, vector<2x8x200xbf16>
    tpu.vector_store %arg5[%c0_130, %c0_131, %c30], %90 {strides = array<i32>} : memref<2x8x260xbf16, #tpu.memory_space<vmem>>, vector<2x8x200xbf16>,
    %cst_132 = arith.constant 0.000000e+00 : bf16
    %92 = vector.broadcast %cst_132 : bf16 to vector<2x8x30xbf16>
    %c0_133 = arith.constant 0 : index
    %c0_134 = arith.constant 0 : index
    %c0_135 = arith.constant 0 : index
    %93 = vector.load %arg5[%c0_133, %c0_134, %c0_135] : memref<2x8x260xbf16, #tpu.memory_space<vmem>>, vector<2x8x30xbf16>
    tpu.vector_store %arg5[%c0_133, %c0_134, %c0_135], %92 {strides = array<i32>} : memref<2x8x260xbf16, #tpu.memory_space<vmem>>, vector<2x8x30xbf16>,
    %cst_136 = arith.constant 0.000000e+00 : bf16
    %94 = vector.broadcast %cst_136 : bf16 to vector<2x8x8xbf16>
    %c0_137 = arith.constant 0 : index
    %c0_138 = arith.constant 0 : index
    %c48_139 = arith.constant 48 : index
    %95 = vector.load %arg5[%c0_137, %c0_138, %c48_139] : memref<2x8x260xbf16, #tpu.memory_space<vmem>>, vector<2x8x8xbf16>
    tpu.vector_store %arg5[%c0_137, %c0_138, %c48_139], %94 {strides = array<i32>} : memref<2x8x260xbf16, #tpu.memory_space<vmem>>, vector<2x8x8xbf16>,
    %cst_140 = arith.constant 0.000000e+00 : bf16
    %96 = vector.broadcast %cst_140 : bf16 to vector<2x8x8xbf16>
    %c0_141 = arith.constant 0 : index
    %c0_142 = arith.constant 0 : index
    %c74 = arith.constant 74 : index
    %97 = vector.load %arg5[%c0_141, %c0_142, %c74] : memref<2x8x260xbf16, #tpu.memory_space<vmem>>, vector<2x8x8xbf16>
    tpu.vector_store %arg5[%c0_141, %c0_142, %c74], %96 {strides = array<i32>} : memref<2x8x260xbf16, #tpu.memory_space<vmem>>, vector<2x8x8xbf16>,
    %cst_143 = arith.constant 0.000000e+00 : bf16
    %98 = vector.broadcast %cst_143 : bf16 to vector<2x8x8xbf16>
    %c0_144 = arith.constant 0 : index
    %c0_145 = arith.constant 0 : index
    %c100 = arith.constant 100 : index
    %99 = vector.load %arg5[%c0_144, %c0_145, %c100] : memref<2x8x260xbf16, #tpu.memory_space<vmem>>, vector<2x8x8xbf16>
    tpu.vector_store %arg5[%c0_144, %c0_145, %c100], %98 {strides = array<i32>} : memref<2x8x260xbf16, #tpu.memory_space<vmem>>, vector<2x8x8xbf16>,
    %cst_146 = arith.constant 0.000000e+00 : bf16
    %100 = vector.broadcast %cst_146 : bf16 to vector<2x8x8xbf16>
    %c0_147 = arith.constant 0 : index
    %c0_148 = arith.constant 0 : index
    %c126 = arith.constant 126 : index
    %101 = vector.load %arg5[%c0_147, %c0_148, %c126] : memref<2x8x260xbf16, #tpu.memory_space<vmem>>, vector<2x8x8xbf16>
    tpu.vector_store %arg5[%c0_147, %c0_148, %c126], %100 {strides = array<i32>} : memref<2x8x260xbf16, #tpu.memory_space<vmem>>, vector<2x8x8xbf16>,
    %cst_149 = arith.constant 0.000000e+00 : bf16
    %102 = vector.broadcast %cst_149 : bf16 to vector<2x8x8xbf16>
    %c0_150 = arith.constant 0 : index
    %c0_151 = arith.constant 0 : index
    %c152 = arith.constant 152 : index
    %103 = vector.load %arg5[%c0_150, %c0_151, %c152] : memref<2x8x260xbf16, #tpu.memory_space<vmem>>, vector<2x8x8xbf16>
    tpu.vector_store %arg5[%c0_150, %c0_151, %c152], %102 {strides = array<i32>} : memref<2x8x260xbf16, #tpu.memory_space<vmem>>, vector<2x8x8xbf16>,
    %cst_152 = arith.constant 0.000000e+00 : bf16
    %104 = vector.broadcast %cst_152 : bf16 to vector<2x8x8xbf16>
    %c0_153 = arith.constant 0 : index
    %c0_154 = arith.constant 0 : index
    %c178 = arith.constant 178 : index
    %105 = vector.load %arg5[%c0_153, %c0_154, %c178] : memref<2x8x260xbf16, #tpu.memory_space<vmem>>, vector<2x8x8xbf16>
    tpu.vector_store %arg5[%c0_153, %c0_154, %c178], %104 {strides = array<i32>} : memref<2x8x260xbf16, #tpu.memory_space<vmem>>, vector<2x8x8xbf16>,
    %cst_155 = arith.constant 0.000000e+00 : bf16
    %106 = vector.broadcast %cst_155 : bf16 to vector<2x8x8xbf16>
    %c0_156 = arith.constant 0 : index
    %c0_157 = arith.constant 0 : index
    %c204 = arith.constant 204 : index
    %107 = vector.load %arg5[%c0_156, %c0_157, %c204] : memref<2x8x260xbf16, #tpu.memory_space<vmem>>, vector<2x8x8xbf16>
    tpu.vector_store %arg5[%c0_156, %c0_157, %c204], %106 {strides = array<i32>} : memref<2x8x260xbf16, #tpu.memory_space<vmem>>, vector<2x8x8xbf16>,
    %cst_158 = arith.constant 0.000000e+00 : bf16
    %108 = vector.broadcast %cst_158 : bf16 to vector<2x8x30xbf16>
    %c0_159 = arith.constant 0 : index
    %c0_160 = arith.constant 0 : index
    %c230 = arith.constant 230 : index
    %109 = vector.load %arg5[%c0_159, %c0_160, %c230] : memref<2x8x260xbf16, #tpu.memory_space<vmem>>, vector<2x8x30xbf16>
    tpu.vector_store %arg5[%c0_159, %c0_160, %c230], %108 {strides = array<i32>} : memref<2x8x260xbf16, #tpu.memory_space<vmem>>, vector<2x8x30xbf16>,
    %c0_161 = arith.constant 0 : index
    %c0_162 = arith.constant 0 : index
    %c0_163 = arith.constant 0 : index
    %110 = vector.load %arg5[%c0_161, %c0_162, %c0_163] : memref<2x8x260xbf16, #tpu.memory_space<vmem>>, vector<2x8x204xbf16>
    %c0_164 = arith.constant 0 : index
    %c0_165 = arith.constant 0 : index
    %c0_166 = arith.constant 0 : index
    %111 = vector.load %arg6[%c0_164, %c0_165, %c0_166] : memref<2x128x204xbf16, #tpu.memory_space<vmem>>, vector<2x8x204xbf16>
    tpu.vector_store %arg6[%c0_164, %c0_165, %c0_166], %110 {strides = array<i32>} : memref<2x128x204xbf16, #tpu.memory_space<vmem>>, vector<2x8x204xbf16>,
    %c0_167 = arith.constant 0 : index
    %c0_168 = arith.constant 0 : index
    %c2_169 = arith.constant 2 : index
    %112 = vector.load %arg5[%c0_167, %c0_168, %c2_169] : memref<2x8x260xbf16, #tpu.memory_space<vmem>>, vector<2x8x204xbf16>
    %c0_170 = arith.constant 0 : index
    %c8_171 = arith.constant 8 : index
    %c0_172 = arith.constant 0 : index
    %113 = vector.load %arg6[%c0_170, %c8_171, %c0_172] : memref<2x128x204xbf16, #tpu.memory_space<vmem>>, vector<2x8x204xbf16>
    tpu.vector_store %arg6[%c0_170, %c8_171, %c0_172], %112 {strides = array<i32>} : memref<2x128x204xbf16, #tpu.memory_space<vmem>>, vector<2x8x204xbf16>,
    %c0_173 = arith.constant 0 : index
    %c0_174 = arith.constant 0 : index
    %c4_175 = arith.constant 4 : index
    %114 = vector.load %arg5[%c0_173, %c0_174, %c4_175] : memref<2x8x260xbf16, #tpu.memory_space<vmem>>, vector<2x8x204xbf16>
    %c0_176 = arith.constant 0 : index
    %c16_177 = arith.constant 16 : index
    %c0_178 = arith.constant 0 : index
    %115 = vector.load %arg6[%c0_176, %c16_177, %c0_178] : memref<2x128x204xbf16, #tpu.memory_space<vmem>>, vector<2x8x204xbf16>
    tpu.vector_store %arg6[%c0_176, %c16_177, %c0_178], %114 {strides = array<i32>} : memref<2x128x204xbf16, #tpu.memory_space<vmem>>, vector<2x8x204xbf16>,
    %c0_179 = arith.constant 0 : index
    %c0_180 = arith.constant 0 : index
    %c26_181 = arith.constant 26 : index
    %116 = vector.load %arg5[%c0_179, %c0_180, %c26_181] : memref<2x8x260xbf16, #tpu.memory_space<vmem>>, vector<2x8x204xbf16>
    %c0_182 = arith.constant 0 : index
    %c24_183 = arith.constant 24 : index
    %c0_184 = arith.constant 0 : index
    %117 = vector.load %arg6[%c0_182, %c24_183, %c0_184] : memref<2x128x204xbf16, #tpu.memory_space<vmem>>, vector<2x8x204xbf16>
    tpu.vector_store %arg6[%c0_182, %c24_183, %c0_184], %116 {strides = array<i32>} : memref<2x128x204xbf16, #tpu.memory_space<vmem>>, vector<2x8x204xbf16>,
    %c0_185 = arith.constant 0 : index
    %c0_186 = arith.constant 0 : index
    %c28_187 = arith.constant 28 : index
    %118 = vector.load %arg5[%c0_185, %c0_186, %c28_187] : memref<2x8x260xbf16, #tpu.memory_space<vmem>>, vector<2x8x204xbf16>
    %c0_188 = arith.constant 0 : index
    %c32_189 = arith.constant 32 : index
    %c0_190 = arith.constant 0 : index
    %119 = vector.load %arg6[%c0_188, %c32_189, %c0_190] : memref<2x128x204xbf16, #tpu.memory_space<vmem>>, vector<2x8x204xbf16>
    tpu.vector_store %arg6[%c0_188, %c32_189, %c0_190], %118 {strides = array<i32>} : memref<2x128x204xbf16, #tpu.memory_space<vmem>>, vector<2x8x204xbf16>,
    %c0_191 = arith.constant 0 : index
    %c0_192 = arith.constant 0 : index
    %c30_193 = arith.constant 30 : index
    %120 = vector.load %arg5[%c0_191, %c0_192, %c30_193] : memref<2x8x260xbf16, #tpu.memory_space<vmem>>, vector<2x8x204xbf16>
    %c0_194 = arith.constant 0 : index
    %c40_195 = arith.constant 40 : index
    %c0_196 = arith.constant 0 : index
    %121 = vector.load %arg6[%c0_194, %c40_195, %c0_196] : memref<2x128x204xbf16, #tpu.memory_space<vmem>>, vector<2x8x204xbf16>
    tpu.vector_store %arg6[%c0_194, %c40_195, %c0_196], %120 {strides = array<i32>} : memref<2x128x204xbf16, #tpu.memory_space<vmem>>, vector<2x8x204xbf16>,
    %c0_197 = arith.constant 0 : index
    %c0_198 = arith.constant 0 : index
    %c52_199 = arith.constant 52 : index
    %122 = vector.load %arg5[%c0_197, %c0_198, %c52_199] : memref<2x8x260xbf16, #tpu.memory_space<vmem>>, vector<2x8x204xbf16>
    %c0_200 = arith.constant 0 : index
    %c48_201 = arith.constant 48 : index
    %c0_202 = arith.constant 0 : index
    %123 = vector.load %arg6[%c0_200, %c48_201, %c0_202] : memref<2x128x204xbf16, #tpu.memory_space<vmem>>, vector<2x8x204xbf16>
    tpu.vector_store %arg6[%c0_200, %c48_201, %c0_202], %122 {strides = array<i32>} : memref<2x128x204xbf16, #tpu.memory_space<vmem>>, vector<2x8x204xbf16>,
    %c0_203 = arith.constant 0 : index
    %c0_204 = arith.constant 0 : index
    %c54_205 = arith.constant 54 : index
    %124 = vector.load %arg5[%c0_203, %c0_204, %c54_205] : memref<2x8x260xbf16, #tpu.memory_space<vmem>>, vector<2x8x204xbf16>
    %c0_206 = arith.constant 0 : index
    %c56_207 = arith.constant 56 : index
    %c0_208 = arith.constant 0 : index
    %125 = vector.load %arg6[%c0_206, %c56_207, %c0_208] : memref<2x128x204xbf16, #tpu.memory_space<vmem>>, vector<2x8x204xbf16>
    tpu.vector_store %arg6[%c0_206, %c56_207, %c0_208], %124 {strides = array<i32>} : memref<2x128x204xbf16, #tpu.memory_space<vmem>>, vector<2x8x204xbf16>,
    %c0_209 = arith.constant 0 : index
    %c0_210 = arith.constant 0 : index
    %c56_211 = arith.constant 56 : index
    %126 = vector.load %arg5[%c0_209, %c0_210, %c56_211] : memref<2x8x260xbf16, #tpu.memory_space<vmem>>, vector<2x8x204xbf16>
    %c0_212 = arith.constant 0 : index
    %c64_213 = arith.constant 64 : index
    %c0_214 = arith.constant 0 : index
    %127 = vector.load %arg6[%c0_212, %c64_213, %c0_214] : memref<2x128x204xbf16, #tpu.memory_space<vmem>>, vector<2x8x204xbf16>
    tpu.vector_store %arg6[%c0_212, %c64_213, %c0_214], %126 {strides = array<i32>} : memref<2x128x204xbf16, #tpu.memory_space<vmem>>, vector<2x8x204xbf16>,
    %c1_215 = arith.constant 1 : index
    %c0_216 = arith.constant 0 : index
    %c0_217 = arith.constant 0 : index
    %128 = vector.load %arg2[%c1_215, %c0_216, %c0_217] : memref<2x8x128xbf16, #tpu.memory_space<vmem>>, vector<1x8x128xbf16>
    %129 = vector.shape_cast %128 : vector<1x8x128xbf16> to vector<8x128xbf16>
    %c0_218 = arith.constant 0 : index
    %c0_219 = arith.constant 0 : index
    %c0_220 = arith.constant 0 : index
    %130 = vector.load %arg6[%c0_218, %c0_219, %c0_220] : memref<2x128x204xbf16, #tpu.memory_space<vmem>>, vector<1x128x204xbf16>
    %131 = vector.shape_cast %130 : vector<1x128x204xbf16> to vector<128x204xbf16>
    %cst_221 = arith.constant dense<0.000000e+00> : vector<8x204xf32>
    %132 = tpu.matmul %129, %131, %cst_221 {dimension_numbers = #tpu.dot_dimension_numbers<[1], [0], [0], [1], [0, 0, 1, 1], [], []>} : vector<8x128xbf16>, vector<128x204xbf16>, vector<8x204xf32> -> vector<8x204xf32>
    %c1_222 = arith.constant 1 : index
    %c0_223 = arith.constant 0 : index
    %c0_224 = arith.constant 0 : index
    %133 = vector.load %arg2[%c1_222, %c0_223, %c0_224] : memref<2x8x128xbf16, #tpu.memory_space<vmem>>, vector<1x8x128xbf16>
    %134 = vector.shape_cast %133 : vector<1x8x128xbf16> to vector<8x128xbf16>
    %c1_225 = arith.constant 1 : index
    %c0_226 = arith.constant 0 : index
    %c0_227 = arith.constant 0 : index
    %135 = vector.load %arg6[%c1_225, %c0_226, %c0_227] : memref<2x128x204xbf16, #tpu.memory_space<vmem>>, vector<1x128x204xbf16>
    %136 = vector.shape_cast %135 : vector<1x128x204xbf16> to vector<128x204xbf16>
    %cst_228 = arith.constant dense<0.000000e+00> : vector<8x204xf32>
    %137 = tpu.matmul %134, %136, %cst_228 {dimension_numbers = #tpu.dot_dimension_numbers<[1], [0], [0], [1], [0, 0, 1, 1], [], []>} : vector<8x128xbf16>, vector<128x204xbf16>, vector<8x204xf32> -> vector<8x204xf32>
    %138 = vector.shape_cast %132 : vector<8x204xf32> to vector<1x8x204xf32>
    %139 = vector.shape_cast %137 : vector<8x204xf32> to vector<1x8x204xf32>
    %140 = tpu.concatenate %138, %139 in 0 : vector<1x8x204xf32>, vector<1x8x204xf32> -> vector<2x8x204xf32>
    %c1_229 = arith.constant 1 : index
    %c0_230 = arith.constant 0 : index
    %c0_231 = arith.constant 0 : index
    %141 = vector.load %arg3[%c1_229, %c0_230, %c0_231] : memref<2x8x1xf32, #tpu.memory_space<vmem>>, vector<1x8x1xf32>
    %142 = vector.shape_cast %141 : vector<1x8x1xf32> to vector<8x1xf32>
    %143 = vector.shape_cast %142 : vector<8x1xf32> to vector<1x8x1xf32>
    %144 = vector.broadcast %143 : vector<1x8x1xf32> to vector<2x8x204xf32>
    %145 = arith.addf %140, %144 : vector<2x8x204xf32>
    %cst_232 = arith.constant 0.000000e+00 : f32
    %146 = vector.broadcast %cst_232 : f32 to vector<2x8x204xf32>
    %147 = arith.maximumf %145, %146 : vector<2x8x204xf32>
    %148 = vector.extract_strided_slice %147 {offsets = [0, 0, 0], sizes = [2, 8, 22], strides = [1, 1, 1]} : vector<2x8x204xf32> to vector<2x8x22xf32>
    %c0_233 = arith.constant 0 : index
    %c0_234 = arith.constant 0 : index
    %c0_235 = arith.constant 0 : index
    %c0_236 = arith.constant 0 : index
    %149 = vector.load %arg4[%c0_233, %c0_234, %c0_235, %c0_236] : memref<2x8x8x22xf32, #tpu.memory_space<vmem>>, vector<2x8x1x22xf32>
    %150 = vector.shape_cast %149 : vector<2x8x1x22xf32> to vector<2x8x22xf32>
    %151 = vector.shape_cast %148 : vector<2x8x22xf32> to vector<2x8x1x22xf32>
    tpu.vector_store %arg4[%c0_233, %c0_234, %c0_235, %c0_236], %151 {strides = array<i32>} : memref<2x8x8x22xf32, #tpu.memory_space<vmem>>, vector<2x8x1x22xf32>,
    %152 = vector.extract_strided_slice %147 {offsets = [0, 0, 26], sizes = [2, 8, 22], strides = [1, 1, 1]} : vector<2x8x204xf32> to vector<2x8x22xf32>
    %c0_237 = arith.constant 0 : index
    %c0_238 = arith.constant 0 : index
    %c1_239 = arith.constant 1 : index
    %c0_240 = arith.constant 0 : index
    %153 = vector.load %arg4[%c0_237, %c0_238, %c1_239, %c0_240] : memref<2x8x8x22xf32, #tpu.memory_space<vmem>>, vector<2x8x1x22xf32>
    %154 = vector.shape_cast %153 : vector<2x8x1x22xf32> to vector<2x8x22xf32>
    %155 = vector.shape_cast %152 : vector<2x8x22xf32> to vector<2x8x1x22xf32>
    tpu.vector_store %arg4[%c0_237, %c0_238, %c1_239, %c0_240], %155 {strides = array<i32>} : memref<2x8x8x22xf32, #tpu.memory_space<vmem>>, vector<2x8x1x22xf32>,
    %156 = vector.extract_strided_slice %147 {offsets = [0, 0, 52], sizes = [2, 8, 22], strides = [1, 1, 1]} : vector<2x8x204xf32> to vector<2x8x22xf32>
    %c0_241 = arith.constant 0 : index
    %c0_242 = arith.constant 0 : index
    %c2_243 = arith.constant 2 : index
    %c0_244 = arith.constant 0 : index
    %157 = vector.load %arg4[%c0_241, %c0_242, %c2_243, %c0_244] : memref<2x8x8x22xf32, #tpu.memory_space<vmem>>, vector<2x8x1x22xf32>
    %158 = vector.shape_cast %157 : vector<2x8x1x22xf32> to vector<2x8x22xf32>
    %159 = vector.shape_cast %156 : vector<2x8x22xf32> to vector<2x8x1x22xf32>
    tpu.vector_store %arg4[%c0_241, %c0_242, %c2_243, %c0_244], %159 {strides = array<i32>} : memref<2x8x8x22xf32, #tpu.memory_space<vmem>>, vector<2x8x1x22xf32>,
    %160 = vector.extract_strided_slice %147 {offsets = [0, 0, 78], sizes = [2, 8, 22], strides = [1, 1, 1]} : vector<2x8x204xf32> to vector<2x8x22xf32>
    %c0_245 = arith.constant 0 : index
    %c0_246 = arith.constant 0 : index
    %c3_247 = arith.constant 3 : index
    %c0_248 = arith.constant 0 : index
    %161 = vector.load %arg4[%c0_245, %c0_246, %c3_247, %c0_248] : memref<2x8x8x22xf32, #tpu.memory_space<vmem>>, vector<2x8x1x22xf32>
    %162 = vector.shape_cast %161 : vector<2x8x1x22xf32> to vector<2x8x22xf32>
    %163 = vector.shape_cast %160 : vector<2x8x22xf32> to vector<2x8x1x22xf32>
    tpu.vector_store %arg4[%c0_245, %c0_246, %c3_247, %c0_248], %163 {strides = array<i32>} : memref<2x8x8x22xf32, #tpu.memory_space<vmem>>, vector<2x8x1x22xf32>,
    %164 = vector.extract_strided_slice %147 {offsets = [0, 0, 104], sizes = [2, 8, 22], strides = [1, 1, 1]} : vector<2x8x204xf32> to vector<2x8x22xf32>
    %c0_249 = arith.constant 0 : index
    %c0_250 = arith.constant 0 : index
    %c4_251 = arith.constant 4 : index
    %c0_252 = arith.constant 0 : index
    %165 = vector.load %arg4[%c0_249, %c0_250, %c4_251, %c0_252] : memref<2x8x8x22xf32, #tpu.memory_space<vmem>>, vector<2x8x1x22xf32>
    %166 = vector.shape_cast %165 : vector<2x8x1x22xf32> to vector<2x8x22xf32>
    %167 = vector.shape_cast %164 : vector<2x8x22xf32> to vector<2x8x1x22xf32>
    tpu.vector_store %arg4[%c0_249, %c0_250, %c4_251, %c0_252], %167 {strides = array<i32>} : memref<2x8x8x22xf32, #tpu.memory_space<vmem>>, vector<2x8x1x22xf32>,
    %168 = vector.extract_strided_slice %147 {offsets = [0, 0, 130], sizes = [2, 8, 22], strides = [1, 1, 1]} : vector<2x8x204xf32> to vector<2x8x22xf32>
    %c0_253 = arith.constant 0 : index
    %c0_254 = arith.constant 0 : index
    %c5_255 = arith.constant 5 : index
    %c0_256 = arith.constant 0 : index
    %169 = vector.load %arg4[%c0_253, %c0_254, %c5_255, %c0_256] : memref<2x8x8x22xf32, #tpu.memory_space<vmem>>, vector<2x8x1x22xf32>
    %170 = vector.shape_cast %169 : vector<2x8x1x22xf32> to vector<2x8x22xf32>
    %171 = vector.shape_cast %168 : vector<2x8x22xf32> to vector<2x8x1x22xf32>
    tpu.vector_store %arg4[%c0_253, %c0_254, %c5_255, %c0_256], %171 {strides = array<i32>} : memref<2x8x8x22xf32, #tpu.memory_space<vmem>>, vector<2x8x1x22xf32>,
    %172 = vector.extract_strided_slice %147 {offsets = [0, 0, 156], sizes = [2, 8, 22], strides = [1, 1, 1]} : vector<2x8x204xf32> to vector<2x8x22xf32>
    %c0_257 = arith.constant 0 : index
    %c0_258 = arith.constant 0 : index
    %c6_259 = arith.constant 6 : index
    %c0_260 = arith.constant 0 : index
    %173 = vector.load %arg4[%c0_257, %c0_258, %c6_259, %c0_260] : memref<2x8x8x22xf32, #tpu.memory_space<vmem>>, vector<2x8x1x22xf32>
    %174 = vector.shape_cast %173 : vector<2x8x1x22xf32> to vector<2x8x22xf32>
    %175 = vector.shape_cast %172 : vector<2x8x22xf32> to vector<2x8x1x22xf32>
    tpu.vector_store %arg4[%c0_257, %c0_258, %c6_259, %c0_260], %175 {strides = array<i32>} : memref<2x8x8x22xf32, #tpu.memory_space<vmem>>, vector<2x8x1x22xf32>,
    %176 = vector.extract_strided_slice %147 {offsets = [0, 0, 182], sizes = [2, 8, 22], strides = [1, 1, 1]} : vector<2x8x204xf32> to vector<2x8x22xf32>
    %c0_261 = arith.constant 0 : index
    %c0_262 = arith.constant 0 : index
    %c7_263 = arith.constant 7 : index
    %c0_264 = arith.constant 0 : index
    %177 = vector.load %arg4[%c0_261, %c0_262, %c7_263, %c0_264] : memref<2x8x8x22xf32, #tpu.memory_space<vmem>>, vector<2x8x1x22xf32>
    %178 = vector.shape_cast %177 : vector<2x8x1x22xf32> to vector<2x8x22xf32>
    %179 = vector.shape_cast %176 : vector<2x8x22xf32> to vector<2x8x1x22xf32>
    tpu.vector_store %arg4[%c0_261, %c0_262, %c7_263, %c0_264], %179 {strides = array<i32>} : memref<2x8x8x22xf32, #tpu.memory_space<vmem>>, vector<2x8x1x22xf32>,
    return
  }
  func.func @transform_0(%arg0: i32) -> (i32, i32, i32, i32) {
    %c0_i32 = arith.constant 0 : i32
    %c0_i32_0 = arith.constant 0 : i32
    %c0_i32_1 = arith.constant 0 : i32
    %c0_i32_2 = arith.constant 0 : i32
    return %arg0, %c0_i32, %c0_i32_0, %c0_i32_1 : i32, i32, i32, i32
  }
  func.func @transform_1(%arg0: i32) -> (i32, i32, i32) {
    %c0_i32 = arith.constant 0 : i32
    %c0_i32_0 = arith.constant 0 : i32
    %c0_i32_1 = arith.constant 0 : i32
    %c0_i32_2 = arith.constant 0 : i32
    return %c0_i32, %c0_i32_0, %c0_i32_1 : i32, i32, i32
  }
  func.func @transform_2(%arg0: i32) -> (i32, i32, i32) {
    %c0_i32 = arith.constant 0 : i32
    %c0_i32_0 = arith.constant 0 : i32
    %c0_i32_1 = arith.constant 0 : i32
    %c0_i32_2 = arith.constant 0 : i32
    return %c0_i32, %c0_i32_0, %c0_i32_1 : i32, i32, i32
  }
  func.func @transform_3(%arg0: i32) -> (i32, i32, i32, i32) {
    %c0_i32 = arith.constant 0 : i32
    %c0_i32_0 = arith.constant 0 : i32
    %c0_i32_1 = arith.constant 0 : i32
    %c0_i32_2 = arith.constant 0 : i32
    return %arg0, %c0_i32, %c0_i32_0, %c0_i32_1 : i32, i32, i32, i32
  }
}

</mosaic_0001>

<bundles_post_ra>
// kernel: tpu_custom_call.1
= control target key start
LH: loop header
LB: loop body
LE: loop exit
PB: predicated region body
PF: predicated region fallthrough
CT: control target
= control target key end

     0   :  { %8 = vsyncpa [#allocation5], 0  ;;  %s4345_s0 = inlined_call_operand.hbm [shape: f32[4,8,8,16], index: 0, kind: input, shape index: {}]   ;;  %s4346_s1 = inlined_call_operand.vmem [shape: bf16[2,8,128], index: 1, kind: input, shape index: {}]   ;;  %s4347_s2 = inlined_call_operand.vmem [shape: f32[2,8,1], index: 2, kind: input, shape index: {}]   ;;  %s4348_s3 = inlined_call_operand.hbm [shape: f32[4,8,8,22], index: 3, kind: output, shape index: {}]  }
   0x1   :  { %10 = vsyncpa [#allocation5 + $0x1], 0 }
   0x2   :  { %11 = vsyncpa [#allocation6], 0 }
   0x3   :  { %13 = vsyncpa [#allocation6 + $0x1], 0  ;;  %s3140_s12 = smov 0   ;;  %s3142_s13 = smov 0  }
   0x4   :  { %s3144_s14 = smov 0   ;;  %s3146_s15 = smov 0  }
   0x5 LB: > { %s3161_s16 = sadd.s32 4294967295, %s3092_s15   ;;  %s2579_s17 = sadd.s32 4294967294, %s3092_s15   ;;  %s3092_s15 = sphi %s3146_s15, %s4395_s15   ;;  %s3088_s14 = sphi %s3144_s14, %s4394_s14   ;;  %s3084_s13 = sphi %s3142_s13, %s4393_s13   ;;  %s3080_s12 = sphi %s3140_s12, %s4392_s12  }
   0x6   : > { %s3165_s18 = sadd.s32 1, %s3092_s15   ;;  %s26_s19 = sadd.s32 1, %s3088_s14 }
   0x7   : > { %s23_s20 = ssub.s32 %s3092_s15, %s3165_s18  ;;  %p33_p0 = scmp.ne.s32.totalorder %s3088_s14, %s3084_s13 }
   0x8   : > { %p24_p1 = scmp.eq.s32.totalorder %s23_s20, 0  ;;  %p34_p2 = scmp.eq.s32.totalorder %s3092_s15, 0 }
   0x9   : > { %p39_p3 = scmp.ne.s32.totalorder %s3084_s13, %s3080_s12  ;;  %p40_p4 = scmp.eq.s32.totalorder %s3161_s16, 0 }
   0xa   : > { %s3177_s21 = scalar_select %p24_p1, %s3088_s14, %s26_s19  }
   0xb   : > { %p3179_p5 = por %p34_p2, %p33_p0  ;;  %p3183_p6 = por %p40_p4, %p39_p3 }
   0xc   : > { %p105_p7 = scmp.eq.s32.totalorder %s3161_s16, 1  ;;  %p111_p8 = scmp.eq.s32.totalorder %s2579_s17, 1 }
   0xd   : > { %p2933_p10 = scmp.lt.s32.totalorder %s3092_s15, 2  ;;  %s137_s26 = sand.u32 1, %s3088_s14  }
   0xe   : > { %p3190_p11 = por %p105_p7, %p33_p0  ;;  %p3194_p12 = por %p111_p8, %p39_p3 }
   0xf   : > { %s2854_s27 = sshll.u32 %s3092_s15, 7  ;;  %s2582_s28 = sshll.u32 %s137_s26, 7 }
  0x10   : > { %s147_s4 = scalar_lea.hbm %s4345_s0, %s2854_s27  ;;  %s141_s6 = scalar_lea.vmem [#allocation4], %s2582_s28 }
  0x11   : > { %s148_s5 = sshll.u32 %s147_s4, 4  ;;  %s150_s7 = sshll.u32 %s141_s6, 4  ;;  %s149_s5 = int_to_ptr.hbm [resolvable:$true] %s148_s5  ;;  %s151_s7 = int_to_ptr.vmem [resolvable:$true] %s150_s7 }
  0x12   : > { %p3205_p13 = pnand %p2933_p10, %p3179_p5  ;;  %p2586_p0 = scmp.ge.s32.totalorder %s3092_s15, 1 }
  0x13   : > { %p158_p1 = scmp.lt.s32.totalorder %s3092_s15, 3  ;;  %s138_s9 = scalar_lea.sflag [#allocation5], %s137_s26 }
  0x14   : > { %s2996_s10 = sshra.s32 %s149_s5, 4  ;;  %p3000_p3 = pneg %p3205_p13  ;;  %s2997_s10 = int_to_ptr.hbm [resolvable:$true] %s2996_s10 }
  0x15   : > { %s2998_s11 = scalar_lea.hbm %s2997_s10, 128  ;;  %s3003_s20 = scalar_lea.hbm %s4345_s0, 256 }
  0x16   : > { %p2999_p2 = scmp.ne.s32.totalorder %s2997_s10, %s2998_s11  ;;  %p3004_p5 = scmp.lt.s32.totalorder %s2997_s10, %s4345_s0 }
  0x17   : > { %p3005_p8 = scmp.lt.s32.totalorder %s3003_s20, %s2998_s11 }
  0x18   : > { %p3001_p4 = pnand %p3000_p3, %p2999_p2 }
  0x19   : > { %p3006_p10 = por %p3005_p8, %p3004_p5 }
  0x1a   : > { %p3002_p7 = pneg %p3001_p4 }
  0x1c   : > { %p3007_p9 = pnand %p3006_p10, %p3002_p7 }
  0x1e   : > { %3010 = shalt.err (!%p3007_p9)
}
  0x1f   : > { %s3094_s26 = smov 128   ;;  %s3095_s28 = smov 8  }
  0x20   : > { %2928 = dma.hbm_to_vmem [thread:$0]  (!%p3205_p13), %s149_s5, 2048, %s151_s7, %s138_s9, %s3094_s26, %s3094_s26, %s3095_s28  }
  0x21   : > { %p159_p2 = pnand %p2586_p0, %p158_p1 }
  0x22   : > { %s3226_s29 = sand.u32 (!%p159_p2), 1, %s3084_s13  }
  0x23   : > { %162 = sbr.rel (%p159_p2) target bundleno = 1406 (0x57e), region = 32  ;;  %s2587_s30 = sshll.u32 (!%p159_p2), %s3226_s29, 7 }
  0x24   : > { %s165_s4 = scalar_lea.sflag (!%p159_p2), [#allocation5], %s3226_s29  ;;  %s3232_s6 = scalar_lea.vmem (!%p159_p2), [#allocation4], %s2587_s30 }
  0x28   : > { %3071 = dma.done.wait (%p3183_p6), %s165_s4, 2048  }
  0x29   : > { %3073 = vsyncadd (%p3183_p6), %s165_s4, 4294965248  ;;  %vm277_vm0 = vcmask 1041409   ;;  %vm280_vm1 = vcmask 1042434   ;;  %vm283_vm2 = vcmask 1043459   ;;  %vm286_vm3 = vcmask 1044484   ;;  %s3096_s23 = smov 28  }
  0x2a   : > { %v220_v0 = vld [vmem:[%s3232_s6 + $0x40] sm:$0x1]  ;;  %v221_v1 = vld [vmem:[%s3232_s6 + $0x48] sm:$0x1]  ;;  %v222_v2 = vld [vmem:[%s3232_s6 + $0x50] sm:$0x1] }
  0x2b   : > { %vm289_vm4 = vcmask 1045509   ;;  %v223_v3 = vld [vmem:[%s3232_s6 + $0x58] sm:$0x1]  ;;  %v224_v4 = vld [vmem:[%s3232_s6 + $0x60] sm:$0x1]  ;;  %v236_v6 = vpack.c.bf16 %v220_v0, %v220_v0  ;;  %v237_v7 = vpack.c.bf16 %v221_v1, %v221_v1  ;;  %v238_v8 = vpack.c.bf16 %v222_v2, %v222_v2  ;;  %s3097_s5 = smov 80  }
  0x2c   : > { %v225_v5 = vld [vmem:[%s3232_s6 + $0x68] sm:$0x1]  ;;  %vm292_vm5 = vcmask 1046534   ;;  %v226_v9 = vld [vmem:[%s3232_s6 + $0x70] sm:$0x1]  ;;  %v239_v11 = vpack.c.bf16 %v223_v3, %v223_v3  ;;  %v240_v12 = vpack.c.bf16 %v224_v4, %v224_v4  ;;  %vm295_vm6 = vcmask 1047559  }
  0x2d   : > { %v227_v10 = vld [vmem:[%s3232_s6 + $0x78] sm:$0x1]  ;;  %v241_v13 = vpack.c.bf16 %v225_v5, %v225_v5  ;;  %v433_v14 = vld [vmem:[%s3232_s6 + $0x42] sm:$0x1]  ;;  %v242_v15 = vpack.c.bf16 %v226_v9, %v226_v9  ;;  %v268_v17 = vunpack.c.l.b16 %v236_v6  ;;  %v269_v18 = vunpack.c.l.b16 %v237_v7  ;;  %v434_v19 = vld [vmem:[%s3232_s6 + $0x4a] sm:$0x1] }
  0x2e   : > { %v243_v16 = vpack.c.bf16 %v227_v10, %v227_v10  ;;  %v270_v20 = vunpack.c.l.b16 %v238_v8  ;;  %v271_v21 = vunpack.c.l.b16 %v239_v11  ;;  %v272_v22 = vunpack.c.l.b16 %v240_v12  ;;  %v435_v24 = vld [vmem:[%s3232_s6 + $0x52] sm:$0x1]  ;;  %v436_v25 = vld [vmem:[%s3232_s6 + $0x5a] sm:$0x1]  ;;  %v437_v26 = vld [vmem:[%s3232_s6 + $0x62] sm:$0x1] }
  0x2f   : > { %v273_v23 = vunpack.c.l.b16 %v241_v13  ;;  %v274_v27 = vunpack.c.l.b16 %v242_v15  ;;  %v297_v29 = vrot.slane %v269_v18, 7  ;;  %v438_v30 = vld [vmem:[%s3232_s6 + $0x6a] sm:$0x1]  ;;  %v439_v31 = vld [vmem:[%s3232_s6 + $0x72] sm:$0x1]  ;;  %v449_v32 = vpack.c.bf16 %v433_v14, %v433_v14  ;;  %s3098_s7 = smov 54  }
  0x30   : > { %v275_v28 = vunpack.c.l.b16 %v243_v16  ;;  %v299_v33 = vrot.slane %v270_v20, 6  ;;  %v301_v34 = vrot.slane %v271_v21, 5  ;;  %v303_v35 = vrot.slane %v272_v22, 4  ;;  %v440_v37 = vld [vmem:[%s3232_s6 + $0x7a] sm:$0x1]  ;;  %s3099_s8 = smov 106  }
  0x31   : > { %v305_v36 = vrot.slane %v273_v23, 3  ;;  %v298_v38 = vsel %vm277_vm0, %v297_v29, %v268_v17  ;;  %v307_v39 = vrot.slane %v274_v27, 2  ;;  %v450_v41 = vpack.c.bf16 %v434_v19, %v434_v19  ;;  %v330_v58 = vld [vmem:[%s3232_s6 + $0x41] sm:$0x1]  ;;  %v331_v59 = vld [vmem:[%s3232_s6 + $0x49] sm:$0x1] }
  0x32   : > { %v309_v40 = vrot.slane %v275_v28, 1  ;;  %v300_v42 = vsel %vm280_vm1, %v299_v33, %v298_v38  ;;  %v451_v43 = vpack.c.bf16 %v435_v24, %v435_v24  ;;  %v452_v44 = vpack.c.bf16 %v436_v25, %v436_v25  ;;  %v332_v60 = vld [vmem:[%s3232_s6 + $0x51] sm:$0x1]  ;;  %v333_v1 = vld [vmem:[%s3232_s6 + $0x59] sm:$0x1]  ;;  %s3100_s9 = smov 56  }
  0x33   : > { %v453_v45 = vpack.c.bf16 %v437_v26, %v437_v26  ;;  %v302_v46 = vsel %vm283_vm2, %v301_v34, %v300_v42  ;;  %v454_v47 = vpack.c.bf16 %v438_v30, %v438_v30  ;;  %v455_v48 = vpack.c.bf16 %v439_v31, %v439_v31  ;;  %v334_v2 = vld [vmem:[%s3232_s6 + $0x61] sm:$0x1]  ;;  %v335_v7 = vld [vmem:[%s3232_s6 + $0x69] sm:$0x1]  ;;  %v336_v12 = vld [vmem:[%s3232_s6 + $0x71] sm:$0x1] }
  0x34   : > { %v456_v49 = vpack.c.bf16 %v440_v37, %v440_v37  ;;  %v304_v50 = vsel %vm286_vm3, %v303_v35, %v302_v46  ;;  %v481_v51 = vunpack.c.l.b16 %v449_v32  ;;  %v482_v52 = vunpack.c.l.b16 %v450_v41  ;;  %v337_v13 = vld [vmem:[%s3232_s6 + $0x79] sm:$0x1]  ;;  %v536_v30 = vld [vmem:[%s3232_s6 + $0x43] sm:$0x1]  ;;  %v537_v35 = vld [vmem:[%s3232_s6 + $0x4b] sm:$0x1] }
  0x35   : > { %v483_v53 = vunpack.c.l.b16 %v451_v43  ;;  %v306_v54 = vsel %vm289_vm4, %v305_v36, %v304_v50  ;;  %v484_v55 = vunpack.c.l.b16 %v452_v44  ;;  %v485_v56 = vunpack.c.l.b16 %v453_v45  ;;  %v538_v36 = vld [vmem:[%s3232_s6 + $0x53] sm:$0x1]  ;;  %v539_v37 = vld [vmem:[%s3232_s6 + $0x5b] sm:$0x1]  ;;  %v540_v42 = vld [vmem:[%s3232_s6 + $0x63] sm:$0x1] }
  0x36   : > { %v486_v57 = vunpack.c.l.b16 %v454_v47  ;;  %v308_v61 = vsel %vm292_vm5, %v307_v39, %v306_v54  ;;  %v487_v62 = vunpack.c.l.b16 %v455_v48  ;;  %v488_v63 = vunpack.c.l.b16 %v456_v49  ;;  %v541_v43 = vld [vmem:[%s3232_s6 + $0x6b] sm:$0x1]  ;;  %v542_v48 = vld [vmem:[%s3232_s6 + $0x73] sm:$0x1]  ;;  %s3101_s10 = smov 82   ;;  %s3102_s11 = smov 4  }
  0x37   : > { %v503_v0 = vrot.slane %v482_v52, 7  ;;  %v310_v3 = vsel %vm295_vm6, %v309_v40, %v308_v61  ;;  %v505_v4 = vrot.slane %v483_v53, 6  ;;  %v507_v5 = vrot.slane %v484_v55, 5  ;;  %v543_v53 = vld [vmem:[%s3232_s6 + $0x7b] sm:$0x1]  ;;  %s3103_s17 = smov 30  }
  0x38   : > { %v509_v6 = vrot.slane %v485_v56, 4  ;;  %v312_v8 = vpack.c.b16 %v310_v3, %v310_v3  ;;  %v511_v10 = vrot.slane %v486_v57, 3  ;;  %v513_v11 = vrot.slane %v487_v62, 2  ;;  %s3105_s19 = smov 74   ;;  %s3106_s20 = smov 75  }
  0x39   : > { %v504_v9 = vsel %vm277_vm0, %v503_v0, %v481_v51  ;;  %v515_v15 = vrot.slane %v488_v63, 1  ;;  %v346_v16 = vpack.c.bf16 %v330_v58, %v330_v58  ;;  %v347_v17 = vpack.c.bf16 %v331_v59, %v331_v59  ;;  %s3107_s22 = smov 76   ;;  %s3108_s27 = smov 101  }
  0x3a   : > { %v506_v14 = vsel %vm280_vm1, %v505_v4, %v504_v9  ;;  %315 = vrot.lane.b32.xlu0 %v312_v8, %s3096_s23  ;;  %v348_v19 = vpack.c.bf16 %v332_v60, %v332_v60  ;;  %v349_v20 = vpack.c.bf16 %v333_v1, %v333_v1  ;;  %v350_v21 = vpack.c.bf16 %v334_v2, %v334_v2  ;;  %s3109_s26 = smov 126   ;;  %s3110_s28 = smov 100  }
  0x3b   : > { %v508_v18 = vsel %vm283_vm2, %v507_v5, %v506_v14  ;;  %v351_v23 = vpack.c.bf16 %v335_v7, %v335_v7  ;;  %v352_v24 = vpack.c.bf16 %v336_v12, %v336_v12  ;;  %v353_v25 = vpack.c.bf16 %v337_v13, %v337_v13  ;;  %v847_v12 = vld [vmem:[%s3232_s6 + $0x56] sm:$0x1]  ;;  %v848_v13 = vld [vmem:[%s3232_s6 + $0x5e] sm:$0x1]  ;;  %s3111_s4 = smov 102  }
  0x3c   : > { %v510_v22 = vsel %vm286_vm3, %v509_v6, %v508_v18  ;;  %v378_v27 = vunpack.c.l.b16 %v346_v16  ;;  %v379_v28 = vunpack.c.l.b16 %v347_v17  ;;  %v380_v29 = vunpack.c.l.b16 %v348_v19  ;;  %v845_v6 = vld [vmem:[%s3232_s6 + $0x46] sm:$0x1]  ;;  %v850_v19 = vld [vmem:[%s3232_s6 + $0x6e] sm:$0x1] }
  0x3d   : > { %v512_v26 = vsel %vm289_vm4, %v511_v10, %v510_v22  ;;  %v381_v32 = vunpack.c.l.b16 %v349_v20  ;;  %v382_v33 = vunpack.c.l.b16 %v350_v21  ;;  %v383_v34 = vunpack.c.l.b16 %v351_v23  ;;  %v849_v18 = vld [vmem:[%s3232_s6 + $0x66] sm:$0x1] }
  0x3e   : > { %v514_v31 = vsel %vm292_vm5, %v513_v11, %v512_v26  ;;  %v384_v39 = vunpack.c.l.b16 %v352_v24  ;;  %v385_v40 = vunpack.c.l.b16 %v353_v25  ;;  %v400_v41 = vrot.slane %v379_v28, 7  ;;  %v846_v11 = vld [vmem:[%s3232_s6 + $0x4e] sm:$0x1]  ;;  %v851_v24 = vld [vmem:[%s3232_s6 + $0x76] sm:$0x1] }
  0x3f   : > { %v516_v38 = vsel %vm295_vm6, %v515_v15, %v514_v31  ;;  %v402_v45 = vrot.slane %v380_v29, 6  ;;  %v404_v46 = vrot.slane %v381_v32, 5  ;;  %v406_v47 = vrot.slane %v382_v33, 4  ;;  %v852_v28 = vld [vmem:[%s3232_s6 + $0x7e] sm:$0x1] }
  0x40   : > { %v518_v44 = vpack.c.b16 %v516_v38, %v516_v38  ;;  %v401_v49 = vsel %vm277_vm0, %v400_v41, %v378_v27  ;;  %v408_v50 = vrot.slane %v383_v34, 3  ;;  %v410_v51 = vrot.slane %v384_v39, 2 }
  0x41   : > { %v412_v52 = vrot.slane %v385_v40, 1  ;;  %v403_v54 = vsel %vm280_vm1, %v402_v45, %v401_v49  ;;  %v552_v55 = vpack.c.bf16 %v536_v30, %v536_v30  ;;  %v553_v56 = vpack.c.bf16 %v537_v35, %v537_v35 }
  0x42   : > { %521 = vrot.lane.b32.xlu1 %v518_v44, %s3097_s5  ;;  %v554_v57 = vpack.c.bf16 %v538_v36, %v538_v36  ;;  %v405_v58 = vsel %vm283_vm2, %v404_v46, %v403_v54  ;;  %v555_v59 = vpack.c.bf16 %v539_v37, %v539_v37  ;;  %v556_v60 = vpack.c.bf16 %v540_v42, %v540_v42  ;;  %v948_v46 = vld [vmem:[%s3232_s6 + $0x47] sm:$0x1] }
  0x43   : > { %v557_v61 = vpack.c.bf16 %v541_v43, %v541_v43  ;;  %v407_v62 = vsel %vm286_vm3, %v406_v47, %v405_v58  ;;  %v558_v63 = vpack.c.bf16 %v542_v48, %v542_v48  ;;  %v559_v0 = vpack.c.bf16 %v543_v53, %v543_v53  ;;  %v949_v47 = vld [vmem:[%s3232_s6 + $0x4f] sm:$0x1]  ;;  %v950_v48 = vld [vmem:[%s3232_s6 + $0x57] sm:$0x1]  ;;  %v951_v53 = vld [vmem:[%s3232_s6 + $0x5f] sm:$0x1] }
  0x44   : > { %v584_v1 = vunpack.c.l.b16 %v552_v55  ;;  %v409_v2 = vsel %vm289_vm4, %v408_v50, %v407_v62  ;;  %v585_v3 = vunpack.c.l.b16 %v553_v56  ;;  %v586_v4 = vunpack.c.l.b16 %v554_v57  ;;  %v952_v54 = vld [vmem:[%s3232_s6 + $0x67] sm:$0x1]  ;;  %v953_v55 = vld [vmem:[%s3232_s6 + $0x6f] sm:$0x1] }
  0x45   : > { %v587_v5 = vunpack.c.l.b16 %v555_v59  ;;  %v411_v7 = vsel %vm292_vm5, %v410_v51, %v409_v2  ;;  %v588_v8 = vunpack.c.l.b16 %v556_v60  ;;  %v589_v9 = vunpack.c.l.b16 %v557_v61  ;;  %v954_v60 = vld [vmem:[%s3232_s6 + $0x77] sm:$0x1] }
  0x46   : > { %v590_v10 = vunpack.c.l.b16 %v558_v63  ;;  %v413_v14 = vsel %vm295_vm6, %v412_v52, %v411_v7  ;;  %v591_v15 = vunpack.c.l.b16 %v559_v0  ;;  %v606_v16 = vrot.slane %v585_v3, 7 }
  0x47   : > { %v608_v17 = vrot.slane %v586_v4, 6  ;;  %v415_v20 = vpack.c.b16 %v413_v14, %v413_v14  ;;  %v610_v21 = vrot.slane %v587_v5, 5  ;;  %v612_v22 = vrot.slane %v588_v8, 4 }
  0x48   : > { %v614_v23 = vrot.slane %v589_v9, 3  ;;  %v607_v25 = vsel %vm277_vm0, %v606_v16, %v584_v1  ;;  %v616_v26 = vrot.slane %v590_v10, 2  ;;  %v618_v27 = vrot.slane %v591_v15, 1  ;;  %v955_v1 = vld [vmem:[%s3232_s6 + $0x7f] sm:$0x1] }
  0x49   : > { %v861_v29 = vpack.c.bf16 %v845_v6, %v845_v6  ;;  %418 = vrot.lane.b32.xlu0 %v415_v20, %s3098_s7  ;;  %v609_v30 = vsel %vm280_vm1, %v608_v17, %v607_v25  ;;  %v862_v31 = vpack.c.bf16 %v846_v11, %v846_v11  ;;  %v863_v32 = vpack.c.bf16 %v847_v12, %v847_v12 }
  0x4a   : > { %v864_v33 = vpack.c.bf16 %v848_v13, %v848_v13  ;;  %v611_v34 = vsel %vm283_vm2, %v610_v21, %v609_v30  ;;  %v865_v35 = vpack.c.bf16 %v849_v18, %v849_v18  ;;  %v866_v36 = vpack.c.bf16 %v850_v19, %v850_v19  ;;  %v326_v30 = vld [vmem:[%s3232_s6 + $0x21] sm:$0x1] }
  0x4b   : > { %v867_v37 = vpack.c.bf16 %v851_v24, %v851_v24  ;;  %v613_v38 = vsel %vm286_vm3, %v612_v22, %v611_v34  ;;  %v868_v39 = vpack.c.bf16 %v852_v28, %v852_v28  ;;  %v893_v40 = vunpack.c.l.b16 %v861_v29  ;;  %v322_v22 = vld [vmem:[%s3232_s6 + $0x1] sm:$0x1]  ;;  %v324_v24 = vld [vmem:[%s3232_s6 + $0x11] sm:$0x1]  ;;  %v325_v29 = vld [vmem:[%s3232_s6 + $0x19] sm:$0x1] }
  0x4c   : > { %v894_v41 = vunpack.c.l.b16 %v862_v31  ;;  %v615_v42 = vsel %vm289_vm4, %v614_v23, %v613_v38  ;;  %v895_v43 = vunpack.c.l.b16 %v863_v32  ;;  %v896_v44 = vunpack.c.l.b16 %v864_v33  ;;  %v323_v23 = vld [vmem:[%s3232_s6 + $0x9] sm:$0x1] }
  0x4d   : > { %v897_v45 = vunpack.c.l.b16 %v865_v35  ;;  %v617_v49 = vsel %vm292_vm5, %v616_v26, %v615_v42  ;;  %v898_v50 = vunpack.c.l.b16 %v866_v36  ;;  %v899_v51 = vunpack.c.l.b16 %v867_v37  ;;  %v327_v35 = vld [vmem:[%s3232_s6 + $0x29] sm:$0x1] }
  0x4e   : > { %v900_v52 = vunpack.c.l.b16 %v868_v39  ;;  %v619_v56 = vsel %vm295_vm6, %v618_v27, %v617_v49  ;;  %v915_v57 = vrot.slane %v894_v41, 7  ;;  %v917_v58 = vrot.slane %v895_v43, 6  ;;  %v329_v41 = vld [vmem:[%s3232_s6 + $0x39] sm:$0x1] }
  0x4f   : > { %v919_v59 = vrot.slane %v896_v44, 5  ;;  %v621_v61 = vpack.c.b16 %v619_v56, %v619_v56  ;;  %v921_v62 = vrot.slane %v897_v45, 4  ;;  %v923_v63 = vrot.slane %v898_v50, 3 }
  0x50   : > { %v925_v0 = vrot.slane %v899_v51, 2  ;;  %v916_v2 = vsel %vm277_vm0, %v915_v57, %v893_v40  ;;  %v927_v3 = vrot.slane %v900_v52, 1  ;;  %v964_v4 = vpack.c.bf16 %v948_v46, %v948_v46  ;;  %v328_v40 = vld [vmem:[%s3232_s6 + $0x31] sm:$0x1] }
  0x51   : > { %v965_v5 = vpack.c.bf16 %v949_v47, %v949_v47  ;;  %624 = vrot.lane.b32.xlu1 %v621_v61, %s3099_s8  ;;  %v918_v6 = vsel %vm280_vm1, %v917_v58, %v916_v2  ;;  %v966_v7 = vpack.c.bf16 %v950_v48, %v950_v48  ;;  %v967_v8 = vpack.c.bf16 %v951_v53, %v951_v53  ;;  %v639_v58 = vld [vmem:[%s3232_s6 + $0x44] sm:$0x1] }
  0x52   : > { %v968_v9 = vpack.c.bf16 %v952_v54, %v952_v54  ;;  %v920_v10 = vsel %vm283_vm2, %v919_v59, %v918_v6  ;;  %v969_v11 = vpack.c.bf16 %v953_v55, %v953_v55  ;;  %v970_v12 = vpack.c.bf16 %v954_v60, %v954_v60  ;;  %v643_v6 = vld [vmem:[%s3232_s6 + $0x64] sm:$0x1] }
  0x53   : > { %v971_v13 = vpack.c.bf16 %v955_v1, %v955_v1  ;;  %v922_v14 = vsel %vm286_vm3, %v921_v62, %v920_v10  ;;  %v996_v15 = vunpack.c.l.b16 %v964_v4  ;;  %v997_v16 = vunpack.c.l.b16 %v965_v5  ;;  %v642_v1 = vld [vmem:[%s3232_s6 + $0x5c] sm:$0x1] }
  0x54   : > { %v998_v17 = vunpack.c.l.b16 %v966_v7  ;;  %v924_v18 = vsel %vm289_vm4, %v923_v63, %v922_v14  ;;  %v999_v19 = vunpack.c.l.b16 %v967_v8  ;;  %v1000_v20 = vunpack.c.l.b16 %v968_v9  ;;  %v640_v63 = vld [vmem:[%s3232_s6 + $0x4c] sm:$0x1] }
  0x55   : > { %v1001_v21 = vunpack.c.l.b16 %v969_v11  ;;  %v926_v25 = vsel %vm292_vm5, %v925_v0, %v924_v18  ;;  %v1002_v26 = vunpack.c.l.b16 %v970_v12  ;;  %v1003_v27 = vunpack.c.l.b16 %v971_v13  ;;  %v641_v0 = vld [vmem:[%s3232_s6 + $0x54] sm:$0x1]  ;;  %v644_v7 = vld [vmem:[%s3232_s6 + $0x6c] sm:$0x1] }
  0x56   : > { %v1018_v28 = vrot.slane %v997_v16, 7  ;;  %v928_v31 = vsel %vm295_vm6, %v927_v3, %v926_v25  ;;  %v1020_v32 = vrot.slane %v998_v17, 6  ;;  %v1022_v33 = vrot.slane %v999_v19, 5  ;;  %v645_v12 = vld [vmem:[%s3232_s6 + $0x74] sm:$0x1] }
  0x57   : > { %v1024_v34 = vrot.slane %v1000_v20, 4  ;;  %v930_v36 = vpack.c.b16 %v928_v31, %v928_v31  ;;  %v1026_v38 = vrot.slane %v1001_v21, 3  ;;  %v1028_v39 = vrot.slane %v1002_v26, 2  ;;  %v646_v17 = vld [vmem:[%s3232_s6 + $0x7c] sm:$0x1] }
  0x58   : > { %v1019_v37 = vsel %vm277_vm0, %v1018_v28, %v996_v15  ;;  %v1030_v43 = vrot.slane %v1003_v27, 1  ;;  %v338_v44 = vpack.c.bf16 %v322_v22, %v322_v22  ;;  %v339_v45 = vpack.c.bf16 %v323_v23, %v323_v23 }
  0x59   : > { %v1021_v42 = vsel %vm280_vm1, %v1020_v32, %v1019_v37  ;;  %933 = vrot.lane.b32.xlu0 %v930_v36, %s3100_s9  ;;  %v340_v47 = vpack.c.bf16 %v324_v24, %v324_v24  ;;  %v341_v48 = vpack.c.bf16 %v325_v29, %v325_v29  ;;  %v342_v49 = vpack.c.bf16 %v326_v30, %v326_v30 }
  0x5a   : > { %v1023_v46 = vsel %vm283_vm2, %v1022_v33, %v1021_v42  ;;  %v343_v51 = vpack.c.bf16 %v327_v35, %v327_v35  ;;  %v344_v52 = vpack.c.bf16 %v328_v40, %v328_v40  ;;  %v345_v53 = vpack.c.bf16 %v329_v41, %v329_v41  ;;  %v427_v40 = vld [vmem:[%s3232_s6 + $0x12] sm:$0x1]  ;;  %v428_v41 = vld [vmem:[%s3232_s6 + $0x1a] sm:$0x1] }
  0x5b   : > { %v1025_v50 = vsel %vm286_vm3, %v1024_v34, %v1023_v46  ;;  %v370_v55 = vunpack.c.l.b16 %v338_v44  ;;  %v371_v56 = vunpack.c.l.b16 %v339_v45  ;;  %v372_v57 = vunpack.c.l.b16 %v340_v47  ;;  %v425_v34 = vld [vmem:[%s3232_s6 + $0x2] sm:$0x1]  ;;  %v430_v47 = vld [vmem:[%s3232_s6 + $0x2a] sm:$0x1] }
  0x5c   : > { %v1027_v54 = vsel %vm289_vm4, %v1026_v38, %v1025_v50  ;;  %v373_v60 = vunpack.c.l.b16 %v341_v48  ;;  %v374_v61 = vunpack.c.l.b16 %v342_v49  ;;  %v375_v62 = vunpack.c.l.b16 %v343_v51  ;;  %v429_v46 = vld [vmem:[%s3232_s6 + $0x22] sm:$0x1] }
  0x5d   : > { %v1029_v59 = vsel %vm292_vm5, %v1028_v39, %v1027_v54  ;;  %v376_v3 = vunpack.c.l.b16 %v344_v52  ;;  %v377_v4 = vunpack.c.l.b16 %v345_v53  ;;  %v386_v5 = vrot.slane %v371_v56, 7  ;;  %v426_v39 = vld [vmem:[%s3232_s6 + $0xa] sm:$0x1]  ;;  %v431_v52 = vld [vmem:[%s3232_s6 + $0x32] sm:$0x1] }
  0x5e   : > { %v1031_v2 = vsel %vm295_vm6, %v1030_v43, %v1029_v59  ;;  %v388_v9 = vrot.slane %v372_v57, 6  ;;  %v390_v10 = vrot.slane %v373_v60, 5  ;;  %v392_v11 = vrot.slane %v374_v61, 4  ;;  %v432_v56 = vld [vmem:[%s3232_s6 + $0x3a] sm:$0x1] }
  0x5f   : > { %v1033_v8 = vpack.c.b16 %v1031_v2, %v1031_v2  ;;  %v387_v13 = vsel %vm277_vm0, %v386_v5, %v370_v55  ;;  %v394_v14 = vrot.slane %v375_v62, 3  ;;  %v396_v15 = vrot.slane %v376_v3, 2 }
  0x60   : > { %v398_v16 = vrot.slane %v377_v4, 1  ;;  %v389_v18 = vsel %vm280_vm1, %v388_v9, %v387_v13  ;;  %v655_v19 = vpack.c.bf16 %v639_v58, %v639_v58  ;;  %v656_v20 = vpack.c.bf16 %v640_v63, %v640_v63 }
  0x61   : > { %1036 = vrot.lane.b32.xlu1 %v1033_v8, %s3101_s10  ;;  %v657_v21 = vpack.c.bf16 %v641_v0, %v641_v0  ;;  %v391_v22 = vsel %vm283_vm2, %v390_v10, %v389_v18  ;;  %v658_v23 = vpack.c.bf16 %v642_v1, %v642_v1  ;;  %v659_v24 = vpack.c.bf16 %v643_v6, %v643_v6  ;;  %v631_v10 = vld [vmem:[%s3232_s6 + $0x4] sm:$0x1] }
  0x62   : > { %v660_v25 = vpack.c.bf16 %v644_v7, %v644_v7  ;;  %v393_v26 = vsel %vm286_vm3, %v392_v11, %v391_v22  ;;  %v661_v27 = vpack.c.bf16 %v645_v12, %v645_v12  ;;  %v662_v28 = vpack.c.bf16 %v646_v17, %v646_v17  ;;  %v632_v11 = vld [vmem:[%s3232_s6 + $0xc] sm:$0x1]  ;;  %v633_v12 = vld [vmem:[%s3232_s6 + $0x14] sm:$0x1]  ;;  %v634_v17 = vld [vmem:[%s3232_s6 + $0x1c] sm:$0x1] }
  0x63   : > { %v687_v29 = vunpack.c.l.b16 %v655_v19  ;;  %v395_v30 = vsel %vm289_vm4, %v394_v14, %v393_v26  ;;  %v688_v31 = vunpack.c.l.b16 %v656_v20  ;;  %v689_v32 = vunpack.c.l.b16 %v657_v21  ;;  %v635_v18 = vld [vmem:[%s3232_s6 + $0x24] sm:$0x1]  ;;  %v636_v19 = vld [vmem:[%s3232_s6 + $0x2c] sm:$0x1] }
  0x64   : > { %v690_v33 = vunpack.c.l.b16 %v658_v23  ;;  %v397_v35 = vsel %vm292_vm5, %v396_v15, %v395_v30  ;;  %v691_v36 = vunpack.c.l.b16 %v659_v24  ;;  %v692_v37 = vunpack.c.l.b16 %v660_v25  ;;  %v637_v24 = vld [vmem:[%s3232_s6 + $0x34] sm:$0x1] }
  0x65   : > { %v693_v38 = vunpack.c.l.b16 %v661_v27  ;;  %v399_v42 = vsel %vm295_vm6, %v398_v16, %v397_v35  ;;  %v694_v43 = vunpack.c.l.b16 %v662_v28  ;;  %v709_v44 = vrot.slane %v688_v31, 7 }
  0x66   : > { %v711_v45 = vrot.slane %v689_v32, 6  ;;  %v414_v48 = vpack.c.b16 %v399_v42, %v399_v42  ;;  %v713_v49 = vrot.slane %v690_v33, 5  ;;  %v715_v50 = vrot.slane %v691_v36, 4 }
  0x67   : > { %v717_v51 = vrot.slane %v692_v37, 3  ;;  %v710_v53 = vsel %vm277_vm0, %v709_v44, %v687_v29  ;;  %v719_v54 = vrot.slane %v693_v38, 2  ;;  %v721_v55 = vrot.slane %v694_v43, 1  ;;  %v638_v29 = vld [vmem:[%s3232_s6 + $0x3c] sm:$0x1] }
  0x68   : > { %v441_v57 = vpack.c.bf16 %v425_v34, %v425_v34  ;;  %416 = vrot.lane.b32.xlu0 %v414_v48, %s3098_s7  ;;  %v712_v58 = vsel %vm280_vm1, %v711_v45, %v710_v53  ;;  %v442_v59 = vpack.c.bf16 %v426_v39, %v426_v39  ;;  %v443_v60 = vpack.c.bf16 %v427_v40, %v427_v40 }
  0x69   : > { %v444_v61 = vpack.c.bf16 %v428_v41, %v428_v41  ;;  %v714_v62 = vsel %vm283_vm2, %v713_v49, %v712_v58  ;;  %v445_v63 = vpack.c.bf16 %v429_v46, %v429_v46  ;;  %v446_v0 = vpack.c.bf16 %v430_v47, %v430_v47  ;;  %v746_v58 = vld [vmem:[%s3232_s6 + $0x65] sm:$0x1] }
  0x6a   : > { %v447_v1 = vpack.c.bf16 %v431_v52, %v431_v52  ;;  %v716_v2 = vsel %vm286_vm3, %v715_v50, %v714_v62  ;;  %v448_v3 = vpack.c.bf16 %v432_v56, %v432_v56  ;;  %v473_v4 = vunpack.c.l.b16 %v441_v57  ;;  %v742_v50 = vld [vmem:[%s3232_s6 + $0x45] sm:$0x1]  ;;  %v744_v52 = vld [vmem:[%s3232_s6 + $0x55] sm:$0x1]  ;;  %v745_v57 = vld [vmem:[%s3232_s6 + $0x5d] sm:$0x1] }
  0x6b   : > { %v474_v5 = vunpack.c.l.b16 %v442_v59  ;;  %v718_v6 = vsel %vm289_vm4, %v717_v51, %v716_v2  ;;  %v475_v7 = vunpack.c.l.b16 %v443_v60  ;;  %v476_v8 = vunpack.c.l.b16 %v444_v61  ;;  %v743_v51 = vld [vmem:[%s3232_s6 + $0x4d] sm:$0x1] }
  0x6c   : > { %v477_v9 = vunpack.c.l.b16 %v445_v63  ;;  %v720_v13 = vsel %vm292_vm5, %v719_v54, %v718_v6  ;;  %v478_v14 = vunpack.c.l.b16 %v446_v0  ;;  %v479_v15 = vunpack.c.l.b16 %v447_v1  ;;  %v747_v63 = vld [vmem:[%s3232_s6 + $0x6d] sm:$0x1] }
  0x6d   : > { %v480_v16 = vunpack.c.l.b16 %v448_v3  ;;  %v722_v20 = vsel %vm295_vm6, %v721_v55, %v720_v13  ;;  %v489_v21 = vrot.slane %v474_v5, 7  ;;  %v491_v22 = vrot.slane %v475_v7, 6  ;;  %v749_v5 = vld [vmem:[%s3232_s6 + $0x7d] sm:$0x1] }
  0x6e   : > { %v493_v23 = vrot.slane %v476_v8, 5  ;;  %v724_v25 = vpack.c.b16 %v722_v20, %v722_v20  ;;  %v495_v26 = vrot.slane %v477_v9, 4  ;;  %v497_v27 = vrot.slane %v478_v14, 3 }
  0x6f   : > { %v499_v28 = vrot.slane %v479_v15, 2  ;;  %v490_v30 = vsel %vm277_vm0, %v489_v21, %v473_v4  ;;  %v501_v31 = vrot.slane %v480_v16, 1  ;;  %v647_v32 = vpack.c.bf16 %v631_v10, %v631_v10  ;;  %v748_v4 = vld [vmem:[%s3232_s6 + $0x75] sm:$0x1] }
  0x70   : > { %v648_v33 = vpack.c.bf16 %v632_v11, %v632_v11  ;;  %727 = vrot.lane.b32.xlu2 %v724_v25, %s3102_s11  ;;  %v492_v34 = vsel %vm280_vm1, %v491_v22, %v490_v30  ;;  %v649_v35 = vpack.c.bf16 %v633_v12, %v633_v12  ;;  %v650_v36 = vpack.c.bf16 %v634_v17, %v634_v17  ;;  %v735_v22 = vld [vmem:[%s3232_s6 + $0xd] sm:$0x1] }
  0x71   : > { %v651_v37 = vpack.c.bf16 %v635_v18, %v635_v18  ;;  %v494_v38 = vsel %vm283_vm2, %v493_v23, %v492_v34  ;;  %v652_v39 = vpack.c.bf16 %v636_v19, %v636_v19  ;;  %v653_v40 = vpack.c.bf16 %v637_v24, %v637_v24  ;;  %v738_v34 = vld [vmem:[%s3232_s6 + $0x25] sm:$0x1] }
  0x72   : > { %v654_v41 = vpack.c.bf16 %v638_v29, %v638_v29  ;;  %v496_v42 = vsel %vm286_vm3, %v495_v26, %v494_v38  ;;  %v679_v43 = vunpack.c.l.b16 %v647_v32  ;;  %v680_v44 = vunpack.c.l.b16 %v648_v33  ;;  %v737_v29 = vld [vmem:[%s3232_s6 + $0x1d] sm:$0x1] }
  0x73   : > { %v681_v45 = vunpack.c.l.b16 %v649_v35  ;;  %v498_v46 = vsel %vm289_vm4, %v497_v27, %v496_v42  ;;  %v682_v47 = vunpack.c.l.b16 %v650_v36  ;;  %v683_v48 = vunpack.c.l.b16 %v651_v37  ;;  %v734_v27 = vld [vmem:[%s3232_s6 + $0x5] sm:$0x1]  ;;  %v739_v35 = vld [vmem:[%s3232_s6 + $0x2d] sm:$0x1] }
  0x74   : > { %v684_v49 = vunpack.c.l.b16 %v652_v39  ;;  %v500_v53 = vsel %vm292_vm5, %v499_v28, %v498_v46  ;;  %v685_v54 = vunpack.c.l.b16 %v653_v40  ;;  %v686_v55 = vunpack.c.l.b16 %v654_v41  ;;  %v736_v28 = vld [vmem:[%s3232_s6 + $0x15] sm:$0x1] }
  0x75   : > { %v695_v56 = vrot.slane %v680_v44, 7  ;;  %v502_v59 = vsel %vm295_vm6, %v501_v31, %v500_v53  ;;  %v697_v60 = vrot.slane %v681_v45, 6  ;;  %v699_v61 = vrot.slane %v682_v47, 5  ;;  %v740_v40 = vld [vmem:[%s3232_s6 + $0x35] sm:$0x1] }
  0x76   : > { %v701_v62 = vrot.slane %v683_v48, 4  ;;  %v517_v0 = vpack.c.b16 %v502_v59, %v502_v59  ;;  %v703_v2 = vrot.slane %v684_v49, 3  ;;  %v705_v3 = vrot.slane %v685_v54, 2  ;;  %v741_v45 = vld [vmem:[%s3232_s6 + $0x3d] sm:$0x1] }
  0x77   : > { %v696_v1 = vsel %vm277_vm0, %v695_v56, %v679_v43  ;;  %v707_v7 = vrot.slane %v686_v55, 1  ;;  %v758_v8 = vpack.c.bf16 %v742_v50, %v742_v50  ;;  %v759_v9 = vpack.c.bf16 %v743_v51, %v743_v51 }
  0x78   : > { %v698_v6 = vsel %vm280_vm1, %v697_v60, %v696_v1  ;;  %519 = vrot.lane.b32.xlu1 %v517_v0, %s3097_s5  ;;  %v760_v11 = vpack.c.bf16 %v744_v52, %v744_v52  ;;  %v761_v12 = vpack.c.bf16 %v745_v57, %v745_v57  ;;  %v762_v13 = vpack.c.bf16 %v746_v58, %v746_v58  ;;  %s3116_s5 = smov 50  }
  0x79   : > { %v700_v10 = vsel %vm283_vm2, %v699_v61, %v698_v6  ;;  %v763_v15 = vpack.c.bf16 %v747_v63, %v747_v63  ;;  %v764_v16 = vpack.c.bf16 %v748_v4, %v748_v4  ;;  %v765_v17 = vpack.c.bf16 %v749_v5, %v749_v5  ;;  %v942_v4 = vld [vmem:[%s3232_s6 + $0x17] sm:$0x1]  ;;  %v943_v5 = vld [vmem:[%s3232_s6 + $0x1f] sm:$0x1] }
  0x7a   : > { %v702_v14 = vsel %vm286_vm3, %v701_v62, %v700_v10  ;;  %v790_v19 = vunpack.c.l.b16 %v758_v8  ;;  %v791_v20 = vunpack.c.l.b16 %v759_v9  ;;  %v792_v21 = vunpack.c.l.b16 %v760_v11  ;;  %v941_v62 = vld [vmem:[%s3232_s6 + $0xf] sm:$0x1]  ;;  %v944_v10 = vld [vmem:[%s3232_s6 + $0x27] sm:$0x1] }
  0x7b   : > { %v704_v18 = vsel %vm289_vm4, %v703_v2, %v702_v14  ;;  %v793_v24 = vunpack.c.l.b16 %v761_v12  ;;  %v794_v25 = vunpack.c.l.b16 %v762_v13  ;;  %v795_v26 = vunpack.c.l.b16 %v763_v15  ;;  %v945_v11 = vld [vmem:[%s3232_s6 + $0x2f] sm:$0x1] }
  0x7c   : > { %v706_v23 = vsel %vm292_vm5, %v705_v3, %v704_v18  ;;  %v796_v31 = vunpack.c.l.b16 %v764_v16  ;;  %v797_v32 = vunpack.c.l.b16 %v765_v17  ;;  %v812_v33 = vrot.slane %v791_v20, 7  ;;  %v940_v3 = vld [vmem:[%s3232_s6 + $0x7] sm:$0x1]  ;;  %v946_v16 = vld [vmem:[%s3232_s6 + $0x37] sm:$0x1] }
  0x7d   : > { %v708_v30 = vsel %vm295_vm6, %v707_v7, %v706_v23  ;;  %v814_v37 = vrot.slane %v792_v21, 6  ;;  %v816_v38 = vrot.slane %v793_v24, 5  ;;  %v818_v39 = vrot.slane %v794_v25, 4  ;;  %v947_v20 = vld [vmem:[%s3232_s6 + $0x3f] sm:$0x1] }
  0x7e   : > { %v723_v36 = vpack.c.b16 %v708_v30, %v708_v30  ;;  %v813_v41 = vsel %vm277_vm0, %v812_v33, %v790_v19  ;;  %v820_v42 = vrot.slane %v795_v26, 3  ;;  %v822_v43 = vrot.slane %v796_v31, 2 }
  0x7f   : > { %v824_v44 = vrot.slane %v797_v32, 1  ;;  %v815_v46 = vsel %vm280_vm1, %v814_v37, %v813_v41  ;;  %v750_v47 = vpack.c.bf16 %v734_v27, %v734_v27  ;;  %v751_v48 = vpack.c.bf16 %v735_v22, %v735_v22 }
  0x80   : > { %725 = vrot.lane.b32.xlu0 %v723_v36, %s3102_s11  ;;  %v752_v49 = vpack.c.bf16 %v736_v28, %v736_v28  ;;  %v817_v50 = vsel %vm283_vm2, %v816_v38, %v815_v46  ;;  %v753_v51 = vpack.c.bf16 %v737_v29, %v737_v29  ;;  %v754_v52 = vpack.c.bf16 %v738_v34, %v738_v34  ;;  %v212_v38 = vld [vmem:[%s3232_s6] sm:$0x1]  ;;  %s3113_s11 = smov 124  }
  0x81   : > { %v755_v53 = vpack.c.bf16 %v739_v35, %v739_v35  ;;  %v819_v54 = vsel %vm286_vm3, %v818_v39, %v817_v50  ;;  %v756_v55 = vpack.c.bf16 %v740_v40, %v740_v40  ;;  %v757_v56 = vpack.c.bf16 %v741_v45, %v741_v45  ;;  %v213_v39 = vld [vmem:[%s3232_s6 + $0x8] sm:$0x1]  ;;  %v214_v40 = vld [vmem:[%s3232_s6 + $0x10] sm:$0x1]  ;;  %v215_v45 = vld [vmem:[%s3232_s6 + $0x18] sm:$0x1] }
  0x82   : > { %v782_v57 = vunpack.c.l.b16 %v750_v47  ;;  %v821_v58 = vsel %vm289_vm4, %v820_v42, %v819_v54  ;;  %v783_v59 = vunpack.c.l.b16 %v751_v48  ;;  %v784_v60 = vunpack.c.l.b16 %v752_v49  ;;  %v216_v46 = vld [vmem:[%s3232_s6 + $0x20] sm:$0x1]  ;;  %v217_v47 = vld [vmem:[%s3232_s6 + $0x28] sm:$0x1] }
  0x83   : > { %v785_v61 = vunpack.c.l.b16 %v753_v51  ;;  %v823_v63 = vsel %vm292_vm5, %v822_v43, %v821_v58  ;;  %v786_v0 = vunpack.c.l.b16 %v754_v52  ;;  %v787_v1 = vunpack.c.l.b16 %v755_v53  ;;  %v218_v52 = vld [vmem:[%s3232_s6 + $0x30] sm:$0x1] }
  0x84   : > { %v788_v2 = vunpack.c.l.b16 %v756_v55  ;;  %v825_v6 = vsel %vm295_vm6, %v824_v44, %v823_v63  ;;  %v789_v7 = vunpack.c.l.b16 %v757_v56  ;;  %v798_v8 = vrot.slane %v783_v59, 7 }
  0x85   : > { %v800_v9 = vrot.slane %v784_v60, 6  ;;  %v827_v12 = vpack.c.b16 %v825_v6, %v825_v6  ;;  %v802_v13 = vrot.slane %v785_v61, 5  ;;  %v804_v14 = vrot.slane %v786_v0, 4 }
  0x86   : > { %v806_v15 = vrot.slane %v787_v1, 3  ;;  %v799_v17 = vsel %vm277_vm0, %v798_v8, %v782_v57  ;;  %v808_v18 = vrot.slane %v788_v2, 2  ;;  %v810_v19 = vrot.slane %v789_v7, 1  ;;  %v219_v57 = vld [vmem:[%s3232_s6 + $0x38] sm:$0x1] }
  0x87   : > { %v956_v21 = vpack.c.bf16 %v940_v3, %v940_v3  ;;  %830 = vrot.lane.b32.xlu2 %v827_v12, %s3103_s17  ;;  %v801_v22 = vsel %vm280_vm1, %v800_v9, %v799_v17  ;;  %v957_v23 = vpack.c.bf16 %v941_v62, %v941_v62  ;;  %v958_v24 = vpack.c.bf16 %v942_v4, %v942_v4 }
  0x88   : > { %v959_v25 = vpack.c.bf16 %v943_v5, %v943_v5  ;;  %v803_v26 = vsel %vm283_vm2, %v802_v13, %v801_v22  ;;  %v960_v27 = vpack.c.bf16 %v944_v10, %v944_v10  ;;  %v961_v28 = vpack.c.bf16 %v945_v11, %v945_v11  ;;  %v532_v22 = vld [vmem:[%s3232_s6 + $0x23] sm:$0x1] }
  0x89   : > { %v962_v29 = vpack.c.bf16 %v946_v16, %v946_v16  ;;  %v805_v30 = vsel %vm286_vm3, %v804_v14, %v803_v26  ;;  %v963_v31 = vpack.c.bf16 %v947_v20, %v947_v20  ;;  %v988_v32 = vunpack.c.l.b16 %v956_v21  ;;  %v528_v14 = vld [vmem:[%s3232_s6 + $0x3] sm:$0x1]  ;;  %v530_v16 = vld [vmem:[%s3232_s6 + $0x13] sm:$0x1]  ;;  %v531_v21 = vld [vmem:[%s3232_s6 + $0x1b] sm:$0x1] }
  0x8a   : > { %v989_v33 = vunpack.c.l.b16 %v957_v23  ;;  %v807_v34 = vsel %vm289_vm4, %v806_v15, %v805_v30  ;;  %v990_v35 = vunpack.c.l.b16 %v958_v24  ;;  %v991_v36 = vunpack.c.l.b16 %v959_v25  ;;  %v529_v15 = vld [vmem:[%s3232_s6 + $0xb] sm:$0x1] }
  0x8b   : > { %v992_v37 = vunpack.c.l.b16 %v960_v27  ;;  %v809_v41 = vsel %vm292_vm5, %v808_v18, %v807_v34  ;;  %v993_v42 = vunpack.c.l.b16 %v961_v28  ;;  %v994_v43 = vunpack.c.l.b16 %v962_v29  ;;  %v533_v27 = vld [vmem:[%s3232_s6 + $0x2b] sm:$0x1] }
  0x8c   : > { %v995_v44 = vunpack.c.l.b16 %v963_v31  ;;  %v811_v48 = vsel %vm295_vm6, %v810_v19, %v809_v41  ;;  %v1004_v49 = vrot.slane %v989_v33, 7  ;;  %v1006_v50 = vrot.slane %v990_v35, 6  ;;  %v535_v33 = vld [vmem:[%s3232_s6 + $0x3b] sm:$0x1] }
  0x8d   : > { %v1008_v51 = vrot.slane %v991_v36, 5  ;;  %v826_v53 = vpack.c.b16 %v811_v48, %v811_v48  ;;  %v1010_v54 = vrot.slane %v992_v37, 4  ;;  %v1012_v55 = vrot.slane %v993_v42, 3 }
  0x8e   : > { %v1014_v56 = vrot.slane %v994_v43, 2  ;;  %v1005_v58 = vsel %vm277_vm0, %v1004_v49, %v988_v32  ;;  %v1016_v59 = vrot.slane %v995_v44, 1  ;;  %v228_v60 = vpack.c.bf16 %v212_v38, %v212_v38  ;;  %v534_v32 = vld [vmem:[%s3232_s6 + $0x33] sm:$0x1] }
  0x8f   : > { %v229_v61 = vpack.c.bf16 %v213_v39, %v213_v39  ;;  %828 = vrot.lane.b32.xlu1 %v826_v53, %s3103_s17  ;;  %v1007_v62 = vsel %vm280_vm1, %v1006_v50, %v1005_v58  ;;  %v230_v63 = vpack.c.bf16 %v214_v40, %v214_v40  ;;  %v231_v0 = vpack.c.bf16 %v215_v45, %v215_v45  ;;  %v838_v50 = vld [vmem:[%s3232_s6 + $0xe] sm:$0x1] }
  0x90   : > { %v232_v1 = vpack.c.bf16 %v216_v46, %v216_v46  ;;  %v1009_v2 = vsel %vm283_vm2, %v1008_v51, %v1007_v62  ;;  %v233_v3 = vpack.c.bf16 %v217_v47, %v217_v47  ;;  %v234_v4 = vpack.c.bf16 %v218_v52, %v218_v52  ;;  %v841_v62 = vld [vmem:[%s3232_s6 + $0x26] sm:$0x1] }
  0x91   : > { %v235_v5 = vpack.c.bf16 %v219_v57, %v219_v57  ;;  %v1011_v6 = vsel %vm286_vm3, %v1010_v54, %v1009_v2  ;;  %v260_v7 = vunpack.c.l.b16 %v228_v60  ;;  %v261_v8 = vunpack.c.l.b16 %v229_v61  ;;  %v840_v57 = vld [vmem:[%s3232_s6 + $0x1e] sm:$0x1] }
  0x92   : > { %v262_v9 = vunpack.c.l.b16 %v230_v63  ;;  %v1013_v10 = vsel %vm289_vm4, %v1012_v55, %v1011_v6  ;;  %v263_v11 = vunpack.c.l.b16 %v231_v0  ;;  %v264_v12 = vunpack.c.l.b16 %v232_v1  ;;  %v837_v55 = vld [vmem:[%s3232_s6 + $0x6] sm:$0x1]  ;;  %v842_v63 = vld [vmem:[%s3232_s6 + $0x2e] sm:$0x1] }
  0x93   : > { %v265_v13 = vunpack.c.l.b16 %v233_v3  ;;  %v1015_v17 = vsel %vm292_vm5, %v1014_v56, %v1013_v10  ;;  %v266_v18 = vunpack.c.l.b16 %v234_v4  ;;  %v267_v19 = vunpack.c.l.b16 %v235_v5  ;;  %v839_v56 = vld [vmem:[%s3232_s6 + $0x16] sm:$0x1] }
  0x94   : > { %v276_v20 = vrot.slane %v261_v8, 7  ;;  %v1017_v23 = vsel %vm295_vm6, %v1016_v59, %v1015_v17  ;;  %v279_v24 = vrot.slane %v262_v9, 6  ;;  %v282_v25 = vrot.slane %v263_v11, 5  ;;  %v843_v4 = vld [vmem:[%s3232_s6 + $0x36] sm:$0x1] }
  0x95   : > { %v285_v26 = vrot.slane %v264_v12, 4  ;;  %v1032_v28 = vpack.c.b16 %v1017_v23, %v1017_v23  ;;  %v288_v30 = vrot.slane %v265_v13, 3  ;;  %v291_v31 = vrot.slane %v266_v18, 2  ;;  %v844_v9 = vld [vmem:[%s3232_s6 + $0x3e] sm:$0x1]  ;;  %s3112_s6 = smov 127  }
  0x96   : > { %v278_v29 = vsel %vm277_vm0, %v276_v20, %v260_v7  ;;  %v294_v35 = vrot.slane %v267_v19, 1  ;;  %v544_v36 = vpack.c.bf16 %v528_v14, %v528_v14  ;;  %v545_v37 = vpack.c.bf16 %v529_v15, %v529_v15 }
  0x97   : > { %v281_v34 = vsel %vm280_vm1, %v279_v24, %v278_v29  ;;  %1034 = vrot.lane.b32.xlu0 %v1032_v28, %s3101_s10  ;;  %v546_v39 = vpack.c.bf16 %v530_v16, %v530_v16  ;;  %v547_v40 = vpack.c.bf16 %v531_v21, %v531_v21  ;;  %v548_v41 = vpack.c.bf16 %v532_v22, %v532_v22 }
  0x98   : > { %v284_v38 = vsel %vm283_vm2, %v282_v25, %v281_v34  ;;  %v549_v43 = vpack.c.bf16 %v533_v27, %v533_v27  ;;  %v550_v44 = vpack.c.bf16 %v534_v32, %v534_v32  ;;  %v551_v45 = vpack.c.bf16 %v535_v33, %v535_v33 }
  0x99   : > { %v287_v42 = vsel %vm286_vm3, %v285_v26, %v284_v38  ;;  %v576_v47 = vunpack.c.l.b16 %v544_v36  ;;  %v577_v48 = vunpack.c.l.b16 %v545_v37  ;;  %v578_v49 = vunpack.c.l.b16 %v546_v39 }
  0x9a   : > { %v290_v46 = vsel %vm289_vm4, %v288_v30, %v287_v42  ;;  %v579_v52 = vunpack.c.l.b16 %v547_v40  ;;  %v580_v53 = vunpack.c.l.b16 %v548_v41  ;;  %v581_v54 = vunpack.c.l.b16 %v549_v43 }
  0x9b   : > { %v293_v51 = vsel %vm292_vm5, %v291_v31, %v290_v46  ;;  %v582_v59 = vunpack.c.l.b16 %v550_v44  ;;  %v583_v60 = vunpack.c.l.b16 %v551_v45  ;;  %v592_v61 = vrot.slane %v577_v48, 7 }
  0x9c   : > { %v296_v58 = vsel %vm295_vm6, %v294_v35, %v293_v51  ;;  %v594_v1 = vrot.slane %v578_v49, 6  ;;  %v596_v2 = vrot.slane %v579_v52, 5  ;;  %v598_v3 = vrot.slane %v580_v53, 4 }
  0x9d   : > { %v311_v0 = vpack.c.b16 %v296_v58, %v296_v58  ;;  %v593_v5 = vsel %vm277_vm0, %v592_v61, %v576_v47  ;;  %v600_v6 = vrot.slane %v581_v54, 3  ;;  %v602_v7 = vrot.slane %v582_v59, 2 }
  0x9e   : > { %v604_v8 = vrot.slane %v583_v60, 1  ;;  %v595_v10 = vsel %vm280_vm1, %v594_v1, %v593_v5  ;;  %v853_v11 = vpack.c.bf16 %v837_v55, %v837_v55  ;;  %v854_v12 = vpack.c.bf16 %v838_v50, %v838_v50 }
  0x9f   : > { %313 = vrot.lane.b32.xlu2 %v311_v0, %s3096_s23  ;;  %v855_v13 = vpack.c.bf16 %v839_v56, %v839_v56  ;;  %v597_v14 = vsel %vm283_vm2, %v596_v2, %v595_v10  ;;  %v856_v15 = vpack.c.bf16 %v840_v57, %v840_v57  ;;  %v857_v16 = vpack.c.bf16 %v841_v62, %v841_v62  ;;  %s3834_s23 = scalar_lea.vmem [#allocation7], %s2587_s30  ;;  %s3117_s30 = smov 24  }
  0xa0   : > { %v858_v17 = vpack.c.bf16 %v842_v63, %v842_v63  ;;  %v599_v18 = vsel %vm286_vm3, %v598_v3, %v597_v14  ;;  %v859_v19 = vpack.c.bf16 %v843_v4, %v843_v4  ;;  %v860_v20 = vpack.c.bf16 %v844_v9, %v844_v9 }
  0xa1   : > { %v885_v21 = vunpack.c.l.b16 %v853_v11  ;;  %v601_v22 = vsel %vm289_vm4, %v600_v6, %v599_v18  ;;  %v886_v23 = vunpack.c.l.b16 %v854_v12  ;;  %v887_v24 = vunpack.c.l.b16 %v855_v13 }
  0xa2   : > { %v888_v25 = vunpack.c.l.b16 %v856_v15  ;;  %v603_v26 = vsel %vm292_vm5, %v602_v7, %v601_v22  ;;  %v889_v27 = vunpack.c.l.b16 %v857_v16  ;;  %v890_v28 = vunpack.c.l.b16 %v858_v17 }
  0xa3   : > { %v891_v29 = vunpack.c.l.b16 %v859_v19  ;;  %v605_v30 = vsel %vm295_vm6, %v604_v8, %v603_v26  ;;  %v892_v31 = vunpack.c.l.b16 %v860_v20  ;;  %v901_v32 = vrot.slane %v886_v23, 7 }
  0xa4   : > { %v903_v33 = vrot.slane %v887_v24, 6  ;;  %v620_v34 = vpack.c.b16 %v605_v30, %v605_v30  ;;  %v905_v35 = vrot.slane %v888_v25, 5  ;;  %v907_v36 = vrot.slane %v889_v27, 4 }
  0xa5   : > { %v902_v37 = vsel %vm277_vm0, %v901_v32, %v885_v21  ;;  %v909_v38 = vrot.slane %v890_v28, 3  ;;  %v911_v40 = vrot.slane %v891_v29, 2  ;;  %v913_v42 = vrot.slane %v892_v31, 1 }
  0xa6   : > { %v904_v39 = vsel %vm280_vm1, %v903_v33, %v902_v37  ;;  %vm319_vm7 = vcmask 355552   ;;  %v3104_v49 = vmov 0   ;;  %vm422_vm8 = vcmask 568752  }
  0xa7   : > { %622 = vrot.lane.b32.xlu2 %v620_v34, %s3099_s8  ;;  %v906_v41 = vsel %vm283_vm2, %v905_v35, %v904_v39  ;;  %2994 = vset.pattern.permute.xlu1 %v3104_v49  ;;  %vm525_vm9 = vcmask 781952   ;;  %vm628_vm10 = vcmask 995152   ;;  %vm4352_vm11 = vcmask 224256  }
  0xa8   : > { %v908_v43 = vsel %vm286_vm3, %v907_v36, %v906_v41  ;;  %2993 = vset.pattern.permute.xlu2 %v3104_v49  ;;  %2995 = vset.pattern.permute.xlu0 %v3104_v49  ;;  %vm4351_vm12 = vcmask 437600   ;;  %vm4350_vm13 = vcmask 650800   ;;  %vm4349_vm14 = vcmask 864000  }
  0xa9   : > { %v910_v44 = vsel %vm289_vm4, %v909_v38, %v908_v43  ;;  %vm731_vm15 = vcmask 158752   ;;  %vm834_vm0 = vcmask 371952   ;;  %vm1055_vm1 = vcmask 1044432  }
  0xaa   : > { %v912_v45 = vsel %vm292_vm5, %v911_v40, %v910_v44  ;;  %vm1056_vm2 = vcmask 31748   ;;  %vm937_vm3 = vcmask 585152   ;;  %vm1040_vm4 = vcmask 798352  }
  0xab   : > { %v914_v46 = vsel %vm295_vm6, %v913_v42, %v912_v45  ;;  %vm3512_vm5 = vmor %vm1056_vm2, %vm1055_vm1  ;;  %vm1060_vm6 = vcmask 240800   ;;  %vm4357_vm1 = vcmask 818176  }
  0xac   : > { %v929_v47 = vpack.c.b16 %v914_v46, %v914_v46  ;;  %v316_v48 = vpop.permute.xlu0 %315 }
  0xad   : > { %321 = vst.msk [vmem:[#allocation2 + $0xc] sm:$0xf] %vm319_vm7, %v316_v48 }
  0xaf   : > { %931 = vrot.lane.b32.xlu2 %v929_v47, %s3100_s9 }
  0xb4   : > { %v522_v50 = vpop.permute.xlu1 %521 }
  0xbb   : > { %v419_v51 = vpop.permute.xlu0 %418 }
  0xbc   : > { %424 = vst.msk [vmem:[#allocation2 + $0xc] sm:$0xf] %vm422_vm8, %v419_v51 }
  0xbd   : > { %527 = vst.msk [vmem:[#allocation2 + $0xc] sm:$0xf] %vm525_vm9, %v522_v50 }
  0xc3   : > { %v625_v52 = vpop.permute.xlu1 %624 }
  0xc4   : > { %630 = vst.msk [vmem:[#allocation2 + $0xc] sm:$0xf] %vm628_vm10, %v625_v52 }
  0xc5   : > { %1045 = vst.msk [vmem:[#allocation2 + $0xc] sm:$0xf] %vm4352_vm11, %v3104_v49 }
  0xc6   : > { %1048 = vst.msk [vmem:[#allocation2 + $0xc] sm:$0xf] %vm4351_vm12, %v3104_v49  ;;  %vm1066_vm12 = vcmask 667200  }
  0xc7   : > { %1051 = vst.msk [vmem:[#allocation2 + $0xc] sm:$0xf] %vm4350_vm13, %v3104_v49  ;;  %vm1063_vm13 = vcmask 454000  }
  0xc8   : > { %1054 = vst.msk [vmem:[#allocation2 + $0xc] sm:$0xf] %vm4349_vm14, %v3104_v49  ;;  %vm1069_vm14 = vcmask 1044240  }
  0xc9   : > { %vm3522_vm11 = vmor %vm1056_vm2, %vm1069_vm14  ;;  %vm4354_vm14 = vcmask 1043456  }
  0xca   : > { %v728_v53 = vpop.permute.xlu2 %727 }
  0xcb   : > { %733 = vst.msk [vmem:[#allocation2 + $0x10] sm:$0xf] %vm731_vm15, %v728_v53  ;;  %v934_v54 = vpop.permute.xlu0 %933 }
  0xd3   : > { %v1037_v56 = vpop.permute.xlu1 %1036 }
  0xda   : > { %v417_v59 = vpop.permute.xlu0 %416 }
  0xe1   : > { %v831_v55 = vpop.permute.xlu2 %830 }
  0xe2   : > { %836 = vst.msk [vmem:[#allocation2 + $0x10] sm:$0xf] %vm834_vm0, %v831_v55 }
  0xe3   : > { %939 = vst.msk [vmem:[#allocation2 + $0x10] sm:$0xf] %vm937_vm3, %v934_v54 }
  0xe4   : > { %1042 = vst.msk [vmem:[#allocation2 + $0x10] sm:$0xf] %vm1040_vm4, %v1037_v56 }
  0xe5   : > { %1059 = vst.msk [vmem:[#allocation2 + $0xc] sm:$0xff] %vm3512_vm5, %v3104_v49 }
  0xe6   : > { %1062 = vst.msk [vmem:[#allocation2 + $0x10] sm:$0xf] %vm1060_vm6, %v3104_v49 }
  0xe7   : > { %1065 = vst.msk [vmem:[#allocation2 + $0x10] sm:$0xf] %vm1063_vm13, %v3104_v49 }
  0xe8   : > { %1068 = vst.msk [vmem:[#allocation2 + $0x10] sm:$0xf] %vm1066_vm12, %v3104_v49 }
  0xe9   : > { %1072 = vst.msk [vmem:[#allocation2 + $0x10] sm:$0xff] %vm3522_vm11, %v3104_v49 }
  0xea   : > { %v520_v63 = vpop.permute.xlu1 %519 }
  0xf0   : > { %v3535_v60 = vld [vmem:[#allocation2 + $0xc] sm:$0xff] }
  0xf1   : > { %1204 = vrot.lane.b32.xlu1 %v3535_v60, %s3105_s19  ;;  %1187 = vrot.lane.b32.xlu0 %v3535_v60, %s3106_s20 }
  0xf2   : > { %v726_v61 = vpop.permute.xlu0 %725  ;;  %1170 = vrot.lane.b32.xlu2 %v3535_v60, %s3107_s22 }
  0xf3   : > { %732 = vst.msk [vmem:[#allocation2 + $0x4] sm:$0xf] %vm731_vm15, %v726_v61  ;;  %vm196_vm15 = vcmask 621572  }
  0xf9   : > { %v314_v62 = vpop.permute.xlu2 %313  ;;  %1136 = vrot.lane.b32.xlu1 %v3535_v60, %s3108_s27  ;;  %1102 = vrot.lane.b32.xlu0 %v3535_v60, %s3109_s26 }
  0xfa   : > { %320 = vst.msk [vmem:[#allocation2] sm:$0xf] %vm319_vm7, %v314_v62  ;;  %1153 = vrot.lane.b32.xlu2 %v3535_v60, %s3110_s28  ;;  %vm4367_vm7 = vcmask 224256  }
  0xfb   : > { %423 = vst.msk [vmem:[#allocation2] sm:$0xf] %vm422_vm8, %v417_v59  ;;  %vm4368_vm8 = vcmask 437600  }
  0xfc   : > { %526 = vst.msk [vmem:[#allocation2] sm:$0xf] %vm525_vm9, %v520_v63  ;;  %vm4369_vm9 = vcmask 650800  }
 0x101   : > { %v623_v0 = vpop.permute.xlu2 %622  ;;  %1119 = vrot.lane.b32.xlu1 %v3535_v60, %s3111_s4  ;;  %1085 = vrot.lane.b32.xlu0 %v3535_v60, %s3112_s6  ;;  %v829_v1 = vpop.permute.xlu1 %828 }
 0x102   : > { %629 = vst.msk [vmem:[#allocation2] sm:$0xf] %vm628_vm10, %v623_v0  ;;  %vm4370_vm10 = vcmask 864000  }
 0x103   : > { %1044 = vst.msk [vmem:[#allocation2] sm:$0xf] %vm4367_vm7, %v3104_v49  ;;  %vm4356_vm7 = vcmask 834560  }
 0x104   : > { %1047 = vst.msk [vmem:[#allocation2] sm:$0xf] %vm4368_vm8, %v3104_v49  ;;  %vm1089_vm8 = vcmask 1039360  }
 0x105   : > { %1050 = vst.msk [vmem:[#allocation2] sm:$0xf] %vm4369_vm9, %v3104_v49  ;;  %vm1490_vm9 = vcmask 1043696  }
 0x106   : > { %1053 = vst.msk [vmem:[#allocation2] sm:$0xf] %vm4370_vm10, %v3104_v49  ;;  %vm1491_vm10 = vcmask 834564  }
 0x107   : > { %835 = vst.msk [vmem:[#allocation2 + $0x4] sm:$0xf] %vm834_vm0, %v829_v1  ;;  %vm3582_vm0 = vmor %vm196_vm15, %vm4354_vm14  ;;  %vm1485_vm15 = vcmask 244736  }
 0x108   : > { %198 = vst.msk [vmem:[#allocation3 + $0x48] sm:$0xff] %vm3582_vm0, %v3104_v49 }
 0x109   : > { %v932_v2 = vpop.permute.xlu2 %931  ;;  %v1035_v3 = vpop.permute.xlu0 %1034  ;;  %199 = vst.msk [vmem:[#allocation3 + $0x50] sm:$0xff] %vm3582_vm0, %v3104_v49 }
 0x10a   : > { %938 = vst.msk [vmem:[#allocation2 + $0x4] sm:$0xf] %vm937_vm3, %v932_v2  ;;  %vm4353_vm3 = vcmask 605184  }
 0x10b   : > { %1041 = vst.msk [vmem:[#allocation2 + $0x4] sm:$0xf] %vm1040_vm4, %v1035_v3  ;;  %vm1191_vm4 = vcmask 613376  }
 0x10c   : > { %1058 = vst.msk [vmem:[#allocation2] sm:$0xff] %vm3512_vm5, %v3104_v49  ;;  %vm1140_vm5 = vcmask 826368  }
 0x10d   : > { %1061 = vst.msk [vmem:[#allocation2 + $0x4] sm:$0xf] %vm1060_vm6, %v3104_v49  ;;  %vm1106_vm6 = vcmask 1031168  }
 0x10e   : > { %1064 = vst.msk [vmem:[#allocation2 + $0x4] sm:$0xf] %vm1063_vm13, %v3104_v49  ;;  %vm4355_vm13 = vcmask 621568  }
 0x10f   : > { %1067 = vst.msk [vmem:[#allocation2 + $0x4] sm:$0xf] %vm1066_vm12, %v3104_v49 }
 0x110   : > { %1071 = vst.msk [vmem:[#allocation2 + $0x4] sm:$0xff] %vm3522_vm11, %v3104_v49  ;;  %vm1075_vm11 = vcmask 588804   ;;  %v2631_v50 = vld [vmem:[#allocation3 + $0x50] sm:$0xf]  ;;  %v2865_v52 = vld [vmem:[#allocation3 + $0x54] sm:$0xf] }
 0x111   : > { %200 = vst.msk [vmem:[#allocation3 + $0x58] sm:$0xff] %vm3582_vm0, %v3104_v49  ;;  %vm3629_vm12 = vmor %vm1075_vm11, %vm4354_vm14  ;;  %vm1521_vm14 = vcmask 1044272  }
 0x112   : > { %201 = vst.msk [vmem:[#allocation3 + $0x60] sm:$0xff] %vm3582_vm0, %v3104_v49  ;;  %vm3707_vm11 = vmor %vm1491_vm10, %vm1490_vm9  ;;  %vm1504_vm9 = vcmask 880416  }
 0x113   : > { %202 = vst.msk [vmem:[#allocation3 + $0x68] sm:$0xff] %vm3582_vm0, %v3104_v49 }
 0x114   : > { %203 = vst.msk [vmem:[#allocation3 + $0x70] sm:$0xff] %vm3582_vm0, %v3104_v49 }
 0x115   : > { %204 = vst.msk [vmem:[#allocation3 + $0x78] sm:$0xff] %vm3582_vm0, %v3104_v49 }
 0x116   : > { %205 = vst.msk [vmem:[#allocation3 + $0xc8] sm:$0xff] %vm3582_vm0, %v3104_v49 }
 0x117   : > { %v1164_v5 = vld [vmem:[#allocation2] sm:$0xff]  ;;  %206 = vst.msk [vmem:[#allocation3 + $0xd0] sm:$0xff] %vm3582_vm0, %v3104_v49 }
 0x118   : > { %1168 = vrot.lane.b32.xlu1 %v1164_v5, %s3107_s22  ;;  %1134 = vrot.lane.b32.xlu0 %v1164_v5, %s3108_s27  ;;  %207 = vst.msk [vmem:[#allocation3 + $0xd8] sm:$0xff] %vm3582_vm0, %v3104_v49  ;;  %v2866_v51 = vld [vmem:[#allocation3 + $0x54] sm:$0xf0]  ;;  %v2633_v56 = vld [vmem:[#allocation3 + $0x58] sm:$0xf0] }
 0x119   : > { %1202 = vrot.lane.b32.xlu2 %v1164_v5, %s3105_s19  ;;  %208 = vst.msk [vmem:[#allocation3 + $0xe0] sm:$0xff] %vm3582_vm0, %v3104_v49  ;;  %v2639_v43 = vld [vmem:[#allocation3 + $0x60] sm:$0xf]  ;;  %v2867_v45 = vld [vmem:[#allocation3 + $0x64] sm:$0xf]  ;;  %v2632_v55 = vor.u32 %v2866_v51, %v2631_v50  ;;  %v2636_v61 = vor.u32 %v2865_v52, %v2633_v56 }
 0x11a   : > { %209 = vst.msk [vmem:[#allocation3 + $0xe8] sm:$0xff] %vm3582_vm0, %v3104_v49  ;;  %v2868_v44 = vld [vmem:[#allocation3 + $0x64] sm:$0xf0]  ;;  %v2641_v47 = vld [vmem:[#allocation3 + $0x68] sm:$0xf0] }
 0x11b   : > { %210 = vst.msk [vmem:[#allocation3 + $0xf0] sm:$0xff] %vm3582_vm0, %v3104_v49  ;;  %v2647_v31 = vld [vmem:[#allocation3 + $0x70] sm:$0xf]  ;;  %v2869_v33 = vld [vmem:[#allocation3 + $0x74] sm:$0xf]  ;;  %v2640_v46 = vor.u32 %v2868_v44, %v2639_v43  ;;  %v2644_v48 = vor.u32 %v2867_v45, %v2641_v47 }
 0x11c   : > { %211 = vst.msk [vmem:[#allocation3 + $0xf8] sm:$0xff] %vm3582_vm0, %v3104_v49  ;;  %v2870_v32 = vld [vmem:[#allocation3 + $0x74] sm:$0xf0]  ;;  %v2649_v35 = vld [vmem:[#allocation3 + $0x78] sm:$0xf0] }
 0x11d   : > { %1078 = vst.msk [vmem:[#allocation3 + $0x80] sm:$0xff] %vm3629_vm12, %v3535_v60  ;;  %v2648_v34 = vor.u32 %v2870_v32, %v2647_v31  ;;  %v2652_v36 = vor.u32 %v2869_v33, %v2649_v35  ;;  %v2880_v59 = vld [vmem:[#allocation3 + $0xc4] sm:$0xf0]  ;;  %v2689_v60 = vld [vmem:[#allocation3 + $0xc8] sm:$0xf0] }
 0x11e   : > { %1077 = vst.msk [vmem:[#allocation3] sm:$0xff] %vm3629_vm12, %v1164_v5  ;;  %v2695_v22 = vld [vmem:[#allocation3 + $0xd0] sm:$0xf]  ;;  %v2881_v25 = vld [vmem:[#allocation3 + $0xd4] sm:$0xf] }
 0x11f   : > { %v2882_v23 = vld [vmem:[#allocation3 + $0xd4] sm:$0xf0]  ;;  %v2697_v26 = vld [vmem:[#allocation3 + $0xd8] sm:$0xf0]  ;;  %1312 = vmatpush.bf16.msra.mxu0 %v2648_v34  ;;  %1325 = vmatpush.bf16.msra.mxu1 %v2652_v36  ;;  %v1215_v52 = vld [vmem:[%s4346_s1] sm:$0xf] }
 0x120   : > { %1151 = vrot.lane.b32.xlu1 %v1164_v5, %s3110_s28  ;;  %1117 = vrot.lane.b32.xlu0 %v1164_v5, %s3111_s4  ;;  %v2703_v12 = vld [vmem:[#allocation3 + $0xe0] sm:$0xf]  ;;  %v2883_v15 = vld [vmem:[#allocation3 + $0xe4] sm:$0xf]  ;;  %v2696_v24 = vor.u32 %v2882_v23, %v2695_v22  ;;  %v2700_v27 = vor.u32 %v2881_v25, %v2697_v26 }
 0x121   : > { %1185 = vrot.lane.b32.xlu2 %v1164_v5, %s3106_s20  ;;  %v2884_v13 = vld [vmem:[#allocation3 + $0xe4] sm:$0xf0]  ;;  %v2705_v16 = vld [vmem:[#allocation3 + $0xe8] sm:$0xf0]  ;;  %s3115_s20 = smov 72  }
 0x122   : > { %v2711_v7 = vld [vmem:[#allocation3 + $0xf0] sm:$0xf]  ;;  %v2885_v9 = vld [vmem:[#allocation3 + $0xf4] sm:$0xf]  ;;  %v2704_v17 = vor.u32 %v2884_v13, %v2703_v12  ;;  %v2708_v19 = vor.u32 %v2883_v15, %v2705_v16 }
 0x123   : > { %v2886_v8 = vld [vmem:[#allocation3 + $0xf4] sm:$0xf0]  ;;  %v2713_v11 = vld [vmem:[#allocation3 + $0xf8] sm:$0xf0]  ;;  %1313 = vmatpush.bf16.msra.mxu0 %v2640_v46  ;;  %1326 = vmatpush.bf16.msra.mxu1 %v2644_v48 }
 0x124   : > { %v2712_v10 = vor.u32 %v2886_v8, %v2711_v7  ;;  %v2716_v14 = vor.u32 %v2885_v9, %v2713_v11  ;;  %v2871_v44 = vld [vmem:[#allocation3 + $0x84] sm:$0xf] }
 0x126   : > { %1435 = vmatpush.bf16.msra.mxu2 %v2712_v10  ;;  %1448 = vmatpush.bf16.msra.mxu3 %v2716_v14 }
 0x127   : > { %1314 = vmatpush.bf16.msra.mxu0 %v2632_v55  ;;  %1327 = vmatpush.bf16.msra.mxu1 %v2636_v61 }
 0x128   : > { %1083 = vrot.lane.b32.xlu1 %v1164_v5, %s3112_s6 }
 0x129   : > { %1100 = vrot.lane.b32.xlu2 %v1164_v5, %s3109_s26 }
 0x12a   : > { %1436 = vmatpush.bf16.msra.mxu2 %v2704_v17  ;;  %1449 = vmatpush.bf16.msra.mxu3 %v2708_v19 }
 0x12e   : > { %1437 = vmatpush.bf16.msra.mxu2 %v2696_v24  ;;  %1450 = vmatpush.bf16.msra.mxu3 %v2700_v27 }
 0x14c   : > { %v1171_v18 = vpop.permute.xlu2 %1170 }
 0x14d   : > { %v1173_v20 = vrot.slane %v1171_v18, 4 }
 0x14f   : > { %v1176_v21 = vsel %vm4355_vm13, %v1171_v18, %v1173_v20 }
 0x150   : > { %1180 = vst.msk [vmem:[#allocation3 + $0xb0] sm:$0xff] %vm3629_vm12, %v1176_v21 }
 0x154   : > { %v1154_v28 = vpop.permute.xlu2 %1153 }
 0x155   : > { %v1156_v29 = vrot.slane %v1154_v28, 4 }
 0x157   : > { %v1159_v30 = vsel %vm4357_vm1, %v1154_v28, %v1156_v29  ;;  %v2679_v5 = vld [vmem:[#allocation3 + $0xb0] sm:$0xf]  ;;  %v2877_v7 = vld [vmem:[#allocation3 + $0xb4] sm:$0xf]  ;;  %v2864_v29 = vld [vmem:[#allocation3 + $0x44] sm:$0xf0] }
 0x158   : > { %1163 = vst.msk [vmem:[#allocation3 + $0xa8] sm:$0xff] %vm3629_vm12, %v1159_v30  ;;  %v2625_v30 = vld [vmem:[#allocation3 + $0x48] sm:$0xf0] }
 0x15f   : > { %v2876_v18 = vld [vmem:[#allocation3 + $0xa4] sm:$0xf0]  ;;  %v2673_v19 = vld [vmem:[#allocation3 + $0xa8] sm:$0xf0] }
 0x163   : > { %v1205_v37 = vpop.permute.xlu1 %1204  ;;  %v1188_v38 = vpop.permute.xlu0 %1187 }
 0x164   : > { %v1207_v39 = vrot.slane %v1205_v37, 4  ;;  %v1190_v40 = vrot.slane %v1188_v38, 4 }
 0x166   : > { %v1210_v41 = vsel %vm4353_vm3, %v1205_v37, %v1207_v39  ;;  %v1193_v42 = vsel %vm1191_vm4, %v1188_v38, %v1190_v40 }
 0x167   : > { %1214 = vst.msk [vmem:[#allocation3 + $0xc0] sm:$0xff] %vm3629_vm12, %v1210_v41 }
 0x168   : > { %1197 = vst.msk [vmem:[#allocation3 + $0xb8] sm:$0xff] %vm3629_vm12, %v1193_v42  ;;  %v2655_v42 = vld [vmem:[#allocation3 + $0x80] sm:$0xf] }
 0x16b   : > { %v1137_v53 = vpop.permute.xlu1 %1136  ;;  %v1103_v54 = vpop.permute.xlu0 %1102 }
 0x16c   : > { %v1139_v57 = vrot.slane %v1137_v53, 4  ;;  %v1105_v58 = vrot.slane %v1103_v54, 4 }
 0x16e   : > { %v1142_v62 = vsel %vm1140_vm5, %v1137_v53, %v1139_v57  ;;  %v1108_v63 = vsel %vm1106_vm6, %v1103_v54, %v1105_v58  ;;  %v2687_v0 = vld [vmem:[#allocation3 + $0xc0] sm:$0xf]  ;;  %v2879_v1 = vld [vmem:[#allocation3 + $0xc4] sm:$0xf]  ;;  %v1461_v57 = vld [vmem:[%s4347_s2] sm:$0xff] }
 0x16f   : > { %1146 = vst.msk [vmem:[#allocation3 + $0xa0] sm:$0xff] %vm3629_vm12, %v1142_v62  ;;  %v2688_v2 = vor.u32 %v2880_v59, %v2687_v0  ;;  %v2692_v3 = vor.u32 %v2879_v1, %v2689_v60  ;;  %v2878_v8 = vld [vmem:[#allocation3 + $0xb4] sm:$0xf0]  ;;  %v2681_v9 = vld [vmem:[#allocation3 + $0xb8] sm:$0xf0]  ;;  %v2846_v58 = vld [vmem:[%s4347_s2 + $0x8] sm:$0xff]  ;;  %1464 = vperm.xlu2 %2993, %v1461_v57  }
 0x170   : > { %1112 = vst.msk [vmem:[#allocation3 + $0x90] sm:$0xff] %vm3629_vm12, %v1108_v63  ;;  %v2680_v14 = vor.u32 %v2878_v8, %v2679_v5  ;;  %v2684_v15 = vor.u32 %v2877_v7, %v2681_v9  ;;  %1935 = vperm.xlu1 %2994, %v2846_v58  }
 0x171   : > { %1438 = vmatpush.bf16.msra.mxu2 %v2688_v2  ;;  %1451 = vmatpush.bf16.msra.mxu3 %v2692_v3 }
 0x173   : > { %v1203_v10 = vpop.permute.xlu2 %1202  ;;  %v1120_v11 = vpop.permute.xlu1 %1119 }
 0x174   : > { %v1206_v12 = vrot.slane %v1203_v10, 4  ;;  %v1086_v13 = vpop.permute.xlu0 %1085  ;;  %v1122_v16 = vrot.slane %v1120_v11, 4 }
 0x175   : > { %v1088_v17 = vrot.slane %v1086_v13, 4  ;;  %1439 = vmatpush.bf16.msra.mxu2 %v2680_v14  ;;  %1452 = vmatpush.bf16.msra.mxu3 %v2684_v15 }
 0x176   : > { %v1209_v20 = vsel %vm4353_vm3, %v1203_v10, %v1206_v12  ;;  %v1125_v21 = vsel %vm4356_vm7, %v1120_v11, %v1122_v16  ;;  %v2671_v23 = vld [vmem:[#allocation3 + $0xa0] sm:$0xf]  ;;  %v2875_v24 = vld [vmem:[#allocation3 + $0xa4] sm:$0xf]  ;;  %vm1501_vm3 = vcmask 667216  }
 0x177   : > { %1213 = vst.msk [vmem:[#allocation3 + $0x40] sm:$0xff] %vm3629_vm12, %v1209_v20  ;;  %v1091_v22 = vsel %vm1089_vm8, %v1086_v13, %v1088_v17  ;;  %v2672_v25 = vor.u32 %v2876_v18, %v2671_v23  ;;  %v2676_v26 = vor.u32 %v2875_v24, %v2673_v19  ;;  %v2663_v31 = vld [vmem:[#allocation3 + $0x90] sm:$0xf]  ;;  %v2873_v33 = vld [vmem:[#allocation3 + $0x94] sm:$0xf] }
 0x178   : > { %1129 = vst.msk [vmem:[#allocation3 + $0x98] sm:$0xff] %vm3629_vm12, %v1125_v21 }
 0x179   : > { %1095 = vst.msk [vmem:[#allocation3 + $0x88] sm:$0xff] %vm3629_vm12, %v1091_v22  ;;  %1440 = vmatpush.bf16.msra.mxu2 %v2672_v25  ;;  %1453 = vmatpush.bf16.msra.mxu3 %v2676_v26  ;;  %v2591_v26 = vld [vmem:[#allocation3] sm:$0xf] }
 0x17b   : > { %v1186_v27 = vpop.permute.xlu2 %1185 }
 0x17c   : > { %v1189_v28 = vrot.slane %v1186_v27, 4 }
 0x17e   : > { %v1192_v32 = vsel %vm1191_vm4, %v1186_v27, %v1189_v28  ;;  %v2623_v34 = vld [vmem:[#allocation3 + $0x40] sm:$0xf]  ;;  %v2863_v35 = vld [vmem:[#allocation3 + $0x44] sm:$0xf]  ;;  %vm1498_vm4 = vcmask 454016  }
 0x17f   : > { %1196 = vst.msk [vmem:[#allocation3 + $0x38] sm:$0xff] %vm3629_vm12, %v1192_v32  ;;  %v2874_v36 = vld [vmem:[#allocation3 + $0x94] sm:$0xf0]  ;;  %v2665_v37 = vld [vmem:[#allocation3 + $0x98] sm:$0xf0]  ;;  %v2624_v38 = vor.u32 %v2864_v29, %v2623_v34  ;;  %v2628_v39 = vor.u32 %v2863_v35, %v2625_v30 }
 0x180   : > { %v2664_v40 = vor.u32 %v2874_v36, %v2663_v31  ;;  %v2668_v41 = vor.u32 %v2873_v33, %v2665_v37  ;;  %v2872_v43 = vld [vmem:[#allocation3 + $0x84] sm:$0xf0]  ;;  %v2657_v45 = vld [vmem:[#allocation3 + $0x88] sm:$0xf0]  ;;  %v2855_v27 = vld [vmem:[#allocation3 + $0x4] sm:$0xf] }
 0x181   : > { %1315 = vmatpush.bf16.msra.mxu0 %v2624_v38  ;;  %1328 = vmatpush.bf16.msra.mxu1 %v2628_v39  ;;  %v2656_v48 = vor.u32 %v2872_v43, %v2655_v42  ;;  %v2660_v50 = vor.u32 %v2871_v44, %v2657_v45 }
 0x182   : > { %1441 = vmatpush.bf16.msra.mxu2 %v2664_v40  ;;  %1454 = vmatpush.bf16.msra.mxu3 %v2668_v41 }
 0x183   : > { %v1101_v46 = vpop.permute.xlu2 %1100 }
 0x184   : > { %v1104_v47 = vrot.slane %v1101_v46, 4 }
 0x186   : > { %v1107_v51 = vsel %vm1106_vm6, %v1101_v46, %v1104_v47  ;;  %1442 = vmatpush.bf16.msra.mxu2 %v2656_v48  ;;  %1455 = vmatpush.bf16.msra.mxu3 %v2660_v50  ;;  %v2862_v1 = vld [vmem:[#allocation3 + $0x34] sm:$0xf0]  ;;  %v2617_v2 = vld [vmem:[#allocation3 + $0x38] sm:$0xf0] }
 0x187   : > { %1111 = vst.msk [vmem:[#allocation3 + $0x10] sm:$0xff] %vm3629_vm12, %v1107_v51 }
 0x189   : > { %1443 = vmatmul.bf16.vlgmr.msra.gmra.mxu2 %v1215_v52  ;;  %1456 = vmatmul.bf16.vlgmr.msra.gmra.mxu3 %v1215_v52 }
 0x18a   : > { %v1169_v53 = vpop.permute.xlu1 %1168  ;;  %v1135_v54 = vpop.permute.xlu0 %1134 }
 0x18b   : > { %v1172_v55 = vrot.slane %v1169_v53, 4  ;;  %v1138_v56 = vrot.slane %v1135_v54, 4 }
 0x18d   : > { %v1175_v59 = vsel %vm4355_vm13, %v1169_v53, %v1172_v55  ;;  %v1141_v60 = vsel %vm1140_vm5, %v1135_v54, %v1138_v56  ;;  %vm1507_vm5 = vcmask 1044464   ;;  %vm1512_vm13 = vcmask 257216   ;;  %v2917_v54 = vld [vmem:[#allocation3 + $0xf4] sm:$0xf] }
 0x18e   : > { %1179 = vst.msk [vmem:[#allocation3 + $0x30] sm:$0xff] %vm3629_vm12, %v1175_v59  ;;  %v2599_v20 = vld [vmem:[#allocation3 + $0x10] sm:$0xf]  ;;  %v2857_v22 = vld [vmem:[#allocation3 + $0x14] sm:$0xf] }
 0x18f   : > { %1145 = vst.msk [vmem:[#allocation3 + $0x20] sm:$0xff] %vm3629_vm12, %v1141_v60 }
 0x192   : > { %v1152_v61 = vpop.permute.xlu1 %1151  ;;  %v1118_v62 = vpop.permute.xlu0 %1117 }
 0x193   : > { %v1155_v63 = vrot.slane %v1152_v61, 4  ;;  %v1121_v0 = vrot.slane %v1118_v62, 4 }
 0x195   : > { %v1158_v3 = vsel %vm4357_vm1, %v1152_v61, %v1155_v63  ;;  %v1124_v5 = vsel %vm4356_vm7, %v1118_v62, %v1121_v0  ;;  %v2615_v7 = vld [vmem:[#allocation3 + $0x30] sm:$0xf]  ;;  %v2861_v8 = vld [vmem:[#allocation3 + $0x34] sm:$0xf]  ;;  %vm1515_vm7 = vcmask 470416   ;;  %vm1518_vm1 = vcmask 683616  }
 0x196   : > { %1162 = vst.msk [vmem:[#allocation3 + $0x28] sm:$0xff] %vm3629_vm12, %v1158_v3  ;;  %v2616_v9 = vor.u32 %v2862_v1, %v2615_v7  ;;  %v2620_v10 = vor.u32 %v2861_v8, %v2617_v2  ;;  %v2607_v13 = vld [vmem:[#allocation3 + $0x20] sm:$0xf]  ;;  %v2859_v16 = vld [vmem:[#allocation3 + $0x24] sm:$0xf] }
 0x197   : > { %1128 = vst.msk [vmem:[#allocation3 + $0x18] sm:$0xff] %vm3629_vm12, %v1124_v5 }
 0x198   : > { %1316 = vmatpush.bf16.msra.mxu0 %v2616_v9  ;;  %1329 = vmatpush.bf16.msra.mxu1 %v2620_v10  ;;  %v2776_v10 = vld [vmem:[#allocation3 + $0x70] sm:$0xf] }
 0x19a   : > { %v1084_v11 = vpop.permute.xlu1 %1083 }
 0x19b   : > { %v1087_v12 = vrot.slane %v1084_v11, 4 }
 0x19d   : > { %v1090_v14 = vsel %vm1089_vm8, %v1084_v11, %v1087_v12  ;;  %v2860_v15 = vld [vmem:[#allocation3 + $0x24] sm:$0xf0]  ;;  %v2609_v17 = vld [vmem:[#allocation3 + $0x28] sm:$0xf0]  ;;  %vm1508_vm8 = vcmask 48132  }
 0x19e   : > { %1094 = vst.msk [vmem:[#allocation3 + $0x8] sm:$0xff] %vm3629_vm12, %v1090_v14  ;;  %v2608_v18 = vor.u32 %v2860_v15, %v2607_v13  ;;  %v2612_v19 = vor.u32 %v2859_v16, %v2609_v17  ;;  %v2858_v21 = vld [vmem:[#allocation3 + $0x14] sm:$0xf0]  ;;  %v2601_v23 = vld [vmem:[#allocation3 + $0x18] sm:$0xf0]  ;;  %vm1495_vm12 = vcmask 240640   ;;  %vm3720_vm10 = vmor %vm1508_vm8, %vm1507_vm5 }
 0x19f   : > { %v2600_v24 = vor.u32 %v2858_v21, %v2599_v20  ;;  %v2604_v25 = vor.u32 %v2857_v22, %v2601_v23  ;;  %vm1522_vm5 = vmor %vm1056_vm2, %vm1521_vm14  ;;  %vm4379_vm2 = vcmask 818176   ;;  %v2902_v11 = vld [vmem:[#allocation3 + $0x74] sm:$0xf0]  ;;  %v2901_v13 = vld [vmem:[#allocation3 + $0x74] sm:$0xf]  ;;  %vm1555_vm14 = vcmask 1014784  }
 0x1a0   : > { %1317 = vmatpush.bf16.msra.mxu0 %v2608_v18  ;;  %1330 = vmatpush.bf16.msra.mxu1 %v2612_v19  ;;  %v2777_v12 = vor.u32 %v2902_v11, %v2776_v10  ;;  %v2778_v14 = vld [vmem:[#allocation3 + $0x78] sm:$0xf0]  ;;  %v2768_v16 = vld [vmem:[#allocation3 + $0x60] sm:$0xf]  ;;  %v2900_v17 = vld [vmem:[#allocation3 + $0x64] sm:$0xf0] }
 0x1a1   : > { %v2781_v15 = vor.u32 %v2901_v13, %v2778_v14  ;;  %v2899_v18 = vld [vmem:[#allocation3 + $0x64] sm:$0xf]  ;;  %v2769_v19 = vor.u32 %v2900_v17, %v2768_v16  ;;  %v2770_v20 = vld [vmem:[#allocation3 + $0x68] sm:$0xf0]  ;;  %v2913_v10 = vld [vmem:[#allocation3 + $0xd4] sm:$0xf] }
 0x1a2   : > { %v2773_v21 = vor.u32 %v2899_v18, %v2770_v20  ;;  %v2826_v11 = vld [vmem:[#allocation3 + $0xd8] sm:$0xf0]  ;;  %v2896_v20 = vld [vmem:[#allocation3 + $0x44] sm:$0xf0] }
 0x1a3   : > { %v2829_v14 = vor.u32 %v2913_v10, %v2826_v11 }
 0x1a4   : > { %1318 = vmatpush.bf16.msra.mxu0 %v2600_v24  ;;  %1331 = vmatpush.bf16.msra.mxu1 %v2604_v25 }
 0x1a5   : > { %v2856_v28 = vld [vmem:[#allocation3 + $0x4] sm:$0xf0]  ;;  %v2593_v29 = vld [vmem:[#allocation3 + $0x8] sm:$0xf0] }
 0x1a6   : > { %v2592_v30 = vor.u32 %v2856_v28, %v2591_v26  ;;  %v2596_v31 = vor.u32 %v2855_v27, %v2593_v29  ;;  %v2760_v27 = vld [vmem:[#allocation3 + $0x50] sm:$0xf]  ;;  %v2898_v28 = vld [vmem:[#allocation3 + $0x54] sm:$0xf0] }
 0x1a8   : > { %1319 = vmatpush.bf16.msra.mxu0 %v2592_v30  ;;  %1332 = vmatpush.bf16.msra.mxu1 %v2596_v31  ;;  %v2761_v30 = vor.u32 %v2898_v28, %v2760_v27  ;;  %v2897_v31 = vld [vmem:[#allocation3 + $0x54] sm:$0xf] }
 0x1ab   : > { %1320 = vmatmul.bf16.vlgmr.msra.gmra.mxu0 %v1215_v52  ;;  %1333 = vmatmul.bf16.vlgmr.msra.gmra.mxu1 %v1215_v52 }
 0x1ac   : > { %1783 = vmatpush.bf16.msrb.mxu0 %v2777_v12  ;;  %1796 = vmatpush.bf16.msrb.mxu1 %v2781_v15 }
 0x1b0   : > { %1784 = vmatpush.bf16.msrb.mxu0 %v2769_v19  ;;  %1797 = vmatpush.bf16.msrb.mxu1 %v2773_v21  ;;  %v2754_v21 = vld [vmem:[#allocation3 + $0x48] sm:$0xf0] }
 0x1b4   : > { %1785 = vmatpush.bf16.msrb.mxu0 %v2761_v30 }
 0x1c9   : > { %v1465_v6 = vpop.permute.xlu2 %1464 }
 0x1e2   : > { %v3705_v51 = vpop.permute.xlu1 %1935 }
 0x20c   : > { %v1444_v32 = vpop.f32.mrf.mxu2  ;;  %v1457_v33 = vpop.f32.mrf.mxu3 }
 0x20d   : > { %v1469_v34 = vadd.f32 %v1465_v6, %v1444_v32  ;;  %v1470_v35 = vadd.f32 %v1465_v6, %v1457_v33 }
 0x20f   : > { %v1473_v36 = vmax.f32 %v1469_v34, 0.0  ;;  %v1474_v37 = vmax.f32 %v1470_v35, 0.0 }
 0x211   : > { %v1476_v38 = vpack.c.bf16 %v1474_v37, %v1473_v36 }
 0x213   : > { %1481 = vrot.lane.b32.xlu1 %v1476_v38, %s3103_s17 }
 0x214   : > { %v1446_v39 = vpop.f32.mrf.mxu2  ;;  %v1459_v40 = vpop.f32.mrf.mxu3 }
 0x228   : > { %v1321_v41 = vpop.f32.mrf.mxu0  ;;  %v1334_v42 = vpop.f32.mrf.mxu1 }
 0x229   : > { %v1467_v43 = vadd.f32 %v1465_v6, %v1321_v41  ;;  %v1468_v44 = vadd.f32 %v1465_v6, %v1334_v42  ;;  %v2762_v6 = vld [vmem:[#allocation3 + $0x58] sm:$0xf0] }
 0x22a   : > { %v2765_v34 = vor.u32 %v2897_v31, %v2762_v6 }
 0x22b   : > { %v1471_v45 = vmax.f32 %v1467_v43, 0.0  ;;  %v1472_v46 = vmax.f32 %v1468_v44, 0.0 }
 0x22c   : > { %1798 = vmatpush.bf16.msrb.mxu1 %v2765_v34 }
 0x22d   : > { %v1475_v47 = vpack.c.bf16 %v1472_v46, %v1471_v45 }
 0x22f   : > { %1479 = vrot.lane.b32.xlu0 %v1475_v47, %s3103_s17  ;;  %s3114_s17 = smov 98  }
 0x230   : > { %v1323_v48 = vpop.f32.mrf.mxu0  ;;  %v1336_v50 = vpop.f32.mrf.mxu1 }
 0x231   : > { %v2840_v50 = vld [vmem:[#allocation3 + $0xf0] sm:$0xf] }
 0x285   : > { %v1482_v52 = vpop.permute.xlu1 %1481 }
 0x286   : > { %v1484_v53 = vrot.slane %v1482_v52, 4 }
 0x288   : > { %v1487_v55 = vsel %vm1485_vm15, %v1484_v53, %v1482_v52  ;;  %v2918_v52 = vld [vmem:[#allocation3 + $0xf4] sm:$0xf0] }
 0x289   : > { %1494 = vst.msk [vmem:[#allocation2 + $0xc] sm:$0xff] %vm3707_vm11, %v1487_v55  ;;  %v2841_v53 = vor.u32 %v2918_v52, %v2840_v50  ;;  %v2842_v55 = vld [vmem:[#allocation3 + $0xf8] sm:$0xf0] }
 0x28a   : > { %1497 = vst.msk [vmem:[#allocation2 + $0xc] sm:$0xf] %vm1495_vm12, %v3104_v49 }
 0x28b   : > { %1500 = vst.msk [vmem:[#allocation2 + $0xc] sm:$0xf] %vm1498_vm4, %v3104_v49  ;;  %1905 = vmatpush.bf16.msrb.mxu2 %v2841_v53 }
 0x28c   : > { %1503 = vst.msk [vmem:[#allocation2 + $0xc] sm:$0xf] %vm1501_vm3, %v3104_v49 }
 0x28d   : > { %1506 = vst.msk [vmem:[#allocation2 + $0xc] sm:$0xf] %vm1504_vm9, %v3104_v49 }
 0x28e   : > { %1511 = vst.msk [vmem:[#allocation2 + $0xc] sm:$0xff] %vm3720_vm10, %v3104_v49 }
 0x28f   : > { %1514 = vst.msk [vmem:[#allocation2 + $0x10] sm:$0xf] %vm1512_vm13, %v3104_v49 }
 0x290   : > { %1517 = vst.msk [vmem:[#allocation2 + $0x10] sm:$0xf] %vm1515_vm7, %v3104_v49 }
 0x291   : > { %1520 = vst.msk [vmem:[#allocation2 + $0x10] sm:$0xf] %vm1518_vm1, %v3104_v49 }
 0x292   : > { %1524 = vst.msk [vmem:[#allocation2 + $0x10] sm:$0xff] %vm1522_vm5, %v3104_v49 }
 0x299   : > { %v1530_v60 = vld [vmem:[#allocation2 + $0xc] sm:$0xff]  ;;  %v1630_v63 = vld [vmem:[#allocation2 + $0x14] sm:$0xf] }
 0x29a   : > { %1528 = vst.msk [vmem:[#allocation3 + $0x80] sm:$0xff] %vm3582_vm0, %v1530_v60  ;;  %v1659_v0 = vld [vmem:[#allocation2 + $0x14] sm:$0xf] }
 0x2a1   : > { %v1480_v57 = vpop.permute.xlu0 %1479 }
 0x2a2   : > { %v1483_v58 = vrot.slane %v1480_v57, 4 }
 0x2a4   : > { %v1486_v59 = vsel %vm1485_vm15, %v1483_v58, %v1480_v57  ;;  %v2845_v57 = vor.u32 %v2917_v54, %v2842_v55  ;;  %vm4383_vm15 = vcmask 605184  }
 0x2a5   : > { %1493 = vst.msk [vmem:[#allocation2] sm:$0xff] %vm3707_vm11, %v1486_v59  ;;  %v2832_v59 = vld [vmem:[#allocation3 + $0xe0] sm:$0xf]  ;;  %vm1677_vm11 = vcmask 588800  }
 0x2a6   : > { %1496 = vst.msk [vmem:[#allocation2] sm:$0xf] %vm1495_vm12, %v3104_v49  ;;  %1918 = vmatpush.bf16.msrb.mxu3 %v2845_v57 }
 0x2a7   : > { %1499 = vst.msk [vmem:[#allocation2] sm:$0xf] %vm1498_vm4, %v3104_v49 }
 0x2a8   : > { %1502 = vst.msk [vmem:[#allocation2] sm:$0xf] %vm1501_vm3, %v3104_v49  ;;  %vm4381_vm3 = vcmask 621568  }
 0x2a9   : > { %1505 = vst.msk [vmem:[#allocation2] sm:$0xf] %vm1504_vm9, %v3104_v49  ;;  %vm4386_vm8 = vmmov %vm4381_vm3 }
 0x2aa   : > { %1510 = vst.msk [vmem:[#allocation2] sm:$0xff] %vm3720_vm10, %v3104_v49  ;;  %vm4389_vm10 = vmmov %vm4383_vm15 }
 0x2ab   : > { %1513 = vst.msk [vmem:[#allocation2 + $0x4] sm:$0xf] %vm1512_vm13, %v3104_v49  ;;  %vm4380_vm13 = vcmask 834560  }
 0x2ac   : > { %1516 = vst.msk [vmem:[#allocation2 + $0x4] sm:$0xf] %vm1515_vm7, %v3104_v49  ;;  %vm4382_vm7 = vcmask 1043456   ;;  %vm4385_vm4 = vmmov %vm4380_vm13 }
 0x2ad   : > { %1519 = vst.msk [vmem:[#allocation2 + $0x4] sm:$0xf] %vm1518_vm1, %v3104_v49  ;;  %vm1604_vm1 = vcmask 801792   ;;  %vm4384_vm12 = vmmov %vm4382_vm7 }
 0x2ae   : > { %1523 = vst.msk [vmem:[#allocation2 + $0x4] sm:$0xff] %vm1522_vm5, %v3104_v49  ;;  %vm4388_vm9 = vmmov %vm4382_vm7 }
 0x2af   : > { %vm4390_vm5 = vmmov %vm4382_vm7 }
 0x2b5   : > { %v1562_v61 = vld [vmem:[#allocation2] sm:$0xff]  ;;  %v1628_v49 = vld [vmem:[#allocation2 + $0x8] sm:$0xf] }
 0x2b6   : > { %1566 = vrot.lane.b32.xlu0 %v1562_v61, %s3111_s4  ;;  %1549 = vrot.lane.b32.xlu1 %v1562_v61, %s3113_s11  ;;  %1527 = vst.msk [vmem:[#allocation3] sm:$0xff] %vm3582_vm0, %v1562_v61  ;;  %v1657_v62 = vld [vmem:[#allocation2 + $0x8] sm:$0xf] }
 0x2b7   : > { %1533 = vrot.lane.b32.xlu2 %v1562_v61, %s3109_s26 }
 0x2be   : > { %1615 = vrot.lane.b32.xlu0 %v1562_v61, %s3107_s22  ;;  %1598 = vrot.lane.b32.xlu1 %v1562_v61, %s3114_s17 }
 0x2bf   : > { %1582 = vrot.lane.b32.xlu2 %v1562_v61, %s3110_s28 }
 0x2c6   : > { %1637 = vrot.lane.b32.xlu0 %v1628_v49, %s3105_s19  ;;  %1666 = vrot.lane.b32.xlu1 %v1657_v62, %s3115_s20  ;;  %v2915_v49 = vld [vmem:[#allocation3 + $0xe4] sm:$0xf]  ;;  %v2834_v62 = vld [vmem:[#allocation3 + $0xe8] sm:$0xf0] }
 0x2c7   : > { %1635 = vrot.lane.b32.xlu2 %v1562_v61, %s3105_s19 }
 0x2ce   : > { %1664 = vrot.lane.b32.xlu0 %v1562_v61, %s3115_s20  ;;  %1568 = vrot.lane.b32.xlu1 %v1530_v60, %s3111_s4 }
 0x2cf   : > { %1551 = vrot.lane.b32.xlu2 %v1530_v60, %s3113_s11 }
 0x2d6   : > { %1535 = vrot.lane.b32.xlu0 %v1530_v60, %s3109_s26  ;;  %1617 = vrot.lane.b32.xlu1 %v1530_v60, %s3107_s22 }
 0x2d7   : > { %1600 = vrot.lane.b32.xlu2 %v1530_v60, %s3114_s17  ;;  %s3046_s17 = scalar_lea.hbm %s4348_s3, 256 }
 0x2de   : > { %1584 = vrot.lane.b32.xlu0 %v1530_v60, %s3110_s28  ;;  %1639 = vrot.lane.b32.xlu1 %v1530_v60, %s3105_s19 }
 0x2df   : > { %1641 = vrot.lane.b32.xlu2 %v1630_v63, %s3105_s19 }
 0x2e6   : > { %1670 = vrot.lane.b32.xlu0 %v1659_v0, %s3115_s20  ;;  %v2837_v0 = vor.u32 %v2915_v49, %v2834_v62  ;;  %v2887_v49 = vld [vmem:[#allocation3 + $0x4] sm:$0xf] }
 0x2e7   : > { %1668 = vrot.lane.b32.xlu2 %v1530_v60, %s3115_s20  ;;  %v2916_v60 = vld [vmem:[#allocation3 + $0xe4] sm:$0xf0] }
 0x2e8   : > { %v2833_v61 = vor.u32 %v2916_v60, %v2832_v59  ;;  %1919 = vmatpush.bf16.msrb.mxu3 %v2837_v0  ;;  %v2720_v60 = vld [vmem:[#allocation3] sm:$0xf] }
 0x2ea   : > { %1906 = vmatpush.bf16.msrb.mxu2 %v2833_v61 }
 0x2ec   : > { %1920 = vmatpush.bf16.msrb.mxu3 %v2829_v14 }
 0x311   : > { %v1534_v1 = vpop.permute.xlu2 %1533 }
 0x312   : > { %v1537_v2 = vrot.slane %v1534_v1, 4 }
 0x314   : > { %v1539_v3 = vsel %vm1106_vm6, %v1534_v1, %v1537_v2 }
 0x315   : > { %1543 = vst.msk [vmem:[#allocation3 + $0x8] sm:$0xff] %vm3582_vm0, %v1539_v3 }
 0x319   : > { %v1583_v5 = vpop.permute.xlu2 %1582 }
 0x31a   : > { %v1586_v7 = vrot.slane %v1583_v5, 4 }
 0x31c   : > { %v1588_v8 = vsel %vm4379_vm2, %v1583_v5, %v1586_v7  ;;  %v2824_v7 = vld [vmem:[#allocation3 + $0xd0] sm:$0xf]  ;;  %v2888_v61 = vld [vmem:[#allocation3 + $0x4] sm:$0xf0]  ;;  %v2722_v62 = vld [vmem:[#allocation3 + $0x8] sm:$0xf0] }
 0x31d   : > { %1592 = vst.msk [vmem:[#allocation3 + $0x20] sm:$0xff] %vm3582_vm0, %v1588_v8  ;;  %v2914_v8 = vld [vmem:[#allocation3 + $0xd4] sm:$0xf0] }
 0x321   : > { %v3780_v9 = vpop.permute.xlu2 %1635 }
 0x322   : > { %v1643_v45 = vrot.slane %v3780_v9, 4 }
 0x328   : > { %v1567_v22 = vpop.permute.xlu0 %1566  ;;  %v1550_v23 = vpop.permute.xlu1 %1549 }
 0x329   : > { %v1570_v24 = vrot.slane %v1567_v22, 4  ;;  %v1553_v25 = vrot.slane %v1550_v23, 4  ;;  %v1552_v26 = vpop.permute.xlu2 %1551 }
 0x32a   : > { %v1554_v29 = vrot.slane %v1552_v26, 4 }
 0x32b   : > { %v1572_v32 = vsel %vm4380_vm13, %v1567_v22, %v1570_v24  ;;  %v1556_v33 = vsel %vm1555_vm14, %v1550_v23, %v1553_v25 }
 0x32c   : > { %1576 = vst.msk [vmem:[#allocation3 + $0x18] sm:$0xff] %vm3582_vm0, %v1572_v32  ;;  %v1557_v35 = vsel %vm1555_vm14, %v1552_v26, %v1554_v29 }
 0x32d   : > { %1560 = vst.msk [vmem:[#allocation3 + $0x10] sm:$0xff] %vm3582_vm0, %v1556_v33 }
 0x32e   : > { %1561 = vst.msk [vmem:[#allocation3 + $0x90] sm:$0xff] %vm3582_vm0, %v1557_v35 }
 0x330   : > { %v1616_v36 = vpop.permute.xlu0 %1615  ;;  %v1599_v37 = vpop.permute.xlu1 %1598 }
 0x331   : > { %v1619_v38 = vrot.slane %v1616_v36, 4  ;;  %v1602_v39 = vrot.slane %v1599_v37, 4  ;;  %v1601_v40 = vpop.permute.xlu2 %1600 }
 0x332   : > { %v1603_v41 = vrot.slane %v1601_v40, 4 }
 0x333   : > { %v1621_v42 = vsel %vm4381_vm3, %v1616_v36, %v1619_v38  ;;  %v1605_v43 = vsel %vm1604_vm1, %v1599_v37, %v1602_v39  ;;  %v2736_v38 = vld [vmem:[#allocation3 + $0x20] sm:$0xf]  ;;  %v2890_v50 = vld [vmem:[#allocation3 + $0x14] sm:$0xf0]  ;;  %v2730_v54 = vld [vmem:[#allocation3 + $0x18] sm:$0xf0] }
 0x334   : > { %1625 = vst.msk [vmem:[#allocation3 + $0x30] sm:$0xff] %vm3582_vm0, %v1621_v42  ;;  %v1606_v44 = vsel %vm1604_vm1, %v1601_v40, %v1603_v41  ;;  %v2891_v41 = vld [vmem:[#allocation3 + $0x24] sm:$0xf]  ;;  %v2728_v52 = vld [vmem:[#allocation3 + $0x10] sm:$0xf] }
 0x335   : > { %1609 = vst.msk [vmem:[#allocation3 + $0x28] sm:$0xff] %vm3582_vm0, %v1605_v43  ;;  %v2889_v53 = vld [vmem:[#allocation3 + $0x14] sm:$0xf] }
 0x336   : > { %1610 = vst.msk [vmem:[#allocation3 + $0xa8] sm:$0xff] %vm3582_vm0, %v1606_v44  ;;  %v2733_v59 = vor.u32 %v2889_v53, %v2730_v54 }
 0x338   : > { %v1638_v46 = vpop.permute.xlu0 %1637  ;;  %v1667_v47 = vpop.permute.xlu1 %1666 }
 0x339   : > { %v1644_v48 = vrot.slane %v1638_v46, 4  ;;  %v1673_v63 = vrot.slane %v1667_v47, 4  ;;  %v1642_v22 = vpop.permute.xlu2 %1641 }
 0x33a   : > { %v1646_v31 = vrot.slane %v1642_v22, 4 }
 0x33b   : > { %v1648_v56 = vsel %vm4382_vm7, %v1643_v45, %v1644_v48  ;;  %v2744_v32 = vld [vmem:[#allocation3 + $0x30] sm:$0xf]  ;;  %v2893_v33 = vld [vmem:[#allocation3 + $0x34] sm:$0xf] }
 0x33c   : > { %v1649_v58 = vsel %vm4383_vm15, %v3780_v9, %v1648_v56  ;;  %v2825_v9 = vor.u32 %v2914_v8, %v2824_v7  ;;  %v2892_v40 = vld [vmem:[#allocation3 + $0x24] sm:$0xf0]  ;;  %v2738_v42 = vld [vmem:[#allocation3 + $0x28] sm:$0xf0] }
 0x33d   : > { %1654 = vst.msk [vmem:[#allocation3 + $0x38] sm:$0xff] %vm3582_vm0, %v1649_v58  ;;  %v2737_v47 = vor.u32 %v2892_v40, %v2736_v38  ;;  %v2741_v48 = vor.u32 %v2891_v41, %v2738_v42  ;;  %v2729_v58 = vor.u32 %v2890_v50, %v2728_v52  ;;  %v2818_v7 = vld [vmem:[#allocation3 + $0xc8] sm:$0xf0] }
 0x33e   : > { %1907 = vmatpush.bf16.msrb.mxu2 %v2825_v9 }
 0x340   : > { %v1665_v1 = vpop.permute.xlu0 %1664  ;;  %v1569_v2 = vpop.permute.xlu1 %1568 }
 0x341   : > { %v1672_v3 = vrot.slane %v1665_v1, 4  ;;  %v1571_v5 = vrot.slane %v1569_v2, 4  ;;  %v1669_v45 = vpop.permute.xlu2 %1668 }
 0x342   : > { %v1674_v55 = vrot.slane %v1669_v45, 4 }
 0x343   : > { %v1676_v12 = vsel %vm4384_vm12, %v1672_v3, %v1673_v63  ;;  %v1573_v13 = vsel %vm4385_vm4, %v1569_v2, %v1571_v5  ;;  %v2725_v2 = vor.u32 %v2887_v49, %v2722_v62  ;;  %v2717_v3 = vld [vmem:[%s4346_s1 + $0x4] sm:$0xf]  ;;  %v2912_v5 = vld [vmem:[#allocation3 + $0xc4] sm:$0xf0] }
 0x344   : > { %v1678_v15 = vsel %vm1677_vm11, %v1665_v1, %v1676_v12  ;;  %1577 = vst.msk [vmem:[#allocation3 + $0x98] sm:$0xff] %vm3582_vm0, %v1573_v13  ;;  %v2894_v29 = vld [vmem:[#allocation3 + $0x34] sm:$0xf0]  ;;  %v2746_v30 = vld [vmem:[#allocation3 + $0x38] sm:$0xf0]  ;;  %v2721_v1 = vor.u32 %v2888_v61, %v2720_v60 }
 0x345   : > { %1683 = vst.msk [vmem:[#allocation3 + $0x40] sm:$0xff] %vm3582_vm0, %v1678_v15  ;;  %v2745_v36 = vor.u32 %v2894_v29, %v2744_v32  ;;  %v2749_v37 = vor.u32 %v2893_v33, %v2746_v30  ;;  %v2784_v29 = vld [vmem:[#allocation3 + $0x80] sm:$0xf] }
 0x348   : > { %v1536_v16 = vpop.permute.xlu0 %1535  ;;  %v1618_v17 = vpop.permute.xlu1 %1617 }
 0x349   : > { %v1538_v18 = vrot.slane %v1536_v16, 4  ;;  %v1620_v19 = vrot.slane %v1618_v17, 4 }
 0x34b   : > { %v1540_v23 = vsel %vm1106_vm6, %v1536_v16, %v1538_v18  ;;  %v1622_v24 = vsel %vm4386_vm8, %v1618_v17, %v1620_v19  ;;  %vm4387_vm6 = vmmov %vm4379_vm2  ;;  %v2908_v17 = vld [vmem:[#allocation3 + $0xa4] sm:$0xf0] }
 0x34c   : > { %1544 = vst.msk [vmem:[#allocation3 + $0x88] sm:$0xff] %vm3582_vm0, %v1540_v23  ;;  %v2752_v25 = vld [vmem:[#allocation3 + $0x40] sm:$0xf]  ;;  %v2895_v26 = vld [vmem:[#allocation3 + $0x44] sm:$0xf] }
 0x34d   : > { %v2753_v27 = vor.u32 %v2896_v20, %v2752_v25  ;;  %v2757_v28 = vor.u32 %v2895_v26, %v2754_v21  ;;  %1626 = vst.msk [vmem:[#allocation3 + $0xb0] sm:$0xff] %vm3582_vm0, %v1622_v24  ;;  %v2802_v20 = vld [vmem:[#allocation3 + $0xa8] sm:$0xf0]  ;;  %v2792_v23 = vld [vmem:[#allocation3 + $0x90] sm:$0xf] }
 0x34e   : > { %v2906_v24 = vld [vmem:[#allocation3 + $0x94] sm:$0xf0]  ;;  %v2905_v25 = vld [vmem:[#allocation3 + $0x94] sm:$0xf]  ;;  %v2794_v26 = vld [vmem:[#allocation3 + $0x98] sm:$0xf0] }
 0x34f   : > { %1786 = vmatpush.bf16.msrb.mxu0 %v2753_v27  ;;  %1799 = vmatpush.bf16.msrb.mxu1 %v2757_v28  ;;  %v2793_v27 = vor.u32 %v2906_v24, %v2792_v23  ;;  %v2797_v28 = vor.u32 %v2905_v25, %v2794_v26 }
 0x350   : > { %v1585_v6 = vpop.permute.xlu0 %1584  ;;  %v1640_v34 = vpop.permute.xlu1 %1639 }
 0x351   : > { %v1587_v35 = vrot.slane %v1585_v6, 4  ;;  %v1645_v39 = vrot.slane %v1640_v34, 4 }
 0x353   : > { %v1589_v43 = vsel %vm4387_vm6, %v1585_v6, %v1587_v35  ;;  %1787 = vmatpush.bf16.msrb.mxu0 %v2745_v36  ;;  %1800 = vmatpush.bf16.msrb.mxu1 %v2749_v37  ;;  %v1650_v44 = vsel %vm4388_vm9, %v1645_v39, %v1646_v31  ;;  %v2904_v30 = vld [vmem:[#allocation3 + $0x84] sm:$0xf0]  ;;  %v2903_v31 = vld [vmem:[#allocation3 + $0x84] sm:$0xf]  ;;  %v2786_v6 = vld [vmem:[#allocation3 + $0x88] sm:$0xf0] }
 0x354   : > { %1593 = vst.msk [vmem:[#allocation3 + $0xa0] sm:$0xff] %vm3582_vm0, %v1589_v43  ;;  %v1651_v46 = vsel %vm4389_vm10, %v1640_v34, %v1650_v44  ;;  %v2808_v8 = vld [vmem:[#allocation3 + $0xb0] sm:$0xf]  ;;  %v2909_v10 = vld [vmem:[#allocation3 + $0xb4] sm:$0xf]  ;;  %v2785_v32 = vor.u32 %v2904_v30, %v2784_v29  ;;  %v2789_v33 = vor.u32 %v2903_v31, %v2786_v6 }
 0x355   : > { %1655 = vst.msk [vmem:[#allocation3 + $0xb8] sm:$0xff] %vm3582_vm0, %v1651_v46 }
 0x357   : > { %1788 = vmatpush.bf16.msrb.mxu0 %v2737_v47  ;;  %1801 = vmatpush.bf16.msrb.mxu1 %v2741_v48 }
 0x358   : > { %v1671_v56 = vpop.permute.xlu0 %1670 }
 0x359   : > { %v1675_v57 = vrot.slane %v1671_v56, 4 }
 0x35b   : > { %v1679_v63 = vsel %vm4390_vm5, %v1674_v55, %v1675_v57  ;;  %1789 = vmatpush.bf16.msrb.mxu0 %v2729_v58  ;;  %1802 = vmatpush.bf16.msrb.mxu1 %v2733_v59  ;;  %v2800_v18 = vld [vmem:[#allocation3 + $0xa0] sm:$0xf]  ;;  %v2907_v19 = vld [vmem:[#allocation3 + $0xa4] sm:$0xf] }
 0x35c   : > { %v1680_v0 = vsel %vm1677_vm11, %v1669_v45, %v1679_v63  ;;  %v2910_v9 = vld [vmem:[#allocation3 + $0xb4] sm:$0xf0]  ;;  %v2810_v13 = vld [vmem:[#allocation3 + $0xb8] sm:$0xf0]  ;;  %v2801_v21 = vor.u32 %v2908_v17, %v2800_v18  ;;  %v2805_v22 = vor.u32 %v2907_v19, %v2802_v20 }
 0x35d   : > { %1684 = vst.msk [vmem:[#allocation3 + $0xc0] sm:$0xff] %vm3582_vm0, %v1680_v0  ;;  %v2809_v15 = vor.u32 %v2910_v9, %v2808_v8  ;;  %v2813_v16 = vor.u32 %v2909_v10, %v2810_v13  ;;  %vm1976_vm0 = vcmask 172032  }
 0x35f   : > { %1790 = vmatpush.bf16.msrb.mxu0 %v2721_v1  ;;  %1803 = vmatpush.bf16.msrb.mxu1 %v2725_v2 }
 0x362   : > { %1791 = vmatmul.bf16.vlgmr.msrb.gmra.mxu0 %v2717_v3  ;;  %1804 = vmatmul.bf16.vlgmr.msrb.gmra.mxu1 %v2717_v3 }
 0x364   : > { %v2816_v11 = vld [vmem:[#allocation3 + $0xc0] sm:$0xf]  ;;  %v2911_v12 = vld [vmem:[#allocation3 + $0xc4] sm:$0xf] }
 0x365   : > { %v2817_v4 = vor.u32 %v2912_v5, %v2816_v11  ;;  %v2821_v14 = vor.u32 %v2911_v12, %v2818_v7 }
 0x367   : > { %1908 = vmatpush.bf16.msrb.mxu2 %v2817_v4  ;;  %1921 = vmatpush.bf16.msrb.mxu3 %v2821_v14 }
 0x36b   : > { %1909 = vmatpush.bf16.msrb.mxu2 %v2809_v15  ;;  %1922 = vmatpush.bf16.msrb.mxu3 %v2813_v16 }
 0x36f   : > { %1910 = vmatpush.bf16.msrb.mxu2 %v2801_v21  ;;  %1923 = vmatpush.bf16.msrb.mxu3 %v2805_v22 }
 0x373   : > { %1911 = vmatpush.bf16.msrb.mxu2 %v2793_v27  ;;  %1924 = vmatpush.bf16.msrb.mxu3 %v2797_v28 }
 0x377   : > { %1912 = vmatpush.bf16.msrb.mxu2 %v2785_v32  ;;  %1925 = vmatpush.bf16.msrb.mxu3 %v2789_v33 }
 0x37a   : > { %1913 = vmatmul.bf16.vlgmr.msrb.gmra.mxu2 %v2717_v3  ;;  %1926 = vmatmul.bf16.vlgmr.msrb.gmra.mxu3 %v2717_v3 }
 0x3df   : > { %v1792_v34 = vpop.f32.mrf.mxu0  ;;  %v1805_v35 = vpop.f32.mrf.mxu1 }
 0x3e0   : > { %v1938_v36 = vadd.f32 %v3705_v51, %v1792_v34  ;;  %v1939_v38 = vadd.f32 %v3705_v51, %v1805_v35 }
 0x3e2   : > { %v1942_v37 = vmax.f32 %v1938_v36, 0.0  ;;  %v3846_v48 = vmax.f32 %v1939_v38, 0.0 }
 0x3e4   : > { %1977 = vst.msk [vmem:[%s3834_s23] sm:$0x1] %vm1976_vm0, %v1942_v37  ;;  %v1993_v39 = vperm.slane %v1942_v37, 0  ;;  %v1949_v40 = vrot.slane %v1942_v37, 2  ;;  %v1948_v41 = vrot.slane %v1942_v37, 1  ;;  %v1950_v42 = vrot.slane %v1942_v37, 3 }
 0x3e5   : > { %v1952_v43 = vrot.slane %v1942_v37, 5  ;;  %v1951_v44 = vrot.slane %v1942_v37, 4  ;;  %v1953_v47 = vrot.slane %v1942_v37, 6  ;;  %v1954_v50 = vrot.slane %v1942_v37, 7 }
 0x3e6   : > { %2137 = vrot.lane.b32.xlu1 %v1993_v39, %s3116_s5  ;;  %2073 = vrot.lane.b32.xlu0 %v1993_v39, %s3107_s22  ;;  %1979 = vst.msk [vmem:[%s3834_s23 + $0x10] sm:$0x1] %vm1976_vm0, %v1949_v40  ;;  %v2281_v52 = vperm.slane %v3846_v48, 0  ;;  %v1995_v53 = vperm.slane %v1949_v40, 0  ;;  %v1994_v54 = vperm.slane %v1948_v41, 0  ;;  %v1996_v59 = vperm.slane %v1950_v42, 0 }
 0x3e7   : > { %2009 = vrot.lane.b32.xlu2 %v1993_v39, %s3111_s4  ;;  %v1794_v45 = vpop.f32.mrf.mxu0  ;;  %v1807_v46 = vpop.f32.mrf.mxu1  ;;  %1978 = vst.msk [vmem:[%s3834_s23 + $0x8] sm:$0x1] %vm1976_vm0, %v1948_v41  ;;  %v1998_v55 = vperm.slane %v1952_v43, 0  ;;  %v1997_v56 = vperm.slane %v1951_v44, 0  ;;  %v2000_v1 = vperm.slane %v1954_v50, 0  ;;  %v1999_v3 = vperm.slane %v1953_v47, 0 }
 0x3e8   : > { %1980 = vst.msk [vmem:[%s3834_s23 + $0x18] sm:$0x1] %vm1976_vm0, %v1950_v42  ;;  %v2267_v10 = vrot.slane %v3846_v48, 1  ;;  %v2269_v12 = vrot.slane %v3846_v48, 3  ;;  %v2270_v13 = vrot.slane %v3846_v48, 4  ;;  %v2268_v14 = vrot.slane %v3846_v48, 2 }
 0x3e9   : > { %1982 = vst.msk [vmem:[%s3834_s23 + $0x28] sm:$0x1] %vm1976_vm0, %v1952_v43  ;;  %v2272_v18 = vrot.slane %v3846_v48, 6  ;;  %v2273_v19 = vrot.slane %v3846_v48, 7  ;;  %v2271_v21 = vrot.slane %v3846_v48, 5 }
 0x3ea   : > { %1981 = vst.msk [vmem:[%s3834_s23 + $0x20] sm:$0x1] %vm1976_vm0, %v1951_v44  ;;  %v2282_v11 = vperm.slane %v2267_v10, 0  ;;  %v2284_v15 = vperm.slane %v2269_v12, 0  ;;  %v2285_v16 = vperm.slane %v2270_v13, 0  ;;  %v2283_v17 = vperm.slane %v2268_v14, 0 }
 0x3eb   : > { %1983 = vst.msk [vmem:[%s3834_s23 + $0x30] sm:$0x1] %vm1976_vm0, %v1953_v47  ;;  %v2287_v22 = vperm.slane %v2272_v18, 0  ;;  %v2288_v23 = vperm.slane %v2273_v19, 0  ;;  %v2286_v24 = vperm.slane %v2271_v21, 0 }
 0x3ec   : > { %1984 = vst.msk [vmem:[%s3834_s23 + $0x38] sm:$0x1] %vm1976_vm0, %v1954_v50 }
 0x3ee   : > { %2361 = vrot.lane.b32.xlu1 %v2281_v52, %s3110_s28  ;;  %2297 = vrot.lane.b32.xlu0 %v2281_v52, %s3109_s26 }
 0x3ef   : > { %2201 = vrot.lane.b32.xlu2 %v1993_v39, %s3117_s30 }
 0x3f6   : > { %2013 = vrot.lane.b32.xlu1 %v1995_v53, %s3111_s4  ;;  %2011 = vrot.lane.b32.xlu0 %v1994_v54, %s3111_s4 }
 0x3f7   : > { %2425 = vrot.lane.b32.xlu2 %v2281_v52, %s3105_s19 }
 0x3fd   : > { %v1914_v57 = vpop.f32.mrf.mxu2  ;;  %v3865_v58 = vpop.f32.mrf.mxu3 }
 0x3fe   : > { %v1940_v60 = vadd.f32 %v3705_v51, %v1914_v57  ;;  %2019 = vrot.lane.b32.xlu1 %v1998_v55, %s3111_s4  ;;  %2017 = vrot.lane.b32.xlu0 %v1997_v56, %s3111_s4  ;;  %v1941_v41 = vadd.f32 %v3705_v51, %v3865_v58 }
 0x3ff   : > { %2015 = vrot.lane.b32.xlu2 %v1996_v59, %s3111_s4 }
 0x400   : > { %v3871_v61 = vmax.f32 %v1940_v60, 0.0  ;;  %v4005_v42 = vmax.f32 %v1941_v41, 0.0 }
 0x402   : > { %1985 = vst.msk [vmem:[%s3834_s23 + $0x40] sm:$0x1] %vm1976_vm0, %v3871_v61  ;;  %v1956_v49 = vrot.slane %v3871_v61, 2  ;;  %v1955_v62 = vrot.slane %v3871_v61, 1  ;;  %v1957_v63 = vrot.slane %v3871_v61, 3  ;;  %v1959_v0 = vrot.slane %v3871_v61, 5 }
 0x403   : > { %v1958_v2 = vrot.slane %v3871_v61, 4  ;;  %v1960_v8 = vrot.slane %v3871_v61, 6  ;;  %v1961_v9 = vrot.slane %v3871_v61, 7  ;;  %v2001_v37 = vperm.slane %v3871_v61, 0 }
 0x404   : > { %1987 = vst.msk [vmem:[%s3834_s23 + $0x50] sm:$0x1] %vm1976_vm0, %v1956_v49  ;;  %v2289_v51 = vperm.slane %v4005_v42, 0  ;;  %v4025_v50 = vperm.slane %v1956_v49, 0  ;;  %v4029_v52 = vperm.slane %v1957_v63, 0  ;;  %v4049_v57 = vperm.slane %v1959_v0, 0 }
 0x405   : > { %v1916_v5 = vpop.f32.mrf.mxu2  ;;  %v1929_v7 = vpop.f32.mrf.mxu3  ;;  %1986 = vst.msk [vmem:[%s3834_s23 + $0x48] sm:$0x1] %vm1976_vm0, %v1955_v62  ;;  %v4053_v58 = vperm.slane %v1960_v8, 0  ;;  %v2275_v21 = vrot.slane %v4005_v42, 2 }
 0x406   : > { %2075 = vrot.lane.b32.xlu1 %v1994_v54, %s3107_s22  ;;  %2023 = vrot.lane.b32.xlu0 %v2000_v1, %s3111_s4  ;;  %1988 = vst.msk [vmem:[%s3834_s23 + $0x58] sm:$0x1] %vm1976_vm0, %v1957_v63  ;;  %v4073_v63 = vperm.slane %v1961_v9, 0 }
 0x407   : > { %2021 = vrot.lane.b32.xlu2 %v1999_v3, %s3111_s4  ;;  %1990 = vst.msk [vmem:[%s3834_s23 + $0x68] sm:$0x1] %vm1976_vm0, %v1959_v0 }
 0x408   : > { %1989 = vst.msk [vmem:[%s3834_s23 + $0x60] sm:$0x1] %vm1976_vm0, %v1958_v2 }
 0x409   : > { %1991 = vst.msk [vmem:[%s3834_s23 + $0x70] sm:$0x1] %vm1976_vm0, %v1960_v8 }
 0x40a   : > { %1992 = vst.msk [vmem:[%s3834_s23 + $0x78] sm:$0x1] %vm1976_vm0, %v1961_v9 }
 0x40e   : > { %2081 = vrot.lane.b32.xlu1 %v1997_v56, %s3107_s22  ;;  %2079 = vrot.lane.b32.xlu0 %v1996_v59, %s3107_s22 }
 0x40f   : > { %2077 = vrot.lane.b32.xlu2 %v1995_v53, %s3107_s22 }
 0x416   : > { %2087 = vrot.lane.b32.xlu1 %v2000_v1, %s3107_s22  ;;  %2085 = vrot.lane.b32.xlu0 %v1999_v3, %s3107_s22 }
 0x417   : > { %2083 = vrot.lane.b32.xlu2 %v1998_v55, %s3107_s22 }
 0x41e   : > { %2143 = vrot.lane.b32.xlu1 %v1996_v59, %s3116_s5  ;;  %2141 = vrot.lane.b32.xlu0 %v1995_v53, %s3116_s5 }
 0x41f   : > { %2139 = vrot.lane.b32.xlu2 %v1994_v54, %s3116_s5 }
 0x426   : > { %2149 = vrot.lane.b32.xlu1 %v1999_v3, %s3116_s5  ;;  %2147 = vrot.lane.b32.xlu0 %v1998_v55, %s3116_s5 }
 0x427   : > { %2145 = vrot.lane.b32.xlu2 %v1997_v56, %s3116_s5 }
 0x42e   : > { %2205 = vrot.lane.b32.xlu1 %v1995_v53, %s3117_s30  ;;  %2203 = vrot.lane.b32.xlu0 %v1994_v54, %s3117_s30  ;;  %v4033_v53 = vperm.slane %v1955_v62, 0 }
 0x42f   : > { %2151 = vrot.lane.b32.xlu2 %v2000_v1, %s3116_s5 }
 0x436   : > { %2211 = vrot.lane.b32.xlu1 %v1998_v55, %s3117_s30  ;;  %2209 = vrot.lane.b32.xlu0 %v1997_v56, %s3117_s30 }
 0x437   : > { %2207 = vrot.lane.b32.xlu2 %v1996_v59, %s3117_s30  ;;  %v4057_v59 = vperm.slane %v1958_v2, 0 }
 0x43e   : > { %2215 = vrot.lane.b32.xlu0 %v2000_v1, %s3117_s30  ;;  %2299 = vrot.lane.b32.xlu1 %v2282_v11, %s3109_s26 }
 0x43f   : > { %2213 = vrot.lane.b32.xlu2 %v1999_v3, %s3117_s30 }
 0x441   : > { %v2010_v4 = vpop.permute.xlu2 %2009 }
 0x442   : > { %2057 = vst.msk [vmem:[%s3834_s23 + $0x1] sm:$0x1] %vm1976_vm0, %v2010_v4 }
 0x446   : > { %2303 = vrot.lane.b32.xlu0 %v2284_v15, %s3109_s26  ;;  %2305 = vrot.lane.b32.xlu1 %v2285_v16, %s3109_s26 }
 0x447   : > { %2301 = vrot.lane.b32.xlu2 %v2283_v17, %s3109_s26 }
 0x449   : > { %v2202_v20 = vpop.permute.xlu2 %2201 }
 0x44a   : > { %2249 = vst.msk [vmem:[%s3834_s23 + $0x4] sm:$0x1] %vm1976_vm0, %v2202_v20  ;;  %v2274_v20 = vrot.slane %v4005_v42, 1 }
 0x44e   : > { %2309 = vrot.lane.b32.xlu0 %v2287_v22, %s3109_s26  ;;  %2311 = vrot.lane.b32.xlu1 %v2288_v23, %s3109_s26 }
 0x44f   : > { %2307 = vrot.lane.b32.xlu2 %v2286_v24, %s3109_s26 }
 0x451   : > { %v2426_v25 = vpop.permute.xlu2 %2425 }
 0x452   : > { %2473 = vst.msk [vmem:[%s3834_s23 + $0x7] sm:$0x1] %vm1976_vm0, %v2426_v25 }
 0x456   : > { %2365 = vrot.lane.b32.xlu0 %v2283_v17, %s3110_s28  ;;  %2367 = vrot.lane.b32.xlu1 %v2284_v15, %s3110_s28 }
 0x457   : > { %2363 = vrot.lane.b32.xlu2 %v2282_v11, %s3110_s28 }
 0x458   : > { %v2138_v26 = vpop.permute.xlu1 %2137  ;;  %v2074_v27 = vpop.permute.xlu0 %2073 }
 0x459   : > { %2185 = vst.msk [vmem:[%s3834_s23 + $0x3] sm:$0x1] %vm1976_vm0, %v2138_v26  ;;  %v2016_v28 = vpop.permute.xlu2 %2015 }
 0x45a   : > { %2121 = vst.msk [vmem:[%s3834_s23 + $0x2] sm:$0x1] %vm1976_vm0, %v2074_v27  ;;  %v2277_v27 = vrot.slane %v4005_v42, 4 }
 0x45b   : > { %2060 = vst.msk [vmem:[%s3834_s23 + $0x19] sm:$0x1] %vm1976_vm0, %v2016_v28  ;;  %v2278_v28 = vrot.slane %v4005_v42, 5 }
 0x45e   : > { %2371 = vrot.lane.b32.xlu0 %v2286_v24, %s3110_s28  ;;  %2373 = vrot.lane.b32.xlu1 %v2287_v22, %s3110_s28 }
 0x45f   : > { %2369 = vrot.lane.b32.xlu2 %v2285_v16, %s3110_s28 }
 0x460   : > { %v2362_v29 = vpop.permute.xlu1 %2361  ;;  %v2298_v30 = vpop.permute.xlu0 %2297 }
 0x461   : > { %v2022_v31 = vpop.permute.xlu2 %2021  ;;  %2409 = vst.msk [vmem:[%s3834_s23 + $0x6] sm:$0x1] %vm1976_vm0, %v2362_v29 }
 0x462   : > { %2063 = vst.msk [vmem:[%s3834_s23 + $0x31] sm:$0x1] %vm1976_vm0, %v2022_v31  ;;  %v2293_v31 = vperm.slane %v2277_v27, 0 }
 0x463   : > { %2345 = vst.msk [vmem:[%s3834_s23 + $0x5] sm:$0x1] %vm1976_vm0, %v2298_v30  ;;  %v2276_v30 = vrot.slane %v4005_v42, 3 }
 0x466   : > { %2427 = vrot.lane.b32.xlu0 %v2282_v11, %s3105_s19  ;;  %2429 = vrot.lane.b32.xlu1 %v2283_v17, %s3105_s19 }
 0x467   : > { %2375 = vrot.lane.b32.xlu2 %v2288_v23, %s3110_s28 }
 0x468   : > { %v2014_v6 = vpop.permute.xlu1 %2013  ;;  %v2012_v32 = vpop.permute.xlu0 %2011 }
 0x469   : > { %v2078_v33 = vpop.permute.xlu2 %2077  ;;  %2059 = vst.msk [vmem:[%s3834_s23 + $0x11] sm:$0x1] %vm1976_vm0, %v2014_v6  ;;  %v2294_v6 = vperm.slane %v2278_v28, 0 }
 0x46a   : > { %2123 = vst.msk [vmem:[%s3834_s23 + $0x12] sm:$0x1] %vm1976_vm0, %v2078_v33 }
 0x46b   : > { %2058 = vst.msk [vmem:[%s3834_s23 + $0x9] sm:$0x1] %vm1976_vm0, %v2012_v32  ;;  %v2292_v32 = vperm.slane %v2276_v30, 0 }
 0x46e   : > { %2433 = vrot.lane.b32.xlu0 %v2285_v16, %s3105_s19  ;;  %2435 = vrot.lane.b32.xlu1 %v2286_v24, %s3105_s19  ;;  %v2291_v24 = vperm.slane %v2275_v21, 0 }
 0x46f   : > { %2431 = vrot.lane.b32.xlu2 %v2284_v15, %s3105_s19 }
 0x470   : > { %v2020_v34 = vpop.permute.xlu1 %2019  ;;  %v2018_v35 = vpop.permute.xlu0 %2017 }
 0x471   : > { %v2084_v36 = vpop.permute.xlu2 %2083  ;;  %2062 = vst.msk [vmem:[%s3834_s23 + $0x29] sm:$0x1] %vm1976_vm0, %v2020_v34 }
 0x472   : > { %2126 = vst.msk [vmem:[%s3834_s23 + $0x2a] sm:$0x1] %vm1976_vm0, %v2084_v36 }
 0x473   : > { %2061 = vst.msk [vmem:[%s3834_s23 + $0x21] sm:$0x1] %vm1976_vm0, %v2018_v35  ;;  %v2280_v35 = vrot.slane %v4005_v42, 7 }
 0x476   : > { %2439 = vrot.lane.b32.xlu0 %v2288_v23, %s3105_s19  ;;  %2025 = vrot.lane.b32.xlu1 %v2001_v37, %s3111_s4  ;;  %v2290_v23 = vperm.slane %v2274_v20, 0 }
 0x477   : > { %2437 = vrot.lane.b32.xlu2 %v2287_v22, %s3105_s19 }
 0x478   : > { %v2076_v38 = vpop.permute.xlu1 %2075  ;;  %v2024_v39 = vpop.permute.xlu0 %2023 }
 0x479   : > { %v2140_v40 = vpop.permute.xlu2 %2139  ;;  %2122 = vst.msk [vmem:[%s3834_s23 + $0xa] sm:$0x1] %vm1976_vm0, %v2076_v38  ;;  %v2296_v38 = vperm.slane %v2280_v35, 0 }
 0x47a   : > { %2186 = vst.msk [vmem:[%s3834_s23 + $0xb] sm:$0x1] %vm1976_vm0, %v2140_v40 }
 0x47b   : > { %2064 = vst.msk [vmem:[%s3834_s23 + $0x39] sm:$0x1] %vm1976_vm0, %v2024_v39 }
 0x47e   : > { %2153 = vrot.lane.b32.xlu0 %v2001_v37, %s3116_s5  ;;  %2217 = vrot.lane.b32.xlu1 %v2001_v37, %s3117_s30 }
 0x47f   : > { %2089 = vrot.lane.b32.xlu2 %v2001_v37, %s3107_s22  ;;  %v2279_v37 = vrot.slane %v4005_v42, 6 }
 0x480   : > { %v2082_v43 = vpop.permute.xlu1 %2081  ;;  %v2080_v44 = vpop.permute.xlu0 %2079 }
 0x481   : > { %v2146_v45 = vpop.permute.xlu2 %2145  ;;  %2125 = vst.msk [vmem:[%s3834_s23 + $0x22] sm:$0x1] %vm1976_vm0, %v2082_v43  ;;  %v2295_v39 = vperm.slane %v2279_v37, 0 }
 0x482   : > { %2189 = vst.msk [vmem:[%s3834_s23 + $0x23] sm:$0x1] %vm1976_vm0, %v2146_v45 }
 0x483   : > { %2124 = vst.msk [vmem:[%s3834_s23 + $0x1a] sm:$0x1] %vm1976_vm0, %v2080_v44 }
 0x486   : > { %2377 = vrot.lane.b32.xlu0 %v2289_v51, %s3110_s28  ;;  %2441 = vrot.lane.b32.xlu1 %v2289_v51, %s3105_s19 }
 0x487   : > { %2313 = vrot.lane.b32.xlu2 %v2289_v51, %s3109_s26 }
 0x488   : > { %v2088_v46 = vpop.permute.xlu1 %2087  ;;  %v2086_v47 = vpop.permute.xlu0 %2085 }
 0x489   : > { %v2152_v48 = vpop.permute.xlu2 %2151  ;;  %2128 = vst.msk [vmem:[%s3834_s23 + $0x3a] sm:$0x1] %vm1976_vm0, %v2088_v46 }
 0x48a   : > { %2192 = vst.msk [vmem:[%s3834_s23 + $0x3b] sm:$0x1] %vm1976_vm0, %v2152_v48 }
 0x48b   : > { %2127 = vst.msk [vmem:[%s3834_s23 + $0x32] sm:$0x1] %vm1976_vm0, %v2086_v47 }
 0x48e   : > { %2029 = vrot.lane.b32.xlu0 %v4025_v50, %s3111_s4  ;;  %2031 = vrot.lane.b32.xlu1 %v4029_v52, %s3111_s4 }
 0x48f   : > { %2027 = vrot.lane.b32.xlu2 %v4033_v53, %s3111_s4 }
 0x490   : > { %v2144_v54 = vpop.permute.xlu1 %2143  ;;  %v2142_v55 = vpop.permute.xlu0 %2141 }
 0x491   : > { %v2208_v56 = vpop.permute.xlu2 %2207  ;;  %2188 = vst.msk [vmem:[%s3834_s23 + $0x1b] sm:$0x1] %vm1976_vm0, %v2144_v54 }
 0x492   : > { %2252 = vst.msk [vmem:[%s3834_s23 + $0x1c] sm:$0x1] %vm1976_vm0, %v2208_v56 }
 0x493   : > { %2187 = vst.msk [vmem:[%s3834_s23 + $0x13] sm:$0x1] %vm1976_vm0, %v2142_v55 }
 0x496   : > { %2035 = vrot.lane.b32.xlu0 %v4049_v57, %s3111_s4  ;;  %2037 = vrot.lane.b32.xlu1 %v4053_v58, %s3111_s4 }
 0x497   : > { %2033 = vrot.lane.b32.xlu2 %v4057_v59, %s3111_s4 }
 0x498   : > { %v2150_v60 = vpop.permute.xlu1 %2149  ;;  %v2148_v49 = vpop.permute.xlu0 %2147 }
 0x499   : > { %v2214_v62 = vpop.permute.xlu2 %2213  ;;  %2191 = vst.msk [vmem:[%s3834_s23 + $0x33] sm:$0x1] %vm1976_vm0, %v2150_v60 }
 0x49a   : > { %2255 = vst.msk [vmem:[%s3834_s23 + $0x34] sm:$0x1] %vm1976_vm0, %v2214_v62 }
 0x49b   : > { %2190 = vst.msk [vmem:[%s3834_s23 + $0x2b] sm:$0x1] %vm1976_vm0, %v2148_v49 }
 0x49e   : > { %2091 = vrot.lane.b32.xlu0 %v4033_v53, %s3107_s22  ;;  %2093 = vrot.lane.b32.xlu1 %v4025_v50, %s3107_s22 }
 0x49f   : > { %2039 = vrot.lane.b32.xlu2 %v4073_v63, %s3111_s4  ;;  %s2503_s4 = sshll.u32 %s3834_s23, 4  ;;  %s2504_s4 = int_to_ptr.vmem [resolvable:$true] %s2503_s4 }
 0x4a0   : > { %v2206_v0 = vpop.permute.xlu1 %2205  ;;  %v2204_v1 = vpop.permute.xlu0 %2203 }
 0x4a1   : > { %2251 = vst.msk [vmem:[%s3834_s23 + $0x14] sm:$0x1] %vm1976_vm0, %v2206_v0  ;;  %v2302_v2 = vpop.permute.xlu2 %2301 }
 0x4a2   : > { %2250 = vst.msk [vmem:[%s3834_s23 + $0xc] sm:$0x1] %vm1976_vm0, %v2204_v1 }
 0x4a3   : > { %2347 = vst.msk [vmem:[%s3834_s23 + $0x15] sm:$0x1] %vm1976_vm0, %v2302_v2 }
 0x4a6   : > { %2097 = vrot.lane.b32.xlu0 %v4057_v59, %s3107_s22  ;;  %2099 = vrot.lane.b32.xlu1 %v4049_v57, %s3107_s22 }
 0x4a7   : > { %2095 = vrot.lane.b32.xlu2 %v4029_v52, %s3107_s22 }
 0x4a8   : > { %v2212_v61 = vpop.permute.xlu1 %2211  ;;  %v2210_v3 = vpop.permute.xlu0 %2209 }
 0x4a9   : > { %2254 = vst.msk [vmem:[%s3834_s23 + $0x2c] sm:$0x1] %vm1976_vm0, %v2212_v61  ;;  %v2308_v5 = vpop.permute.xlu2 %2307 }
 0x4aa   : > { %2253 = vst.msk [vmem:[%s3834_s23 + $0x24] sm:$0x1] %vm1976_vm0, %v2210_v3 }
 0x4ab   : > { %2350 = vst.msk [vmem:[%s3834_s23 + $0x2d] sm:$0x1] %vm1976_vm0, %v2308_v5 }
 0x4ae   : > { %2103 = vrot.lane.b32.xlu0 %v4073_v63, %s3107_s22  ;;  %2155 = vrot.lane.b32.xlu1 %v4033_v53, %s3116_s5 }
 0x4af   : > { %2101 = vrot.lane.b32.xlu2 %v4053_v58, %s3107_s22 }
 0x4b0   : > { %v2216_v7 = vpop.permute.xlu0 %2215  ;;  %v2300_v8 = vpop.permute.xlu1 %2299 }
 0x4b1   : > { %2256 = vst.msk [vmem:[%s3834_s23 + $0x3c] sm:$0x1] %vm1976_vm0, %v2216_v7  ;;  %v2364_v9 = vpop.permute.xlu2 %2363 }
 0x4b2   : > { %2410 = vst.msk [vmem:[%s3834_s23 + $0xe] sm:$0x1] %vm1976_vm0, %v2364_v9 }
 0x4b3   : > { %2346 = vst.msk [vmem:[%s3834_s23 + $0xd] sm:$0x1] %vm1976_vm0, %v2300_v8 }
 0x4b6   : > { %2159 = vrot.lane.b32.xlu0 %v4029_v52, %s3116_s5  ;;  %2161 = vrot.lane.b32.xlu1 %v4057_v59, %s3116_s5 }
 0x4b7   : > { %2157 = vrot.lane.b32.xlu2 %v4025_v50, %s3116_s5 }
 0x4b8   : > { %v2304_v10 = vpop.permute.xlu0 %2303  ;;  %v2306_v11 = vpop.permute.xlu1 %2305 }
 0x4b9   : > { %2348 = vst.msk [vmem:[%s3834_s23 + $0x1d] sm:$0x1] %vm1976_vm0, %v2304_v10  ;;  %v2370_v12 = vpop.permute.xlu2 %2369 }
 0x4ba   : > { %2413 = vst.msk [vmem:[%s3834_s23 + $0x26] sm:$0x1] %vm1976_vm0, %v2370_v12 }
 0x4bb   : > { %2349 = vst.msk [vmem:[%s3834_s23 + $0x25] sm:$0x1] %vm1976_vm0, %v2306_v11 }
 0x4be   : > { %2165 = vrot.lane.b32.xlu0 %v4053_v58, %s3116_s5  ;;  %2167 = vrot.lane.b32.xlu1 %v4073_v63, %s3116_s5 }
 0x4bf   : > { %2163 = vrot.lane.b32.xlu2 %v4049_v57, %s3116_s5 }
 0x4c0   : > { %v2310_v13 = vpop.permute.xlu0 %2309  ;;  %v2312_v4 = vpop.permute.xlu1 %2311 }
 0x4c1   : > { %2351 = vst.msk [vmem:[%s3834_s23 + $0x35] sm:$0x1] %vm1976_vm0, %v2310_v13  ;;  %v2376_v14 = vpop.permute.xlu2 %2375 }
 0x4c2   : > { %2416 = vst.msk [vmem:[%s3834_s23 + $0x3e] sm:$0x1] %vm1976_vm0, %v2376_v14 }
 0x4c3   : > { %2352 = vst.msk [vmem:[%s3834_s23 + $0x3d] sm:$0x1] %vm1976_vm0, %v2312_v4 }
 0x4c6   : > { %2221 = vrot.lane.b32.xlu0 %v4025_v50, %s3117_s30  ;;  %2223 = vrot.lane.b32.xlu1 %v4029_v52, %s3117_s30 }
 0x4c7   : > { %2219 = vrot.lane.b32.xlu2 %v4033_v53, %s3117_s30 }
 0x4c8   : > { %v2366_v15 = vpop.permute.xlu0 %2365  ;;  %v2368_v16 = vpop.permute.xlu1 %2367 }
 0x4c9   : > { %2411 = vst.msk [vmem:[%s3834_s23 + $0x16] sm:$0x1] %vm1976_vm0, %v2366_v15  ;;  %v2432_v17 = vpop.permute.xlu2 %2431 }
 0x4ca   : > { %2476 = vst.msk [vmem:[%s3834_s23 + $0x1f] sm:$0x1] %vm1976_vm0, %v2432_v17 }
 0x4cb   : > { %2412 = vst.msk [vmem:[%s3834_s23 + $0x1e] sm:$0x1] %vm1976_vm0, %v2368_v16 }
 0x4ce   : > { %2227 = vrot.lane.b32.xlu0 %v4049_v57, %s3117_s30  ;;  %2229 = vrot.lane.b32.xlu1 %v4053_v58, %s3117_s30 }
 0x4cf   : > { %2225 = vrot.lane.b32.xlu2 %v4057_v59, %s3117_s30 }
 0x4d0   : > { %v2372_v18 = vpop.permute.xlu0 %2371  ;;  %v2374_v19 = vpop.permute.xlu1 %2373 }
 0x4d1   : > { %2414 = vst.msk [vmem:[%s3834_s23 + $0x2e] sm:$0x1] %vm1976_vm0, %v2372_v18  ;;  %v2438_v22 = vpop.permute.xlu2 %2437 }
 0x4d2   : > { %2479 = vst.msk [vmem:[%s3834_s23 + $0x37] sm:$0x1] %vm1976_vm0, %v2438_v22 }
 0x4d3   : > { %2415 = vst.msk [vmem:[%s3834_s23 + $0x36] sm:$0x1] %vm1976_vm0, %v2374_v19 }
 0x4d6   : > { %2315 = vrot.lane.b32.xlu0 %v2290_v23, %s3109_s26  ;;  %2317 = vrot.lane.b32.xlu1 %v2291_v24, %s3109_s26 }
 0x4d7   : > { %2231 = vrot.lane.b32.xlu2 %v4073_v63, %s3117_s30 }
 0x4d8   : > { %v2428_v25 = vpop.permute.xlu0 %2427  ;;  %v2430_v26 = vpop.permute.xlu1 %2429 }
 0x4d9   : > { %2474 = vst.msk [vmem:[%s3834_s23 + $0xf] sm:$0x1] %vm1976_vm0, %v2428_v25  ;;  %v2090_v29 = vpop.permute.xlu2 %2089 }
 0x4da   : > { %2129 = vst.msk [vmem:[%s3834_s23 + $0x42] sm:$0x1] %vm1976_vm0, %v2090_v29 }
 0x4db   : > { %2475 = vst.msk [vmem:[%s3834_s23 + $0x17] sm:$0x1] %vm1976_vm0, %v2430_v26 }
 0x4de   : > { %2321 = vrot.lane.b32.xlu0 %v2293_v31, %s3109_s26  ;;  %2323 = vrot.lane.b32.xlu1 %v2294_v6, %s3109_s26 }
 0x4df   : > { %2319 = vrot.lane.b32.xlu2 %v2292_v32, %s3109_s26 }
 0x4e0   : > { %v2434_v33 = vpop.permute.xlu0 %2433  ;;  %v2436_v34 = vpop.permute.xlu1 %2435 }
 0x4e1   : > { %2477 = vst.msk [vmem:[%s3834_s23 + $0x27] sm:$0x1] %vm1976_vm0, %v2434_v33  ;;  %v2314_v36 = vpop.permute.xlu2 %2313 }
 0x4e2   : > { %2353 = vst.msk [vmem:[%s3834_s23 + $0x45] sm:$0x1] %vm1976_vm0, %v2314_v36 }
 0x4e3   : > { %2478 = vst.msk [vmem:[%s3834_s23 + $0x2f] sm:$0x1] %vm1976_vm0, %v2436_v34 }
 0x4e6   : > { %2327 = vrot.lane.b32.xlu0 %v2296_v38, %s3109_s26  ;;  %2379 = vrot.lane.b32.xlu1 %v2290_v23, %s3110_s28 }
 0x4e7   : > { %2325 = vrot.lane.b32.xlu2 %v2295_v39, %s3109_s26 }
 0x4e8   : > { %v2440_v40 = vpop.permute.xlu0 %2439  ;;  %v2026_v41 = vpop.permute.xlu1 %2025 }
 0x4e9   : > { %2480 = vst.msk [vmem:[%s3834_s23 + $0x3f] sm:$0x1] %vm1976_vm0, %v2440_v40  ;;  %v2028_v42 = vpop.permute.xlu2 %2027 }
 0x4ea   : > { %2066 = vst.msk [vmem:[%s3834_s23 + $0x49] sm:$0x1] %vm1976_vm0, %v2028_v42 }
 0x4eb   : > { %2065 = vst.msk [vmem:[%s3834_s23 + $0x41] sm:$0x1] %vm1976_vm0, %v2026_v41 }
 0x4ee   : > { %2383 = vrot.lane.b32.xlu0 %v2292_v32, %s3110_s28  ;;  %2385 = vrot.lane.b32.xlu1 %v2293_v31, %s3110_s28 }
 0x4ef   : > { %2381 = vrot.lane.b32.xlu2 %v2291_v24, %s3110_s28 }
 0x4f0   : > { %v2154_v43 = vpop.permute.xlu0 %2153  ;;  %v2218_v44 = vpop.permute.xlu1 %2217 }
 0x4f1   : > { %2193 = vst.msk [vmem:[%s3834_s23 + $0x43] sm:$0x1] %vm1976_vm0, %v2154_v43  ;;  %v2034_v45 = vpop.permute.xlu2 %2033 }
 0x4f2   : > { %2069 = vst.msk [vmem:[%s3834_s23 + $0x61] sm:$0x1] %vm1976_vm0, %v2034_v45 }
 0x4f3   : > { %2257 = vst.msk [vmem:[%s3834_s23 + $0x44] sm:$0x1] %vm1976_vm0, %v2218_v44 }
 0x4f6   : > { %2389 = vrot.lane.b32.xlu0 %v2295_v39, %s3110_s28  ;;  %2391 = vrot.lane.b32.xlu1 %v2296_v38, %s3110_s28 }
 0x4f7   : > { %2387 = vrot.lane.b32.xlu2 %v2294_v6, %s3110_s28 }
 0x4f8   : > { %v2378_v51 = vpop.permute.xlu0 %2377  ;;  %v2442_v46 = vpop.permute.xlu1 %2441 }
 0x4f9   : > { %2417 = vst.msk [vmem:[%s3834_s23 + $0x46] sm:$0x1] %vm1976_vm0, %v2378_v51  ;;  %v2040_v47 = vpop.permute.xlu2 %2039 }
 0x4fa   : > { %2072 = vst.msk [vmem:[%s3834_s23 + $0x79] sm:$0x1] %vm1976_vm0, %v2040_v47 }
 0x4fb   : > { %2481 = vst.msk [vmem:[%s3834_s23 + $0x47] sm:$0x1] %vm1976_vm0, %v2442_v46 }
 0x4fe   : > { %2445 = vrot.lane.b32.xlu0 %v2291_v24, %s3105_s19  ;;  %2447 = vrot.lane.b32.xlu1 %v2292_v32, %s3105_s19 }
 0x4ff   : > { %2443 = vrot.lane.b32.xlu2 %v2290_v23, %s3105_s19 }
 0x500   : > { %v2030_v48 = vpop.permute.xlu0 %2029  ;;  %v2032_v50 = vpop.permute.xlu1 %2031 }
 0x501   : > { %2067 = vst.msk [vmem:[%s3834_s23 + $0x51] sm:$0x1] %vm1976_vm0, %v2030_v48  ;;  %v2096_v52 = vpop.permute.xlu2 %2095 }
 0x502   : > { %2132 = vst.msk [vmem:[%s3834_s23 + $0x5a] sm:$0x1] %vm1976_vm0, %v2096_v52 }
 0x503   : > { %2068 = vst.msk [vmem:[%s3834_s23 + $0x59] sm:$0x1] %vm1976_vm0, %v2032_v50 }
 0x506   : > { %2451 = vrot.lane.b32.xlu0 %v2294_v6, %s3105_s19  ;;  %2453 = vrot.lane.b32.xlu1 %v2295_v39, %s3105_s19 }
 0x507   : > { %2449 = vrot.lane.b32.xlu2 %v2293_v31, %s3105_s19 }
 0x508   : > { %v2036_v53 = vpop.permute.xlu0 %2035  ;;  %v2038_v54 = vpop.permute.xlu1 %2037 }
 0x509   : > { %2070 = vst.msk [vmem:[%s3834_s23 + $0x69] sm:$0x1] %vm1976_vm0, %v2036_v53  ;;  %v2102_v55 = vpop.permute.xlu2 %2101 }
 0x50a   : > { %2135 = vst.msk [vmem:[%s3834_s23 + $0x72] sm:$0x1] %vm1976_vm0, %v2102_v55 }
 0x50b   : > { %2071 = vst.msk [vmem:[%s3834_s23 + $0x71] sm:$0x1] %vm1976_vm0, %v2038_v54 }
 0x50f   : > { %2455 = vrot.lane.b32.xlu2 %v2296_v38, %s3105_s19  ;;  %s2920_s19 = sshll.u32 %s3161_s16, 7  ;;  %s2490_s16 = scalar_lea.sflag [#allocation6], %s3226_s29 }
 0x510   : > { %v2092_v56 = vpop.permute.xlu0 %2091  ;;  %v2094_v57 = vpop.permute.xlu1 %2093  ;;  %s2502_s28 = scalar_lea.hbm %s4348_s3, %s2920_s19 }
 0x511   : > { %2130 = vst.msk [vmem:[%s3834_s23 + $0x4a] sm:$0x1] %vm1976_vm0, %v2092_v56  ;;  %v2158_v58 = vpop.permute.xlu2 %2157  ;;  %s2505_s7 = sshll.u32 %s2502_s28, 4  ;;  %s2506_s7 = int_to_ptr.hbm [resolvable:$true] %s2505_s7 }
 0x512   : > { %2195 = vst.msk [vmem:[%s3834_s23 + $0x53] sm:$0x1] %vm1976_vm0, %v2158_v58  ;;  %s3040_s8 = sshra.s32 %s2506_s7, 4  ;;  %s3041_s8 = int_to_ptr.hbm [resolvable:$true] %s3040_s8 }
 0x513   : > { %2131 = vst.msk [vmem:[%s3834_s23 + $0x52] sm:$0x1] %vm1976_vm0, %v2094_v57  ;;  %s3042_s9 = scalar_lea.hbm %s3041_s8, 128  ;;  %p3047_p0 = scmp.lt.s32.totalorder %s3041_s8, %s4348_s3 }
 0x514   : > { %p3043_p6 = scmp.ne.s32.totalorder %s3041_s8, %s3042_s9  ;;  %p3048_p1 = scmp.lt.s32.totalorder %s3046_s17, %s3042_s9 }
 0x516   : > { %p3044_p9 = pnand %p3043_p6, %p3190_p11  ;;  %p3049_p3 = por %p3048_p1, %p3047_p0 }
 0x518   : > { %v2098_v59 = vpop.permute.xlu0 %2097  ;;  %v2100_v60 = vpop.permute.xlu1 %2099  ;;  %p3045_p13 = pneg %p3044_p9 }
 0x519   : > { %2133 = vst.msk [vmem:[%s3834_s23 + $0x62] sm:$0x1] %vm1976_vm0, %v2098_v59  ;;  %v2164_v49 = vpop.permute.xlu2 %2163 }
 0x51a   : > { %2198 = vst.msk [vmem:[%s3834_s23 + $0x6b] sm:$0x1] %vm1976_vm0, %v2164_v49  ;;  %p3050_p4 = pnand %p3049_p3, %p3045_p13 }
 0x51b   : > { %2134 = vst.msk [vmem:[%s3834_s23 + $0x6a] sm:$0x1] %vm1976_vm0, %v2100_v60 }
 0x520   : > { %v2104_v62 = vpop.permute.xlu0 %2103  ;;  %v2156_v63 = vpop.permute.xlu1 %2155 }
 0x521   : > { %2136 = vst.msk [vmem:[%s3834_s23 + $0x7a] sm:$0x1] %vm1976_vm0, %v2104_v62  ;;  %v2220_v0 = vpop.permute.xlu2 %2219 }
 0x522   : > { %2258 = vst.msk [vmem:[%s3834_s23 + $0x4c] sm:$0x1] %vm1976_vm0, %v2220_v0 }
 0x523   : > { %2194 = vst.msk [vmem:[%s3834_s23 + $0x4b] sm:$0x1] %vm1976_vm0, %v2156_v63 }
 0x528   : > { %v2160_v1 = vpop.permute.xlu0 %2159  ;;  %v2162_v2 = vpop.permute.xlu1 %2161 }
 0x529   : > { %2196 = vst.msk [vmem:[%s3834_s23 + $0x5b] sm:$0x1] %vm1976_vm0, %v2160_v1  ;;  %v2226_v61 = vpop.permute.xlu2 %2225 }
 0x52a   : > { %2261 = vst.msk [vmem:[%s3834_s23 + $0x64] sm:$0x1] %vm1976_vm0, %v2226_v61 }
 0x52b   : > { %2197 = vst.msk [vmem:[%s3834_s23 + $0x63] sm:$0x1] %vm1976_vm0, %v2162_v2 }
 0x530   : > { %v2166_v3 = vpop.permute.xlu0 %2165  ;;  %v2168_v5 = vpop.permute.xlu1 %2167 }
 0x531   : > { %2199 = vst.msk [vmem:[%s3834_s23 + $0x73] sm:$0x1] %vm1976_vm0, %v2166_v3  ;;  %v2232_v7 = vpop.permute.xlu2 %2231 }
 0x532   : > { %2264 = vst.msk [vmem:[%s3834_s23 + $0x7c] sm:$0x1] %vm1976_vm0, %v2232_v7 }
 0x533   : > { %2200 = vst.msk [vmem:[%s3834_s23 + $0x7b] sm:$0x1] %vm1976_vm0, %v2168_v5 }
 0x538   : > { %v2222_v8 = vpop.permute.xlu0 %2221  ;;  %v2224_v9 = vpop.permute.xlu1 %2223 }
 0x539   : > { %2259 = vst.msk [vmem:[%s3834_s23 + $0x54] sm:$0x1] %vm1976_vm0, %v2222_v8  ;;  %v2320_v10 = vpop.permute.xlu2 %2319 }
 0x53a   : > { %2356 = vst.msk [vmem:[%s3834_s23 + $0x5d] sm:$0x1] %vm1976_vm0, %v2320_v10 }
 0x53b   : > { %2260 = vst.msk [vmem:[%s3834_s23 + $0x5c] sm:$0x1] %vm1976_vm0, %v2224_v9 }
 0x540   : > { %v2228_v11 = vpop.permute.xlu0 %2227  ;;  %v2230_v12 = vpop.permute.xlu1 %2229 }
 0x541   : > { %2262 = vst.msk [vmem:[%s3834_s23 + $0x6c] sm:$0x1] %vm1976_vm0, %v2228_v11  ;;  %v2326_v13 = vpop.permute.xlu2 %2325 }
 0x542   : > { %2359 = vst.msk [vmem:[%s3834_s23 + $0x75] sm:$0x1] %vm1976_vm0, %v2326_v13 }
 0x543   : > { %2263 = vst.msk [vmem:[%s3834_s23 + $0x74] sm:$0x1] %vm1976_vm0, %v2230_v12 }
 0x548   : > { %v2316_v4 = vpop.permute.xlu0 %2315  ;;  %v2318_v14 = vpop.permute.xlu1 %2317 }
 0x549   : > { %2354 = vst.msk [vmem:[%s3834_s23 + $0x4d] sm:$0x1] %vm1976_vm0, %v2316_v4  ;;  %v2382_v15 = vpop.permute.xlu2 %2381 }
 0x54a   : > { %2419 = vst.msk [vmem:[%s3834_s23 + $0x56] sm:$0x1] %vm1976_vm0, %v2382_v15 }
 0x54b   : > { %2355 = vst.msk [vmem:[%s3834_s23 + $0x55] sm:$0x1] %vm1976_vm0, %v2318_v14 }
 0x550   : > { %v2322_v16 = vpop.permute.xlu0 %2321  ;;  %v2324_v17 = vpop.permute.xlu1 %2323 }
 0x551   : > { %2357 = vst.msk [vmem:[%s3834_s23 + $0x65] sm:$0x1] %vm1976_vm0, %v2322_v16  ;;  %v2388_v18 = vpop.permute.xlu2 %2387 }
 0x552   : > { %2422 = vst.msk [vmem:[%s3834_s23 + $0x6e] sm:$0x1] %vm1976_vm0, %v2388_v18 }
 0x553   : > { %2358 = vst.msk [vmem:[%s3834_s23 + $0x6d] sm:$0x1] %vm1976_vm0, %v2324_v17 }
 0x558   : > { %v2328_v19 = vpop.permute.xlu0 %2327  ;;  %v2380_v20 = vpop.permute.xlu1 %2379 }
 0x559   : > { %2360 = vst.msk [vmem:[%s3834_s23 + $0x7d] sm:$0x1] %vm1976_vm0, %v2328_v19  ;;  %v2444_v21 = vpop.permute.xlu2 %2443 }
 0x55a   : > { %2482 = vst.msk [vmem:[%s3834_s23 + $0x4f] sm:$0x1] %vm1976_vm0, %v2444_v21 }
 0x55b   : > { %2418 = vst.msk [vmem:[%s3834_s23 + $0x4e] sm:$0x1] %vm1976_vm0, %v2380_v20 }
 0x560   : > { %v2384_v22 = vpop.permute.xlu0 %2383  ;;  %v2386_v23 = vpop.permute.xlu1 %2385 }
 0x561   : > { %2420 = vst.msk [vmem:[%s3834_s23 + $0x5e] sm:$0x1] %vm1976_vm0, %v2384_v22  ;;  %v2450_v24 = vpop.permute.xlu2 %2449 }
 0x562   : > { %2485 = vst.msk [vmem:[%s3834_s23 + $0x67] sm:$0x1] %vm1976_vm0, %v2450_v24 }
 0x563   : > { %2421 = vst.msk [vmem:[%s3834_s23 + $0x66] sm:$0x1] %vm1976_vm0, %v2386_v23 }
 0x568   : > { %v2390_v25 = vpop.permute.xlu0 %2389  ;;  %v2392_v26 = vpop.permute.xlu1 %2391 }
 0x569   : > { %2423 = vst.msk [vmem:[%s3834_s23 + $0x76] sm:$0x1] %vm1976_vm0, %v2390_v25  ;;  %v2456_v27 = vpop.permute.xlu2 %2455 }
 0x56a   : > { %2488 = vst.msk [vmem:[%s3834_s23 + $0x7f] sm:$0x1] %vm1976_vm0, %v2456_v27 }
 0x56b   : > { %2424 = vst.msk [vmem:[%s3834_s23 + $0x7e] sm:$0x1] %vm1976_vm0, %v2392_v26 }
 0x570   : > { %v2446_v28 = vpop.permute.xlu0 %2445  ;;  %v2448_v29 = vpop.permute.xlu1 %2447 }
 0x571   : > { %2483 = vst.msk [vmem:[%s3834_s23 + $0x57] sm:$0x1] %vm1976_vm0, %v2446_v28 }
 0x572   : > { %2484 = vst.msk [vmem:[%s3834_s23 + $0x5f] sm:$0x1] %vm1976_vm0, %v2448_v29 }
 0x578   : > { %v2452_v30 = vpop.permute.xlu0 %2451  ;;  %v2454_v31 = vpop.permute.xlu1 %2453 }
 0x579   : > { %2486 = vst.msk [vmem:[%s3834_s23 + $0x6f] sm:$0x1] %vm1976_vm0, %v2452_v30 }
 0x57a   : > { %2487 = vst.msk [vmem:[%s3834_s23 + $0x77] sm:$0x1] %vm1976_vm0, %v2454_v31 }
 0x57b   : > { %3053 = shalt.err (!%p3050_p4)
}
 0x57c   : > { %s3118_s29 = smov 128   ;;  %s3119_s6 = smov 8  }
 0x57d   : > { %2923 = dma.vmem_to_hbm [thread:$0]  (%p3190_p11), %s2504_s4, 2048, %s2506_s7, %s2490_s16, %s3118_s29, %s3118_s29, %s3119_s6  }
 0x57e PF: > { %s2520_s23 = sand.u32 1, %s3080_s12   ;;  %p4391_p7 = scmp.ge.s32.totalorder %s3092_s15, 2 }
 0x57f   : > { %s2521_s5 = scalar_lea.sflag [#allocation6], %s2520_s23 }
 0x580   : > { %p2930_p5 = pnand %p4391_p7, %p3194_p12 }
 0x582   : > { %p2931_p8 = pneg %p2930_p5 }
 0x584   : > { %3075 = dma.done.wait (%p2931_p8), %s2521_s5, 2048  }
 0x585   : > { %3077 = vsyncadd (%p2931_p8), %s2521_s5, 4294965248  ;;  %p16_p10 = scmp.ge.s32.totalorder %s3165_s18, 4   ;;  %s4392_s12 = smov %s3084_s13 }
 0x586   : > { %s4393_s13 = smov %s3088_s14  ;;  %s4394_s14 = smov %s3177_s21 }
 0x587   : > { %s4395_s15 = smov %s3165_s18  ;;  %18 = sbr.rel (!%p16_p10) target bundleno = 5 (0x5), region = 80 }
 0x58c   :  { %2527 = vsyncpa [#allocation5], 1 }
 0x58d   :  { %2529 = vsyncpa [#allocation5 + $0x1], 1 }
 0x58e   :  { %2530 = vsyncpa [#allocation6], 1 }
 0x58f   :  { %2532 = vsyncpa [#allocation6 + $0x1], 1 }

</bundles_post_ra>
